<compile_context>
chip_gen: v7x
topology: tpu7x:2x2x1
jax: 0.10.0
libtpu: 0.0.40
codegen_flags: <defaults>
</compile_context>

<pallas_src>
import jax
import jax.numpy as jnp
import numpy as np
from jax.experimental import pallas as pl
from jax.experimental.pallas import tpu as pltpu


def _round_up(x, m):
    return (x + m - 1) // m * m


# ----------------------------------------------------------------------------
# Fully fused LeNet kernel: one image (or a small image tile) per grid step.
# ----------------------------------------------------------------------------
def _lenet_kernel(x_ref, t1_ref, b1c_ref, t2_ref, b2c_ref,
                  w1_ref, b1_ref, w2_ref, b2_ref, w3_ref, b3_ref,
                  o_ref, p1_scr):
    f32, bf16 = jnp.float32, jnp.bfloat16
    tile_b = x_ref.shape[0]
    for i in range(tile_b):                            # static unroll, tile_b small
        xx = x_ref[i]                                  # (8, 384) f32: 4 image rows / sublane-row
        xs = (xx[0:7, :].astype(bf16),                 # vertical block offset sj = 0
              xx[1:8, :].astype(bf16))                 # vertical block offset sj = 1

        # ---- conv1 (5x5, 3->6) + 2x2/2 max-pool as implicit GEMM ------------
        # 16 Toeplitz dots: (conv-row phase j=0..3) x (col parity) x (sj=0,1).
        # c[jw][q, wp*6+co] == conv1[4q+j, 2wp+parity, co]
        c = []
        for jw in range(8):                            # jw = j*2 + col_parity
            acc = jnp.dot(xs[0], t1_ref[2 * jw + 0], preferred_element_type=f32)
            acc = acc + jnp.dot(xs[1], t1_ref[2 * jw + 1], preferred_element_type=f32)
            c.append(acc)                              # (7, 128) f32
        # pool1 row 2q   = max over conv rows 4q,4q+1   (phases 0,1) x col parity
        # pool1 row 2q+1 = max over conv rows 4q+2,4q+3 (phases 2,3) x col parity
        # bias after max is exact (per-channel constant, no activation in between)
        p1_even = jnp.maximum(jnp.maximum(c[0], c[1]), jnp.maximum(c[2], c[3])) + b1c_ref[...]
        p1_odd = jnp.maximum(jnp.maximum(c[4], c[5]), jnp.maximum(c[6], c[7])) + b1c_ref[...]
        # pack pool1 row pairs along lanes in a VMEM scratch (never touches HBM)
        p1_scr[0:7, 0:128] = p1_even
        p1_scr[0:7, 128:256] = p1_odd

        # ---- conv2 (5x5, 6->16) + 2x2/2 max-pool, same implicit-GEMM trick --
        d = []
        for hw in range(4):                            # hw = row_parity*2 + col_parity
            acc = None
            for sj in range(3):                        # contiguous 5-row slabs of packed pool1
                lhs = p1_scr[sj:sj + 5, :].astype(bf16)            # (5, 256)
                t = jnp.dot(lhs, t2_ref[3 * hw + sj], preferred_element_type=f32)
                acc = t if acc is None else acc + t
            d.append(acc)                              # (5, 128) f32
        p2 = jnp.maximum(jnp.maximum(d[0], d[1]), jnp.maximum(d[2], d[3])) + b2c_ref[...]

        # ---- classifier fc1 -> fc2 -> fc3 (torch flatten folded into w1_ref)
        h = b1_ref[...]                                # (1, 128) f32
        for r in range(5):                             # contract the 5 spatial rows
            h = h + jnp.dot(p2[r:r + 1, :].astype(bf16), w1_ref[r],
                            preferred_element_type=f32)
        h = jnp.dot(h.astype(bf16), w2_ref[...], preferred_element_type=f32) + b2_ref[...]
        h = jnp.dot(h.astype(bf16), w3_ref[...], preferred_element_type=f32) + b3_ref[...]
        o_ref[i] = h                                   # lane-dense (1, 128) f32 store


# ----------------------------------------------------------------------------
# LeNet forward (takes prepared params)
# ----------------------------------------------------------------------------
def lenet_forward(x_nchw, prep):
    x = jnp.transpose(x_nchw, (0, 2, 3, 1)).astype(jnp.float32)   # NHWC (B,32,32,3)
    B = x.shape[0]
    assert x.shape[1:] == (32, 32, 3)

    # Pack 4 consecutive image rows per sublane-row: pure reshape, no copy.
    xx = x.reshape(B, 8, 4 * 32 * 3)                               # (B, 8, 384)

    tile_b = 1 if B < 16 else 8        # >=2 grid steps at B>=2 (v7x megacore)
    B_pad = _round_up(B, tile_b)
    if B_pad != B:
        xx = jnp.pad(xx, ((0, B_pad - B), (0, 0), (0, 0)))

    full3 = lambda g: (0, 0, 0)
    full2 = lambda g: (0, 0)
    out = pl.pallas_call(
        _lenet_kernel,
        out_shape=jax.ShapeDtypeStruct((B_pad, 1, 128), jnp.float32),
        grid=(B_pad // tile_b,),
        in_specs=[
            pl.BlockSpec((tile_b, 8, 384), lambda g: (g, 0, 0)),
            pl.BlockSpec(prep["t1"].shape, full3),     # (16, 384, 128) bf16
            pl.BlockSpec(prep["b1c"].shape, full2),    # (1, 128) f32
            pl.BlockSpec(prep["t2"].shape, full3),     # (12, 256, 128) bf16
            pl.BlockSpec(prep["b2c"].shape, full2),    # (1, 128) f32
            pl.BlockSpec(prep["w1"].shape, full3),     # (5, 128, 128) bf16
            pl.BlockSpec(prep["b1"].shape, full2),     # (1, 128) f32
            pl.BlockSpec(prep["w2"].shape, full2),     # (128, 128) bf16
            pl.BlockSpec(prep["b2"].shape, full2),
            pl.BlockSpec(prep["w3"].shape, full2),
            pl.BlockSpec(prep["b3"].shape, full2),
        ],
        out_specs=pl.BlockSpec((tile_b, 1, 128), lambda g: (g, 0, 0)),
        scratch_shapes=[pltpu.VMEM((8, 256), jnp.float32)],        # packed pool1
        compiler_params=pltpu.CompilerParams(
            dimension_semantics=("parallel",),
            vmem_limit_bytes=32 * 1024 * 1024),
    )(xx, prep["t1"], prep["b1c"], prep["t2"], prep["b2c"],
      prep["w1"], prep["b1"], prep["w2"], prep["b2"], prep["w3"], prep["b3"])
    return out.reshape(B_pad, 128)[:B, :10]


# ----------------------------------------------------------------------------
# One-time parameter preparation: build the Toeplitz ("lowered conv") stacks,
# tiled biases, and fold the NCHW flatten permutation into fc1.
# Zero padding is load-bearing: padded lanes/rows/cols must stay zero.
# ----------------------------------------------------------------------------
def prepare_params(p):
    w1 = np.asarray(p["conv1_w"], np.float32)   # (6, 3, 5, 5)
    b1 = np.asarray(p["conv1_b"], np.float32)
    w2 = np.asarray(p["conv2_w"], np.float32)   # (16, 6, 5, 5)
    b2 = np.asarray(p["conv2_b"], np.float32)

    # conv1 Toeplitz stack: index = (phase j, col parity, vertical block sj).
    # Row of each matrix = packed-input lane (dr<4 image row, wi<32, ci<3);
    # column = pooled-width index wp<14 times 6 channels.
    t1 = np.zeros((4, 2, 2, 384, 128), np.float32)
    for j in range(4):                     # conv row r = 4q + j
        for wpar in range(2):              # conv col = 2*wp + wpar
            for sj in range(2):            # input block row q + sj (image rows 4(q+sj)+dr)
                for dr in range(4):
                    kh = 4 * sj + dr - j
                    if not 0 <= kh < 5:
                        continue
                    for wp in range(14):
                        for kw in range(5):
                            wi = 2 * wp + wpar + kw
                            for ci in range(3):
                                t1[j, wpar, sj, (dr * 32 + wi) * 3 + ci,
                                   wp * 6:wp * 6 + 6] = w1[:, ci, kh, kw]
    t1 = t1.reshape(16, 384, 128)
    b1c = np.zeros((1, 128), np.float32)
    for wp in range(14):
        b1c[0, wp * 6:wp * 6 + 6] = b1

    # conv2 Toeplitz stack: index = (row parity, col parity, vertical block sj).
    # Row = packed-pool1 lane (dr<2 pool1 row in the pair, w1i<14, ci<6, halves
    # 128-lane aligned); column = pooled-width wp2<5 times 16 channels.
    t2 = np.zeros((2, 2, 3, 256, 128), np.float32)
    for hpar in range(2):
        for wpar in range(2):
            for sj in range(3):
                for dr in range(2):
                    kh = 2 * sj + dr - hpar
                    if not 0 <= kh < 5:
                        continue
                    for wp2 in range(5):
                        for kw in range(5):
                            w1i = 2 * wp2 + wpar + kw
                            for ci in range(6):
                                t2[hpar, wpar, sj, dr * 128 + w1i * 6 + ci,
                                   wp2 * 16:wp2 * 16 + 16] = w2[:, ci, kh, kw]
    t2 = t2.reshape(12, 256, 128)
    b2c = np.zeros((1, 128), np.float32)
    for wp2 in range(5):
        b2c[0, wp2 * 16:wp2 * 16 + 16] = b2

    # fc1: fold torch's NCHW flatten order (c*25 + h*5 + w) into the kernel's
    # pool2 layout (row = h, lane = w*16 + c); zero rows/cols for padding.
    fc1 = np.asarray(p["fc1_w"], np.float32).reshape(120, 16, 5, 5)  # (out, c, h, w)
    fc1 = np.transpose(fc1, (2, 3, 1, 0))                            # (h, w, c, out)
    w1p = np.zeros((5, 128, 128), np.float32)
    w1p[:, :80, :120] = fc1.reshape(5, 80, 120)
    b1f = np.zeros((1, 128), np.float32)
    b1f[0, :120] = np.asarray(p["fc1_b"], np.float32)

    w2p = np.zeros((128, 128), np.float32)
    w2p[:120, :84] = np.asarray(p["fc2_w"], np.float32).T
    b2f = np.zeros((1, 128), np.float32)
    b2f[0, :84] = np.asarray(p["fc2_b"], np.float32)

    w3p = np.zeros((128, 128), np.float32)
    w3p[:84, :10] = np.asarray(p["fc3_w"], np.float32).T
    b3f = np.zeros((1, 128), np.float32)
    b3f[0, :10] = np.asarray(p["fc3_b"], np.float32)

    return {
        "t1": jnp.asarray(t1, jnp.bfloat16), "b1c": jnp.asarray(b1c),
        "t2": jnp.asarray(t2, jnp.bfloat16), "b2c": jnp.asarray(b2c),
        "w1": jnp.asarray(w1p, jnp.bfloat16), "b1": jnp.asarray(b1f),
        "w2": jnp.asarray(w2p, jnp.bfloat16), "b2": jnp.asarray(b2f),
        "w3": jnp.asarray(w3p, jnp.bfloat16), "b3": jnp.asarray(b3f),
    }


# ----------------------------------------------------------------------------
# Pure-JAX reference (torch semantics) for the self-check
# ----------------------------------------------------------------------------
def lenet_reference(x_nchw, p):
    x = jnp.transpose(x_nchw, (0, 2, 3, 1)).astype(jnp.float32)

    def conv(x, w, b):
        return jax.lax.conv_general_dilated(
            x, jnp.transpose(w, (2, 3, 1, 0)), (1, 1), "VALID",
            dimension_numbers=("NHWC", "HWIO", "NHWC")) + b

    def pool(x):
        return jax.lax.reduce_window(x, -jnp.inf, jax.lax.max,
                                     (1, 2, 2, 1), (1, 2, 2, 1), "VALID")

    x = pool(conv(x, p["conv1_w"], p["conv1_b"]))
    x = pool(conv(x, p["conv2_w"], p["conv2_b"]))
    x = jnp.transpose(x, (0, 3, 1, 2)).reshape(x.shape[0], -1)   # torch x.view(-1,400)
    x = x @ p["fc1_w"].T + p["fc1_b"]
    x = x @ p["fc2_w"].T + p["fc2_b"]
    x = x @ p["fc3_w"].T + p["fc3_b"]
    return x


# ----------------------------------------------------------------------------
# Deterministic parameter init (torch default: U(-1/sqrt(fan_in), 1/sqrt(fan_in)))
# ----------------------------------------------------------------------------
def init_params(key):
    def uniform(key, shape, fan_in):
        bound = 1.0 / jnp.sqrt(float(fan_in))
        return jax.random.uniform(key, shape, jnp.float32, -bound, bound)

    keys = jax.random.split(key, 10)
    p = {}
    p["conv1_w"] = uniform(keys[0], (6, 3, 5, 5), 3 * 5 * 5)
    p["conv1_b"] = uniform(keys[1], (6,), 3 * 5 * 5)
    p["conv2_w"] = uniform(keys[2], (16, 6, 5, 5), 6 * 5 * 5)
    p["conv2_b"] = uniform(keys[3], (16,), 6 * 5 * 5)
    p["fc1_w"] = uniform(keys[4], (120, 400), 400)   # torch Linear layout: (out, in)
    p["fc1_b"] = uniform(keys[5], (120,), 400)
    p["fc2_w"] = uniform(keys[6], (84, 120), 120)
    p["fc2_b"] = uniform(keys[7], (84,), 120)
    p["fc3_w"] = uniform(keys[8], (10, 84), 84)
    p["fc3_b"] = uniform(keys[9], (10,), 84)
    return p


if __name__ == "__main__":
    key = jax.random.PRNGKey(0)
    k_x, k_p = jax.random.split(key)
    # LeNet's classifier requires 32x32 spatial input (-> 16*5*5 = 400 features)
    x = jax.random.normal(k_x, (2, 3, 32, 32), dtype=jnp.float32)
    params = init_params(k_p)
    prep = prepare_params(params)          # one-time Toeplitz / fold / pad / bf16 cast

    out = jax.jit(lenet_forward)(x, prep)
    out = jax.block_until_ready(out)
    assert out.shape == (2, 10) and out.dtype == jnp.float32
    assert bool(jnp.isfinite(out).all())

    # sanity check against a pure-JAX f32 reference (loose tol: bf16 MXU operands)
    ref = jax.block_until_ready(lenet_reference(x, params))
    err = float(jnp.max(jnp.abs(out - ref)))
    scale = float(jnp.max(jnp.abs(ref))) + 1e-6
    assert err <= 0.05 * scale + 0.05, f"mismatch: max|diff|={err}, scale={scale}"

    print("KERNEL_OK")
</pallas_src>

<mosaic_0001>
module attributes {stable_mosaic.version = 11 : i64} {
  func.func @_lenet_kernel(%arg0: i32, %arg1: memref<1x8x384xf32, #tpu.memory_space<vmem>>, %arg2: memref<16x384x128xbf16, #tpu.memory_space<vmem>>, %arg3: memref<1x128xf32, #tpu.memory_space<vmem>>, %arg4: memref<12x256x128xbf16, #tpu.memory_space<vmem>>, %arg5: memref<1x128xf32, #tpu.memory_space<vmem>>, %arg6: memref<5x128x128xbf16, #tpu.memory_space<vmem>>, %arg7: memref<1x128xf32, #tpu.memory_space<vmem>>, %arg8: memref<128x128xbf16, #tpu.memory_space<vmem>>, %arg9: memref<1x128xf32, #tpu.memory_space<vmem>>, %arg10: memref<128x128xbf16, #tpu.memory_space<vmem>>, %arg11: memref<1x128xf32, #tpu.memory_space<vmem>>, %arg12: memref<1x1x128xf32, #tpu.memory_space<vmem>>, %arg13: memref<8x256xf32, #tpu.memory_space<vmem>>) attributes {dimension_semantics = [#tpu.dimension_semantics<parallel>], iteration_bounds = array<i64: 2>, scalar_prefetch = 0 : i64, scratch_operands = 1 : i64, tpu.core_type = #tpu.core_type<tc>, window_params = [{transform_indices = @transform_0, window_bounds = array<i64: 1, 8, 384>}, {pipeline_mode = #tpu.pipeline_mode<synchronous>, transform_indices = @transform_1, window_bounds = array<i64: 16, 384, 128>}, {pipeline_mode = #tpu.pipeline_mode<synchronous>, transform_indices = @transform_2, window_bounds = array<i64: 1, 128>}, {pipeline_mode = #tpu.pipeline_mode<synchronous>, transform_indices = @transform_3, window_bounds = array<i64: 12, 256, 128>}, {pipeline_mode = #tpu.pipeline_mode<synchronous>, transform_indices = @transform_4, window_bounds = array<i64: 1, 128>}, {pipeline_mode = #tpu.pipeline_mode<synchronous>, transform_indices = @transform_5, window_bounds = array<i64: 5, 128, 128>}, {pipeline_mode = #tpu.pipeline_mode<synchronous>, transform_indices = @transform_6, window_bounds = array<i64: 1, 128>}, {pipeline_mode = #tpu.pipeline_mode<synchronous>, transform_indices = @transform_7, window_bounds = array<i64: 128, 128>}, {pipeline_mode = #tpu.pipeline_mode<synchronous>, transform_indices = @transform_8, window_bounds = array<i64: 1, 128>}, {pipeline_mode = #tpu.pipeline_mode<synchronous>, transform_indices = @transform_9, window_bounds = array<i64: 128, 128>}, {pipeline_mode = #tpu.pipeline_mode<synchronous>, transform_indices = @transform_10, window_bounds = array<i64: 1, 128>}, {transform_indices = @transform_11, window_bounds = array<i64: 1, 1, 128>}]} {
    %c0 = arith.constant 0 : index
    %c0_0 = arith.constant 0 : index
    %c0_1 = arith.constant 0 : index
    %0 = vector.load %arg1[%c0, %c0_0, %c0_1] : memref<1x8x384xf32, #tpu.memory_space<vmem>>, vector<1x8x384xf32>
    %1 = vector.shape_cast %0 : vector<1x8x384xf32> to vector<8x384xf32>
    %2 = vector.extract_strided_slice %1 {offsets = [0, 0], sizes = [7, 384], strides = [1, 1]} : vector<8x384xf32> to vector<7x384xf32>
    %3 = arith.truncf %2 : vector<7x384xf32> to vector<7x384xbf16>
    %4 = vector.extract_strided_slice %1 {offsets = [1, 0], sizes = [7, 384], strides = [1, 1]} : vector<8x384xf32> to vector<7x384xf32>
    %5 = arith.truncf %4 : vector<7x384xf32> to vector<7x384xbf16>
    %c0_2 = arith.constant 0 : index
    %c0_3 = arith.constant 0 : index
    %c0_4 = arith.constant 0 : index
    %6 = vector.load %arg2[%c0_2, %c0_3, %c0_4] : memref<16x384x128xbf16, #tpu.memory_space<vmem>>, vector<1x384x128xbf16>
    %7 = vector.shape_cast %6 : vector<1x384x128xbf16> to vector<384x128xbf16>
    %cst = arith.constant dense<0.000000e+00> : vector<7x128xf32>
    %8 = tpu.matmul %3, %7, %cst {dimension_numbers = #tpu.dot_dimension_numbers<[1], [0], [0], [1], [0, 0, 1, 1], [], []>} : vector<7x384xbf16>, vector<384x128xbf16>, vector<7x128xf32> -> vector<7x128xf32>
    %c1 = arith.constant 1 : index
    %c0_5 = arith.constant 0 : index
    %c0_6 = arith.constant 0 : index
    %9 = vector.load %arg2[%c1, %c0_5, %c0_6] : memref<16x384x128xbf16, #tpu.memory_space<vmem>>, vector<1x384x128xbf16>
    %10 = vector.shape_cast %9 : vector<1x384x128xbf16> to vector<384x128xbf16>
    %cst_7 = arith.constant dense<0.000000e+00> : vector<7x128xf32>
    %11 = tpu.matmul %5, %10, %cst_7 {dimension_numbers = #tpu.dot_dimension_numbers<[1], [0], [0], [1], [0, 0, 1, 1], [], []>} : vector<7x384xbf16>, vector<384x128xbf16>, vector<7x128xf32> -> vector<7x128xf32>
    %12 = arith.addf %8, %11 : vector<7x128xf32>
    %c2 = arith.constant 2 : index
    %c0_8 = arith.constant 0 : index
    %c0_9 = arith.constant 0 : index
    %13 = vector.load %arg2[%c2, %c0_8, %c0_9] : memref<16x384x128xbf16, #tpu.memory_space<vmem>>, vector<1x384x128xbf16>
    %14 = vector.shape_cast %13 : vector<1x384x128xbf16> to vector<384x128xbf16>
    %cst_10 = arith.constant dense<0.000000e+00> : vector<7x128xf32>
    %15 = tpu.matmul %3, %14, %cst_10 {dimension_numbers = #tpu.dot_dimension_numbers<[1], [0], [0], [1], [0, 0, 1, 1], [], []>} : vector<7x384xbf16>, vector<384x128xbf16>, vector<7x128xf32> -> vector<7x128xf32>
    %c3 = arith.constant 3 : index
    %c0_11 = arith.constant 0 : index
    %c0_12 = arith.constant 0 : index
    %16 = vector.load %arg2[%c3, %c0_11, %c0_12] : memref<16x384x128xbf16, #tpu.memory_space<vmem>>, vector<1x384x128xbf16>
    %17 = vector.shape_cast %16 : vector<1x384x128xbf16> to vector<384x128xbf16>
    %cst_13 = arith.constant dense<0.000000e+00> : vector<7x128xf32>
    %18 = tpu.matmul %5, %17, %cst_13 {dimension_numbers = #tpu.dot_dimension_numbers<[1], [0], [0], [1], [0, 0, 1, 1], [], []>} : vector<7x384xbf16>, vector<384x128xbf16>, vector<7x128xf32> -> vector<7x128xf32>
    %19 = arith.addf %15, %18 : vector<7x128xf32>
    %c4 = arith.constant 4 : index
    %c0_14 = arith.constant 0 : index
    %c0_15 = arith.constant 0 : index
    %20 = vector.load %arg2[%c4, %c0_14, %c0_15] : memref<16x384x128xbf16, #tpu.memory_space<vmem>>, vector<1x384x128xbf16>
    %21 = vector.shape_cast %20 : vector<1x384x128xbf16> to vector<384x128xbf16>
    %cst_16 = arith.constant dense<0.000000e+00> : vector<7x128xf32>
    %22 = tpu.matmul %3, %21, %cst_16 {dimension_numbers = #tpu.dot_dimension_numbers<[1], [0], [0], [1], [0, 0, 1, 1], [], []>} : vector<7x384xbf16>, vector<384x128xbf16>, vector<7x128xf32> -> vector<7x128xf32>
    %c5 = arith.constant 5 : index
    %c0_17 = arith.constant 0 : index
    %c0_18 = arith.constant 0 : index
    %23 = vector.load %arg2[%c5, %c0_17, %c0_18] : memref<16x384x128xbf16, #tpu.memory_space<vmem>>, vector<1x384x128xbf16>
    %24 = vector.shape_cast %23 : vector<1x384x128xbf16> to vector<384x128xbf16>
    %cst_19 = arith.constant dense<0.000000e+00> : vector<7x128xf32>
    %25 = tpu.matmul %5, %24, %cst_19 {dimension_numbers = #tpu.dot_dimension_numbers<[1], [0], [0], [1], [0, 0, 1, 1], [], []>} : vector<7x384xbf16>, vector<384x128xbf16>, vector<7x128xf32> -> vector<7x128xf32>
    %26 = arith.addf %22, %25 : vector<7x128xf32>
    %c6 = arith.constant 6 : index
    %c0_20 = arith.constant 0 : index
    %c0_21 = arith.constant 0 : index
    %27 = vector.load %arg2[%c6, %c0_20, %c0_21] : memref<16x384x128xbf16, #tpu.memory_space<vmem>>, vector<1x384x128xbf16>
    %28 = vector.shape_cast %27 : vector<1x384x128xbf16> to vector<384x128xbf16>
    %cst_22 = arith.constant dense<0.000000e+00> : vector<7x128xf32>
    %29 = tpu.matmul %3, %28, %cst_22 {dimension_numbers = #tpu.dot_dimension_numbers<[1], [0], [0], [1], [0, 0, 1, 1], [], []>} : vector<7x384xbf16>, vector<384x128xbf16>, vector<7x128xf32> -> vector<7x128xf32>
    %c7 = arith.constant 7 : index
    %c0_23 = arith.constant 0 : index
    %c0_24 = arith.constant 0 : index
    %30 = vector.load %arg2[%c7, %c0_23, %c0_24] : memref<16x384x128xbf16, #tpu.memory_space<vmem>>, vector<1x384x128xbf16>
    %31 = vector.shape_cast %30 : vector<1x384x128xbf16> to vector<384x128xbf16>
    %cst_25 = arith.constant dense<0.000000e+00> : vector<7x128xf32>
    %32 = tpu.matmul %5, %31, %cst_25 {dimension_numbers = #tpu.dot_dimension_numbers<[1], [0], [0], [1], [0, 0, 1, 1], [], []>} : vector<7x384xbf16>, vector<384x128xbf16>, vector<7x128xf32> -> vector<7x128xf32>
    %33 = arith.addf %29, %32 : vector<7x128xf32>
    %c8 = arith.constant 8 : index
    %c0_26 = arith.constant 0 : index
    %c0_27 = arith.constant 0 : index
    %34 = vector.load %arg2[%c8, %c0_26, %c0_27] : memref<16x384x128xbf16, #tpu.memory_space<vmem>>, vector<1x384x128xbf16>
    %35 = vector.shape_cast %34 : vector<1x384x128xbf16> to vector<384x128xbf16>
    %cst_28 = arith.constant dense<0.000000e+00> : vector<7x128xf32>
    %36 = tpu.matmul %3, %35, %cst_28 {dimension_numbers = #tpu.dot_dimension_numbers<[1], [0], [0], [1], [0, 0, 1, 1], [], []>} : vector<7x384xbf16>, vector<384x128xbf16>, vector<7x128xf32> -> vector<7x128xf32>
    %c9 = arith.constant 9 : index
    %c0_29 = arith.constant 0 : index
    %c0_30 = arith.constant 0 : index
    %37 = vector.load %arg2[%c9, %c0_29, %c0_30] : memref<16x384x128xbf16, #tpu.memory_space<vmem>>, vector<1x384x128xbf16>
    %38 = vector.shape_cast %37 : vector<1x384x128xbf16> to vector<384x128xbf16>
    %cst_31 = arith.constant dense<0.000000e+00> : vector<7x128xf32>
    %39 = tpu.matmul %5, %38, %cst_31 {dimension_numbers = #tpu.dot_dimension_numbers<[1], [0], [0], [1], [0, 0, 1, 1], [], []>} : vector<7x384xbf16>, vector<384x128xbf16>, vector<7x128xf32> -> vector<7x128xf32>
    %40 = arith.addf %36, %39 : vector<7x128xf32>
    %c10 = arith.constant 10 : index
    %c0_32 = arith.constant 0 : index
    %c0_33 = arith.constant 0 : index
    %41 = vector.load %arg2[%c10, %c0_32, %c0_33] : memref<16x384x128xbf16, #tpu.memory_space<vmem>>, vector<1x384x128xbf16>
    %42 = vector.shape_cast %41 : vector<1x384x128xbf16> to vector<384x128xbf16>
    %cst_34 = arith.constant dense<0.000000e+00> : vector<7x128xf32>
    %43 = tpu.matmul %3, %42, %cst_34 {dimension_numbers = #tpu.dot_dimension_numbers<[1], [0], [0], [1], [0, 0, 1, 1], [], []>} : vector<7x384xbf16>, vector<384x128xbf16>, vector<7x128xf32> -> vector<7x128xf32>
    %c11 = arith.constant 11 : index
    %c0_35 = arith.constant 0 : index
    %c0_36 = arith.constant 0 : index
    %44 = vector.load %arg2[%c11, %c0_35, %c0_36] : memref<16x384x128xbf16, #tpu.memory_space<vmem>>, vector<1x384x128xbf16>
    %45 = vector.shape_cast %44 : vector<1x384x128xbf16> to vector<384x128xbf16>
    %cst_37 = arith.constant dense<0.000000e+00> : vector<7x128xf32>
    %46 = tpu.matmul %5, %45, %cst_37 {dimension_numbers = #tpu.dot_dimension_numbers<[1], [0], [0], [1], [0, 0, 1, 1], [], []>} : vector<7x384xbf16>, vector<384x128xbf16>, vector<7x128xf32> -> vector<7x128xf32>
    %47 = arith.addf %43, %46 : vector<7x128xf32>
    %c12 = arith.constant 12 : index
    %c0_38 = arith.constant 0 : index
    %c0_39 = arith.constant 0 : index
    %48 = vector.load %arg2[%c12, %c0_38, %c0_39] : memref<16x384x128xbf16, #tpu.memory_space<vmem>>, vector<1x384x128xbf16>
    %49 = vector.shape_cast %48 : vector<1x384x128xbf16> to vector<384x128xbf16>
    %cst_40 = arith.constant dense<0.000000e+00> : vector<7x128xf32>
    %50 = tpu.matmul %3, %49, %cst_40 {dimension_numbers = #tpu.dot_dimension_numbers<[1], [0], [0], [1], [0, 0, 1, 1], [], []>} : vector<7x384xbf16>, vector<384x128xbf16>, vector<7x128xf32> -> vector<7x128xf32>
    %c13 = arith.constant 13 : index
    %c0_41 = arith.constant 0 : index
    %c0_42 = arith.constant 0 : index
    %51 = vector.load %arg2[%c13, %c0_41, %c0_42] : memref<16x384x128xbf16, #tpu.memory_space<vmem>>, vector<1x384x128xbf16>
    %52 = vector.shape_cast %51 : vector<1x384x128xbf16> to vector<384x128xbf16>
    %cst_43 = arith.constant dense<0.000000e+00> : vector<7x128xf32>
    %53 = tpu.matmul %5, %52, %cst_43 {dimension_numbers = #tpu.dot_dimension_numbers<[1], [0], [0], [1], [0, 0, 1, 1], [], []>} : vector<7x384xbf16>, vector<384x128xbf16>, vector<7x128xf32> -> vector<7x128xf32>
    %54 = arith.addf %50, %53 : vector<7x128xf32>
    %c14 = arith.constant 14 : index
    %c0_44 = arith.constant 0 : index
    %c0_45 = arith.constant 0 : index
    %55 = vector.load %arg2[%c14, %c0_44, %c0_45] : memref<16x384x128xbf16, #tpu.memory_space<vmem>>, vector<1x384x128xbf16>
    %56 = vector.shape_cast %55 : vector<1x384x128xbf16> to vector<384x128xbf16>
    %cst_46 = arith.constant dense<0.000000e+00> : vector<7x128xf32>
    %57 = tpu.matmul %3, %56, %cst_46 {dimension_numbers = #tpu.dot_dimension_numbers<[1], [0], [0], [1], [0, 0, 1, 1], [], []>} : vector<7x384xbf16>, vector<384x128xbf16>, vector<7x128xf32> -> vector<7x128xf32>
    %c15 = arith.constant 15 : index
    %c0_47 = arith.constant 0 : index
    %c0_48 = arith.constant 0 : index
    %58 = vector.load %arg2[%c15, %c0_47, %c0_48] : memref<16x384x128xbf16, #tpu.memory_space<vmem>>, vector<1x384x128xbf16>
    %59 = vector.shape_cast %58 : vector<1x384x128xbf16> to vector<384x128xbf16>
    %cst_49 = arith.constant dense<0.000000e+00> : vector<7x128xf32>
    %60 = tpu.matmul %5, %59, %cst_49 {dimension_numbers = #tpu.dot_dimension_numbers<[1], [0], [0], [1], [0, 0, 1, 1], [], []>} : vector<7x384xbf16>, vector<384x128xbf16>, vector<7x128xf32> -> vector<7x128xf32>
    %61 = arith.addf %57, %60 : vector<7x128xf32>
    %62 = arith.maximumf %12, %19 : vector<7x128xf32>
    %63 = arith.maximumf %26, %33 : vector<7x128xf32>
    %64 = arith.maximumf %62, %63 : vector<7x128xf32>
    %c0_50 = arith.constant 0 : index
    %c0_51 = arith.constant 0 : index
    %65 = vector.load %arg3[%c0_50, %c0_51] : memref<1x128xf32, #tpu.memory_space<vmem>>, vector<1x128xf32>
    %66 = vector.broadcast %65 : vector<1x128xf32> to vector<7x128xf32>
    %67 = arith.addf %64, %66 : vector<7x128xf32>
    %68 = arith.maximumf %40, %47 : vector<7x128xf32>
    %69 = arith.maximumf %54, %61 : vector<7x128xf32>
    %70 = arith.maximumf %68, %69 : vector<7x128xf32>
    %c0_52 = arith.constant 0 : index
    %c0_53 = arith.constant 0 : index
    %71 = vector.load %arg3[%c0_52, %c0_53] : memref<1x128xf32, #tpu.memory_space<vmem>>, vector<1x128xf32>
    %72 = vector.broadcast %71 : vector<1x128xf32> to vector<7x128xf32>
    %73 = arith.addf %70, %72 : vector<7x128xf32>
    %c0_54 = arith.constant 0 : index
    %c0_55 = arith.constant 0 : index
    %74 = vector.load %arg13[%c0_54, %c0_55] : memref<8x256xf32, #tpu.memory_space<vmem>>, vector<7x128xf32>
    tpu.vector_store %arg13[%c0_54, %c0_55], %67 {strides = array<i32>} : memref<8x256xf32, #tpu.memory_space<vmem>>, vector<7x128xf32>,
    %c0_56 = arith.constant 0 : index
    %c128 = arith.constant 128 : index
    %75 = vector.load %arg13[%c0_56, %c128] : memref<8x256xf32, #tpu.memory_space<vmem>>, vector<7x128xf32>
    tpu.vector_store %arg13[%c0_56, %c128], %73 {strides = array<i32>} : memref<8x256xf32, #tpu.memory_space<vmem>>, vector<7x128xf32>,
    %c0_57 = arith.constant 0 : index
    %c0_58 = arith.constant 0 : index
    %76 = vector.load %arg13[%c0_57, %c0_58] : memref<8x256xf32, #tpu.memory_space<vmem>>, vector<5x256xf32>
    %77 = arith.truncf %76 : vector<5x256xf32> to vector<5x256xbf16>
    %c0_59 = arith.constant 0 : index
    %c0_60 = arith.constant 0 : index
    %c0_61 = arith.constant 0 : index
    %78 = vector.load %arg4[%c0_59, %c0_60, %c0_61] : memref<12x256x128xbf16, #tpu.memory_space<vmem>>, vector<1x256x128xbf16>
    %79 = vector.shape_cast %78 : vector<1x256x128xbf16> to vector<256x128xbf16>
    %cst_62 = arith.constant dense<0.000000e+00> : vector<5x128xf32>
    %80 = tpu.matmul %77, %79, %cst_62 {dimension_numbers = #tpu.dot_dimension_numbers<[1], [0], [0], [1], [0, 0, 1, 1], [], []>} : vector<5x256xbf16>, vector<256x128xbf16>, vector<5x128xf32> -> vector<5x128xf32>
    %c1_63 = arith.constant 1 : index
    %c0_64 = arith.constant 0 : index
    %81 = vector.load %arg13[%c1_63, %c0_64] : memref<8x256xf32, #tpu.memory_space<vmem>>, vector<5x256xf32>
    %82 = arith.truncf %81 : vector<5x256xf32> to vector<5x256xbf16>
    %c1_65 = arith.constant 1 : index
    %c0_66 = arith.constant 0 : index
    %c0_67 = arith.constant 0 : index
    %83 = vector.load %arg4[%c1_65, %c0_66, %c0_67] : memref<12x256x128xbf16, #tpu.memory_space<vmem>>, vector<1x256x128xbf16>
    %84 = vector.shape_cast %83 : vector<1x256x128xbf16> to vector<256x128xbf16>
    %cst_68 = arith.constant dense<0.000000e+00> : vector<5x128xf32>
    %85 = tpu.matmul %82, %84, %cst_68 {dimension_numbers = #tpu.dot_dimension_numbers<[1], [0], [0], [1], [0, 0, 1, 1], [], []>} : vector<5x256xbf16>, vector<256x128xbf16>, vector<5x128xf32> -> vector<5x128xf32>
    %86 = arith.addf %80, %85 : vector<5x128xf32>
    %c2_69 = arith.constant 2 : index
    %c0_70 = arith.constant 0 : index
    %87 = vector.load %arg13[%c2_69, %c0_70] : memref<8x256xf32, #tpu.memory_space<vmem>>, vector<5x256xf32>
    %88 = arith.truncf %87 : vector<5x256xf32> to vector<5x256xbf16>
    %c2_71 = arith.constant 2 : index
    %c0_72 = arith.constant 0 : index
    %c0_73 = arith.constant 0 : index
    %89 = vector.load %arg4[%c2_71, %c0_72, %c0_73] : memref<12x256x128xbf16, #tpu.memory_space<vmem>>, vector<1x256x128xbf16>
    %90 = vector.shape_cast %89 : vector<1x256x128xbf16> to vector<256x128xbf16>
    %cst_74 = arith.constant dense<0.000000e+00> : vector<5x128xf32>
    %91 = tpu.matmul %88, %90, %cst_74 {dimension_numbers = #tpu.dot_dimension_numbers<[1], [0], [0], [1], [0, 0, 1, 1], [], []>} : vector<5x256xbf16>, vector<256x128xbf16>, vector<5x128xf32> -> vector<5x128xf32>
    %92 = arith.addf %86, %91 : vector<5x128xf32>
    %c0_75 = arith.constant 0 : index
    %c0_76 = arith.constant 0 : index
    %93 = vector.load %arg13[%c0_75, %c0_76] : memref<8x256xf32, #tpu.memory_space<vmem>>, vector<5x256xf32>
    %94 = arith.truncf %93 : vector<5x256xf32> to vector<5x256xbf16>
    %c3_77 = arith.constant 3 : index
    %c0_78 = arith.constant 0 : index
    %c0_79 = arith.constant 0 : index
    %95 = vector.load %arg4[%c3_77, %c0_78, %c0_79] : memref<12x256x128xbf16, #tpu.memory_space<vmem>>, vector<1x256x128xbf16>
    %96 = vector.shape_cast %95 : vector<1x256x128xbf16> to vector<256x128xbf16>
    %cst_80 = arith.constant dense<0.000000e+00> : vector<5x128xf32>
    %97 = tpu.matmul %94, %96, %cst_80 {dimension_numbers = #tpu.dot_dimension_numbers<[1], [0], [0], [1], [0, 0, 1, 1], [], []>} : vector<5x256xbf16>, vector<256x128xbf16>, vector<5x128xf32> -> vector<5x128xf32>
    %c1_81 = arith.constant 1 : index
    %c0_82 = arith.constant 0 : index
    %98 = vector.load %arg13[%c1_81, %c0_82] : memref<8x256xf32, #tpu.memory_space<vmem>>, vector<5x256xf32>
    %99 = arith.truncf %98 : vector<5x256xf32> to vector<5x256xbf16>
    %c4_83 = arith.constant 4 : index
    %c0_84 = arith.constant 0 : index
    %c0_85 = arith.constant 0 : index
    %100 = vector.load %arg4[%c4_83, %c0_84, %c0_85] : memref<12x256x128xbf16, #tpu.memory_space<vmem>>, vector<1x256x128xbf16>
    %101 = vector.shape_cast %100 : vector<1x256x128xbf16> to vector<256x128xbf16>
    %cst_86 = arith.constant dense<0.000000e+00> : vector<5x128xf32>
    %102 = tpu.matmul %99, %101, %cst_86 {dimension_numbers = #tpu.dot_dimension_numbers<[1], [0], [0], [1], [0, 0, 1, 1], [], []>} : vector<5x256xbf16>, vector<256x128xbf16>, vector<5x128xf32> -> vector<5x128xf32>
    %103 = arith.addf %97, %102 : vector<5x128xf32>
    %c2_87 = arith.constant 2 : index
    %c0_88 = arith.constant 0 : index
    %104 = vector.load %arg13[%c2_87, %c0_88] : memref<8x256xf32, #tpu.memory_space<vmem>>, vector<5x256xf32>
    %105 = arith.truncf %104 : vector<5x256xf32> to vector<5x256xbf16>
    %c5_89 = arith.constant 5 : index
    %c0_90 = arith.constant 0 : index
    %c0_91 = arith.constant 0 : index
    %106 = vector.load %arg4[%c5_89, %c0_90, %c0_91] : memref<12x256x128xbf16, #tpu.memory_space<vmem>>, vector<1x256x128xbf16>
    %107 = vector.shape_cast %106 : vector<1x256x128xbf16> to vector<256x128xbf16>
    %cst_92 = arith.constant dense<0.000000e+00> : vector<5x128xf32>
    %108 = tpu.matmul %105, %107, %cst_92 {dimension_numbers = #tpu.dot_dimension_numbers<[1], [0], [0], [1], [0, 0, 1, 1], [], []>} : vector<5x256xbf16>, vector<256x128xbf16>, vector<5x128xf32> -> vector<5x128xf32>
    %109 = arith.addf %103, %108 : vector<5x128xf32>
    %c0_93 = arith.constant 0 : index
    %c0_94 = arith.constant 0 : index
    %110 = vector.load %arg13[%c0_93, %c0_94] : memref<8x256xf32, #tpu.memory_space<vmem>>, vector<5x256xf32>
    %111 = arith.truncf %110 : vector<5x256xf32> to vector<5x256xbf16>
    %c6_95 = arith.constant 6 : index
    %c0_96 = arith.constant 0 : index
    %c0_97 = arith.constant 0 : index
    %112 = vector.load %arg4[%c6_95, %c0_96, %c0_97] : memref<12x256x128xbf16, #tpu.memory_space<vmem>>, vector<1x256x128xbf16>
    %113 = vector.shape_cast %112 : vector<1x256x128xbf16> to vector<256x128xbf16>
    %cst_98 = arith.constant dense<0.000000e+00> : vector<5x128xf32>
    %114 = tpu.matmul %111, %113, %cst_98 {dimension_numbers = #tpu.dot_dimension_numbers<[1], [0], [0], [1], [0, 0, 1, 1], [], []>} : vector<5x256xbf16>, vector<256x128xbf16>, vector<5x128xf32> -> vector<5x128xf32>
    %c1_99 = arith.constant 1 : index
    %c0_100 = arith.constant 0 : index
    %115 = vector.load %arg13[%c1_99, %c0_100] : memref<8x256xf32, #tpu.memory_space<vmem>>, vector<5x256xf32>
    %116 = arith.truncf %115 : vector<5x256xf32> to vector<5x256xbf16>
    %c7_101 = arith.constant 7 : index
    %c0_102 = arith.constant 0 : index
    %c0_103 = arith.constant 0 : index
    %117 = vector.load %arg4[%c7_101, %c0_102, %c0_103] : memref<12x256x128xbf16, #tpu.memory_space<vmem>>, vector<1x256x128xbf16>
    %118 = vector.shape_cast %117 : vector<1x256x128xbf16> to vector<256x128xbf16>
    %cst_104 = arith.constant dense<0.000000e+00> : vector<5x128xf32>
    %119 = tpu.matmul %116, %118, %cst_104 {dimension_numbers = #tpu.dot_dimension_numbers<[1], [0], [0], [1], [0, 0, 1, 1], [], []>} : vector<5x256xbf16>, vector<256x128xbf16>, vector<5x128xf32> -> vector<5x128xf32>
    %120 = arith.addf %114, %119 : vector<5x128xf32>
    %c2_105 = arith.constant 2 : index
    %c0_106 = arith.constant 0 : index
    %121 = vector.load %arg13[%c2_105, %c0_106] : memref<8x256xf32, #tpu.memory_space<vmem>>, vector<5x256xf32>
    %122 = arith.truncf %121 : vector<5x256xf32> to vector<5x256xbf16>
    %c8_107 = arith.constant 8 : index
    %c0_108 = arith.constant 0 : index
    %c0_109 = arith.constant 0 : index
    %123 = vector.load %arg4[%c8_107, %c0_108, %c0_109] : memref<12x256x128xbf16, #tpu.memory_space<vmem>>, vector<1x256x128xbf16>
    %124 = vector.shape_cast %123 : vector<1x256x128xbf16> to vector<256x128xbf16>
    %cst_110 = arith.constant dense<0.000000e+00> : vector<5x128xf32>
    %125 = tpu.matmul %122, %124, %cst_110 {dimension_numbers = #tpu.dot_dimension_numbers<[1], [0], [0], [1], [0, 0, 1, 1], [], []>} : vector<5x256xbf16>, vector<256x128xbf16>, vector<5x128xf32> -> vector<5x128xf32>
    %126 = arith.addf %120, %125 : vector<5x128xf32>
    %c0_111 = arith.constant 0 : index
    %c0_112 = arith.constant 0 : index
    %127 = vector.load %arg13[%c0_111, %c0_112] : memref<8x256xf32, #tpu.memory_space<vmem>>, vector<5x256xf32>
    %128 = arith.truncf %127 : vector<5x256xf32> to vector<5x256xbf16>
    %c9_113 = arith.constant 9 : index
    %c0_114 = arith.constant 0 : index
    %c0_115 = arith.constant 0 : index
    %129 = vector.load %arg4[%c9_113, %c0_114, %c0_115] : memref<12x256x128xbf16, #tpu.memory_space<vmem>>, vector<1x256x128xbf16>
    %130 = vector.shape_cast %129 : vector<1x256x128xbf16> to vector<256x128xbf16>
    %cst_116 = arith.constant dense<0.000000e+00> : vector<5x128xf32>
    %131 = tpu.matmul %128, %130, %cst_116 {dimension_numbers = #tpu.dot_dimension_numbers<[1], [0], [0], [1], [0, 0, 1, 1], [], []>} : vector<5x256xbf16>, vector<256x128xbf16>, vector<5x128xf32> -> vector<5x128xf32>
    %c1_117 = arith.constant 1 : index
    %c0_118 = arith.constant 0 : index
    %132 = vector.load %arg13[%c1_117, %c0_118] : memref<8x256xf32, #tpu.memory_space<vmem>>, vector<5x256xf32>
    %133 = arith.truncf %132 : vector<5x256xf32> to vector<5x256xbf16>
    %c10_119 = arith.constant 10 : index
    %c0_120 = arith.constant 0 : index
    %c0_121 = arith.constant 0 : index
    %134 = vector.load %arg4[%c10_119, %c0_120, %c0_121] : memref<12x256x128xbf16, #tpu.memory_space<vmem>>, vector<1x256x128xbf16>
    %135 = vector.shape_cast %134 : vector<1x256x128xbf16> to vector<256x128xbf16>
    %cst_122 = arith.constant dense<0.000000e+00> : vector<5x128xf32>
    %136 = tpu.matmul %133, %135, %cst_122 {dimension_numbers = #tpu.dot_dimension_numbers<[1], [0], [0], [1], [0, 0, 1, 1], [], []>} : vector<5x256xbf16>, vector<256x128xbf16>, vector<5x128xf32> -> vector<5x128xf32>
    %137 = arith.addf %131, %136 : vector<5x128xf32>
    %c2_123 = arith.constant 2 : index
    %c0_124 = arith.constant 0 : index
    %138 = vector.load %arg13[%c2_123, %c0_124] : memref<8x256xf32, #tpu.memory_space<vmem>>, vector<5x256xf32>
    %139 = arith.truncf %138 : vector<5x256xf32> to vector<5x256xbf16>
    %c11_125 = arith.constant 11 : index
    %c0_126 = arith.constant 0 : index
    %c0_127 = arith.constant 0 : index
    %140 = vector.load %arg4[%c11_125, %c0_126, %c0_127] : memref<12x256x128xbf16, #tpu.memory_space<vmem>>, vector<1x256x128xbf16>
    %141 = vector.shape_cast %140 : vector<1x256x128xbf16> to vector<256x128xbf16>
    %cst_128 = arith.constant dense<0.000000e+00> : vector<5x128xf32>
    %142 = tpu.matmul %139, %141, %cst_128 {dimension_numbers = #tpu.dot_dimension_numbers<[1], [0], [0], [1], [0, 0, 1, 1], [], []>} : vector<5x256xbf16>, vector<256x128xbf16>, vector<5x128xf32> -> vector<5x128xf32>
    %143 = arith.addf %137, %142 : vector<5x128xf32>
    %144 = arith.maximumf %92, %109 : vector<5x128xf32>
    %145 = arith.maximumf %126, %143 : vector<5x128xf32>
    %146 = arith.maximumf %144, %145 : vector<5x128xf32>
    %c0_129 = arith.constant 0 : index
    %c0_130 = arith.constant 0 : index
    %147 = vector.load %arg5[%c0_129, %c0_130] : memref<1x128xf32, #tpu.memory_space<vmem>>, vector<1x128xf32>
    %148 = vector.broadcast %147 : vector<1x128xf32> to vector<5x128xf32>
    %149 = arith.addf %146, %148 : vector<5x128xf32>
    %c0_131 = arith.constant 0 : index
    %c0_132 = arith.constant 0 : index
    %150 = vector.load %arg7[%c0_131, %c0_132] : memref<1x128xf32, #tpu.memory_space<vmem>>, vector<1x128xf32>
    %151 = vector.extract_strided_slice %149 {offsets = [0, 0], sizes = [1, 128], strides = [1, 1]} : vector<5x128xf32> to vector<1x128xf32>
    %152 = arith.truncf %151 : vector<1x128xf32> to vector<1x128xbf16>
    %c0_133 = arith.constant 0 : index
    %c0_134 = arith.constant 0 : index
    %c0_135 = arith.constant 0 : index
    %153 = vector.load %arg6[%c0_133, %c0_134, %c0_135] : memref<5x128x128xbf16, #tpu.memory_space<vmem>>, vector<1x128x128xbf16>
    %154 = vector.shape_cast %153 : vector<1x128x128xbf16> to vector<128x128xbf16>
    %cst_136 = arith.constant dense<0.000000e+00> : vector<1x128xf32>
    %155 = tpu.matmul %152, %154, %cst_136 {dimension_numbers = #tpu.dot_dimension_numbers<[1], [0], [0], [1], [0, 0, 1, 1], [], []>} : vector<1x128xbf16>, vector<128x128xbf16>, vector<1x128xf32> -> vector<1x128xf32>
    %156 = arith.addf %150, %155 : vector<1x128xf32>
    %157 = vector.extract_strided_slice %149 {offsets = [1, 0], sizes = [1, 128], strides = [1, 1]} : vector<5x128xf32> to vector<1x128xf32>
    %158 = arith.truncf %157 : vector<1x128xf32> to vector<1x128xbf16>
    %c1_137 = arith.constant 1 : index
    %c0_138 = arith.constant 0 : index
    %c0_139 = arith.constant 0 : index
    %159 = vector.load %arg6[%c1_137, %c0_138, %c0_139] : memref<5x128x128xbf16, #tpu.memory_space<vmem>>, vector<1x128x128xbf16>
    %160 = vector.shape_cast %159 : vector<1x128x128xbf16> to vector<128x128xbf16>
    %cst_140 = arith.constant dense<0.000000e+00> : vector<1x128xf32>
    %161 = tpu.matmul %158, %160, %cst_140 {dimension_numbers = #tpu.dot_dimension_numbers<[1], [0], [0], [1], [0, 0, 1, 1], [], []>} : vector<1x128xbf16>, vector<128x128xbf16>, vector<1x128xf32> -> vector<1x128xf32>
    %162 = arith.addf %156, %161 : vector<1x128xf32>
    %163 = vector.extract_strided_slice %149 {offsets = [2, 0], sizes = [1, 128], strides = [1, 1]} : vector<5x128xf32> to vector<1x128xf32>
    %164 = arith.truncf %163 : vector<1x128xf32> to vector<1x128xbf16>
    %c2_141 = arith.constant 2 : index
    %c0_142 = arith.constant 0 : index
    %c0_143 = arith.constant 0 : index
    %165 = vector.load %arg6[%c2_141, %c0_142, %c0_143] : memref<5x128x128xbf16, #tpu.memory_space<vmem>>, vector<1x128x128xbf16>
    %166 = vector.shape_cast %165 : vector<1x128x128xbf16> to vector<128x128xbf16>
    %cst_144 = arith.constant dense<0.000000e+00> : vector<1x128xf32>
    %167 = tpu.matmul %164, %166, %cst_144 {dimension_numbers = #tpu.dot_dimension_numbers<[1], [0], [0], [1], [0, 0, 1, 1], [], []>} : vector<1x128xbf16>, vector<128x128xbf16>, vector<1x128xf32> -> vector<1x128xf32>
    %168 = arith.addf %162, %167 : vector<1x128xf32>
    %169 = vector.extract_strided_slice %149 {offsets = [3, 0], sizes = [1, 128], strides = [1, 1]} : vector<5x128xf32> to vector<1x128xf32>
    %170 = arith.truncf %169 : vector<1x128xf32> to vector<1x128xbf16>
    %c3_145 = arith.constant 3 : index
    %c0_146 = arith.constant 0 : index
    %c0_147 = arith.constant 0 : index
    %171 = vector.load %arg6[%c3_145, %c0_146, %c0_147] : memref<5x128x128xbf16, #tpu.memory_space<vmem>>, vector<1x128x128xbf16>
    %172 = vector.shape_cast %171 : vector<1x128x128xbf16> to vector<128x128xbf16>
    %cst_148 = arith.constant dense<0.000000e+00> : vector<1x128xf32>
    %173 = tpu.matmul %170, %172, %cst_148 {dimension_numbers = #tpu.dot_dimension_numbers<[1], [0], [0], [1], [0, 0, 1, 1], [], []>} : vector<1x128xbf16>, vector<128x128xbf16>, vector<1x128xf32> -> vector<1x128xf32>
    %174 = arith.addf %168, %173 : vector<1x128xf32>
    %175 = vector.extract_strided_slice %149 {offsets = [4, 0], sizes = [1, 128], strides = [1, 1]} : vector<5x128xf32> to vector<1x128xf32>
    %176 = arith.truncf %175 : vector<1x128xf32> to vector<1x128xbf16>
    %c4_149 = arith.constant 4 : index
    %c0_150 = arith.constant 0 : index
    %c0_151 = arith.constant 0 : index
    %177 = vector.load %arg6[%c4_149, %c0_150, %c0_151] : memref<5x128x128xbf16, #tpu.memory_space<vmem>>, vector<1x128x128xbf16>
    %178 = vector.shape_cast %177 : vector<1x128x128xbf16> to vector<128x128xbf16>
    %cst_152 = arith.constant dense<0.000000e+00> : vector<1x128xf32>
    %179 = tpu.matmul %176, %178, %cst_152 {dimension_numbers = #tpu.dot_dimension_numbers<[1], [0], [0], [1], [0, 0, 1, 1], [], []>} : vector<1x128xbf16>, vector<128x128xbf16>, vector<1x128xf32> -> vector<1x128xf32>
    %180 = arith.addf %174, %179 : vector<1x128xf32>
    %181 = arith.truncf %180 : vector<1x128xf32> to vector<1x128xbf16>
    %c0_153 = arith.constant 0 : index
    %c0_154 = arith.constant 0 : index
    %182 = vector.load %arg8[%c0_153, %c0_154] : memref<128x128xbf16, #tpu.memory_space<vmem>>, vector<128x128xbf16>
    %cst_155 = arith.constant dense<0.000000e+00> : vector<1x128xf32>
    %183 = tpu.matmul %181, %182, %cst_155 {dimension_numbers = #tpu.dot_dimension_numbers<[1], [0], [0], [1], [0, 0, 1, 1], [], []>} : vector<1x128xbf16>, vector<128x128xbf16>, vector<1x128xf32> -> vector<1x128xf32>
    %c0_156 = arith.constant 0 : index
    %c0_157 = arith.constant 0 : index
    %184 = vector.load %arg9[%c0_156, %c0_157] : memref<1x128xf32, #tpu.memory_space<vmem>>, vector<1x128xf32>
    %185 = arith.addf %183, %184 : vector<1x128xf32>
    %186 = arith.truncf %185 : vector<1x128xf32> to vector<1x128xbf16>
    %c0_158 = arith.constant 0 : index
    %c0_159 = arith.constant 0 : index
    %187 = vector.load %arg10[%c0_158, %c0_159] : memref<128x128xbf16, #tpu.memory_space<vmem>>, vector<128x128xbf16>
    %cst_160 = arith.constant dense<0.000000e+00> : vector<1x128xf32>
    %188 = tpu.matmul %186, %187, %cst_160 {dimension_numbers = #tpu.dot_dimension_numbers<[1], [0], [0], [1], [0, 0, 1, 1], [], []>} : vector<1x128xbf16>, vector<128x128xbf16>, vector<1x128xf32> -> vector<1x128xf32>
    %c0_161 = arith.constant 0 : index
    %c0_162 = arith.constant 0 : index
    %189 = vector.load %arg11[%c0_161, %c0_162] : memref<1x128xf32, #tpu.memory_space<vmem>>, vector<1x128xf32>
    %190 = arith.addf %188, %189 : vector<1x128xf32>
    %c0_163 = arith.constant 0 : index
    %c0_164 = arith.constant 0 : index
    %c0_165 = arith.constant 0 : index
    %191 = vector.load %arg12[%c0_163, %c0_164, %c0_165] : memref<1x1x128xf32, #tpu.memory_space<vmem>>, vector<1x1x128xf32>
    %192 = vector.shape_cast %191 : vector<1x1x128xf32> to vector<1x128xf32>
    %193 = vector.shape_cast %190 : vector<1x128xf32> to vector<1x1x128xf32>
    tpu.vector_store %arg12[%c0_163, %c0_164, %c0_165], %193 {strides = array<i32>} : memref<1x1x128xf32, #tpu.memory_space<vmem>>, vector<1x1x128xf32>,
    return
  }
  func.func @transform_0(%arg0: i32) -> (i32, i32, i32) {
    %c0_i32 = arith.constant 0 : i32
    %c0_i32_0 = arith.constant 0 : i32
    %c0_i32_1 = arith.constant 0 : i32
    return %arg0, %c0_i32, %c0_i32_0 : i32, i32, i32
  }
  func.func @transform_1(%arg0: i32) -> (i32, i32, i32) {
    %c0_i32 = arith.constant 0 : i32
    %c0_i32_0 = arith.constant 0 : i32
    %c0_i32_1 = arith.constant 0 : i32
    %c0_i32_2 = arith.constant 0 : i32
    return %c0_i32, %c0_i32_0, %c0_i32_1 : i32, i32, i32
  }
  func.func @transform_2(%arg0: i32) -> (i32, i32) {
    %c0_i32 = arith.constant 0 : i32
    %c0_i32_0 = arith.constant 0 : i32
    %c0_i32_1 = arith.constant 0 : i32
    return %c0_i32, %c0_i32_0 : i32, i32
  }
  func.func @transform_3(%arg0: i32) -> (i32, i32, i32) {
    %c0_i32 = arith.constant 0 : i32
    %c0_i32_0 = arith.constant 0 : i32
    %c0_i32_1 = arith.constant 0 : i32
    %c0_i32_2 = arith.constant 0 : i32
    return %c0_i32, %c0_i32_0, %c0_i32_1 : i32, i32, i32
  }
  func.func @transform_4(%arg0: i32) -> (i32, i32) {
    %c0_i32 = arith.constant 0 : i32
    %c0_i32_0 = arith.constant 0 : i32
    %c0_i32_1 = arith.constant 0 : i32
    return %c0_i32, %c0_i32_0 : i32, i32
  }
  func.func @transform_5(%arg0: i32) -> (i32, i32, i32) {
    %c0_i32 = arith.constant 0 : i32
    %c0_i32_0 = arith.constant 0 : i32
    %c0_i32_1 = arith.constant 0 : i32
    %c0_i32_2 = arith.constant 0 : i32
    return %c0_i32, %c0_i32_0, %c0_i32_1 : i32, i32, i32
  }
  func.func @transform_6(%arg0: i32) -> (i32, i32) {
    %c0_i32 = arith.constant 0 : i32
    %c0_i32_0 = arith.constant 0 : i32
    %c0_i32_1 = arith.constant 0 : i32
    return %c0_i32, %c0_i32_0 : i32, i32
  }
  func.func @transform_7(%arg0: i32) -> (i32, i32) {
    %c0_i32 = arith.constant 0 : i32
    %c0_i32_0 = arith.constant 0 : i32
    %c0_i32_1 = arith.constant 0 : i32
    return %c0_i32, %c0_i32_0 : i32, i32
  }
  func.func @transform_8(%arg0: i32) -> (i32, i32) {
    %c0_i32 = arith.constant 0 : i32
    %c0_i32_0 = arith.constant 0 : i32
    %c0_i32_1 = arith.constant 0 : i32
    return %c0_i32, %c0_i32_0 : i32, i32
  }
  func.func @transform_9(%arg0: i32) -> (i32, i32) {
    %c0_i32 = arith.constant 0 : i32
    %c0_i32_0 = arith.constant 0 : i32
    %c0_i32_1 = arith.constant 0 : i32
    return %c0_i32, %c0_i32_0 : i32, i32
  }
  func.func @transform_10(%arg0: i32) -> (i32, i32) {
    %c0_i32 = arith.constant 0 : i32
    %c0_i32_0 = arith.constant 0 : i32
    %c0_i32_1 = arith.constant 0 : i32
    return %c0_i32, %c0_i32_0 : i32, i32
  }
  func.func @transform_11(%arg0: i32) -> (i32, i32, i32) {
    %c0_i32 = arith.constant 0 : i32
    %c0_i32_0 = arith.constant 0 : i32
    %c0_i32_1 = arith.constant 0 : i32
    return %arg0, %c0_i32, %c0_i32_0 : i32, i32, i32
  }
}

</mosaic_0001>

<bundles_post_ra>
// kernel: lenet_forward.1
= control target key start
LH: loop header
LB: loop body
LE: loop exit
PB: predicated region body
PF: predicated region fallthrough
CT: control target
= control target key end

     0   :  { %16 = vsyncpa [#allocation4], 0  ;;  %s13209_s0 = inlined_call_operand.vmem [shape: f32[2,8,384], index: 0, kind: input, shape index: {}]   ;;  %s13210_s1 = inlined_call_operand.vmem [shape: bf16[16,384,128], index: 1, kind: input, shape index: {}]   ;;  %s13211_s2 = inlined_call_operand.vmem [shape: f32[1,128], index: 2, kind: input, shape index: {}]   ;;  %s13212_s3 = inlined_call_operand.hbm [shape: bf16[12,256,128], index: 3, kind: input, shape index: {}]   ;;  %s13213_s4 = inlined_call_operand.vmem [shape: f32[1,128], index: 4, kind: input, shape index: {}]   ;;  %s13214_s5 = inlined_call_operand.vmem [shape: bf16[5,128,128], index: 5, kind: input, shape index: {}]   ;;  %s13215_s6 = inlined_call_operand.vmem [shape: f32[1,128], index: 6, kind: input, shape index: {}]   ;;  %s13216_s7 = inlined_call_operand.vmem [shape: bf16[128,128], index: 7, kind: input, shape index: {}]   ;;  %s13217_s8 = inlined_call_operand.vmem [shape: f32[1,128], index: 8, kind: input, shape index: {}]   ;;  %s13218_s9 = inlined_call_operand.vmem [shape: bf16[128,128], index: 9, kind: input, shape index: {}]   ;;  %s13219_s10 = inlined_call_operand.vmem [shape: f32[1,128], index: 10, kind: input, shape index: {}]   ;;  %s13220_s11 = inlined_call_operand.hbm [shape: f32[2,1,128], index: 11, kind: output, shape index: {}]  }
   0x1   :  { %17 = vsyncpa [#allocation5], 0 }
   0x2   :  { %19 = vsyncpa [#allocation5 + $0x1], 0  ;;  %s11350_s17 = smov 0   ;;  %s11352_s18 = smov 0  }
   0x3   :  { %s11354_s19 = smov 0   ;;  %s11356_s20 = smov 0  }
   0x4 LB: > { %s11371_s21 = sadd.s32 4294967295, %s11282_s20   ;;  %s7725_s22 = sadd.s32 4294967294, %s11282_s20   ;;  %s11282_s20 = sphi %s11356_s20, %s13238_s20   ;;  %s11278_s19 = sphi %s11354_s19, %s13237_s19   ;;  %s11274_s18 = sphi %s11352_s18, %s13236_s18   ;;  %s11270_s17 = sphi %s11350_s17, %s13235_s17  }
   0x5   : > { %s11375_s23 = sadd.s32 1, %s11282_s20   ;;  %s268_s24 = sadd.s32 1, %s11278_s19 }
   0x6   : > { %s265_s25 = ssub.s32 %s11282_s20, %s11375_s23  ;;  %p278_p0 = scmp.ne.s32.totalorder %s11278_s19, %s11274_s18 }
   0x7   : > { %p266_p1 = scmp.eq.s32.totalorder %s265_s25, 0  ;;  %p279_p2 = scmp.eq.s32.totalorder %s11371_s21, 1 }
   0x8   : > { %p284_p3 = scmp.ne.s32.totalorder %s11274_s18, %s11270_s17  ;;  %p285_p4 = scmp.eq.s32.totalorder %s7725_s22, 1 }
   0x9   : > { %s11386_s26 = scalar_select %p266_p1, %s11278_s19, %s268_s24  }
   0xa   : > { %p11388_p5 = por %p279_p2, %p278_p0  ;;  %p11392_p6 = por %p285_p4, %p284_p3 }
   0xb   : > { %13224 = sst [smem:[#allocation9_spill]] %s11386_s26  ;;  %p7726_p7 = scmp.ge.s32.totalorder %s11282_s20, 1 }
   0xc   : > { %s13225_s27 = scalar_select %p11388_p5, 1, 0 }
   0xd   : > { %s13226_s28 = scalar_select %p11392_p6, 1, 0 }
   0xe   : > { %p292_p8 = scmp.lt.s32.totalorder %s11282_s20, 3  ;;  %p13221_p9 = scmp.eq.s32.totalorder %s11371_s21, 0 }
   0xf   : > { %s11284_s30 = smov [#allocation3]   ;;  %s11188_s16 = scalar_lea.hbm %s13212_s3, 24576 }
  0x10   : > { %p11399_p10 = pnand %p7726_p7, %p292_p8  ;;  %s310_s12 = sshll.u32 %s11284_s30, 4  ;;  %s311_s12 = int_to_ptr.vmem [resolvable:$true] %s310_s12 }
  0x11   : > { %p11189_p13 = scmp.ne.s32.totalorder %s13212_s3, %s11188_s16  ;;  %p11195_p3 = scmp.lt.u32.totalorder %s11188_s16, %s13212_s3 }
  0x12   : > { %s13227_s29 = scalar_select %p11399_p10, 1, 0 }
  0x13   : > { %p10508_p11 = pneg %p11399_p10 }
  0x15   : > { %p11407_p12 = pnand %p13221_p9, %p10508_p11 }
  0x17   : > { %p11190_p0 = pneg %p11407_p12 }
  0x19   : > { %p11191_p1 = pnand %p11190_p0, %p11189_p13 }
  0x1b   : > { %p11192_p2 = pneg %p11191_p1 }
  0x1d   : > { %p11197_p4 = pnand %p11195_p3, %p11192_p2 }
  0x1f   : > { %11200 = shalt.err (!%p11197_p4)
}
  0x20   : > { %s11201_s26 = scalar_lea.vmem %s311_s12, 24576  ;;  %p11209_p9 = scmp.lt.s32.totalorder %s311_s12, %s311_s12 }
  0x21   : > { %p11202_p7 = scmp.ne.s32.totalorder %s311_s12, %s11201_s26  ;;  %p11210_p6 = scmp.lt.s32.totalorder %s11201_s26, %s11201_s26 }
  0x23   : > { %p11204_p8 = pnand %p11202_p7, %p11190_p0  ;;  %p11211_p5 = por %p11210_p6, %p11209_p9 }
  0x25   : > { %p11205_p11 = pneg %p11204_p8 }
  0x27   : > { %p11212_p10 = pnand %p11211_p5, %p11205_p11 }
  0x29   : > { %11215 = shalt.err (!%p11212_p10)
}
  0x2a   : > { %s11285_s14 = smov 64   ;;  %s11286_s15 = smov 4  }
  0x2b   : > { %10511 = dma.hbm_to_vmem [thread:$0]  (!%p11407_p12), %s13212_s3, 24576, %s311_s12, [#allocation4], %s11285_s14, %s11285_s14, %s11286_s15  }
  0x2c   : > { %p13229_p13 = scmp.ne.s32.totalorder %s13227_s29, 0 }
  0x2d   : > { %p13230_p1 = scmp.eq.s32.totalorder (!%p13229_p13), %s11371_s21, 0 }
  0x2e   : > { %355 = sbr.rel (%p13229_p13) target bundleno = 2013 (0x7dd), region = 64 }
  0x35   : > { %11261 = dma.done.wait (%p13230_p1), [#allocation4], 24576   ;;  %p13231_p0 = pmov %p13230_p1 }
  0x36   : > { %v10556_v0 = vld [vmem:[%s13210_s1 + $0x100] sm:$0xff]   ;;  %v10560_v4 = vld [vmem:[%s13210_s1 + $0x108] sm:$0xff]   ;;  %v10564_v8 = vld [vmem:[%s13210_s1 + $0x110] sm:$0xff]   ;;  %p394_p5 = scmp.lt.s32.totalorder %s11371_s21, 1  ;;  %v11287_v36 = vmov 0.0   ;;  %vm11288_vm0 = vmmov 0  }
  0x37   : > { %11263 = vsyncadd (%p13231_p0), [#allocation4], 4294942720  ;;  %v10557_v1 = vld [vmem:[%s13210_s1 + $0x40] sm:$0xff]   ;;  %9153 = vmatprep.subr.bf16.mxu1 %v10556_v0  ;;  %v10561_v5 = vld [vmem:[%s13210_s1 + $0x48] sm:$0xff]   ;;  %s392_s29 = sand.u32 1, %s11274_s18   ;;  %p13232_p9 = scmp.ne.s32.totalorder %s13225_s27, 0 }
  0x38   : > { %v10558_v2 = vld [vmem:[%s13210_s1 + $0xc0] sm:$0xff]   ;;  %9184 = vmatprep.subr.bf16.mxu0 %v10557_v1  ;;  %v10562_v6 = vld [vmem:[%s13210_s1 + $0xc8] sm:$0xff]   ;;  %v10565_v9 = vld [vmem:[%s13210_s1 + $0x50] sm:$0xff]   ;;  %s395_s26 = scalar_select %p394_p5, %s11371_s21, 1 }
  0x39   : > { %v10559_v3 = vld [vmem:[%s13210_s1] sm:$0xff]   ;;  %9154 = vmatpush3.bf16.msra.mxu1 %v10558_v2  ;;  %v10563_v7 = vld [vmem:[%s13210_s1 + $0x8] sm:$0xff]   ;;  %v10566_v10 = vld [vmem:[%s13210_s1 + $0xd0] sm:$0xff]   ;;  %s393_s15 = scalar_lea.vmem [#allocation6], %s392_s29  ;;  %s11289_s12 = smov [#allocation6]  }
  0x3a   : > { %9185 = vmatpush3.bf16.msra.mxu0 %v10559_v3  ;;  %9155 = vmatprep.subr.bf16.mxu1 %v10560_v4  ;;  %v10567_v11 = vld [vmem:[%s13210_s1 + $0x10] sm:$0xff]   ;;  %v10568_v12 = vld [vmem:[%s13210_s1 + $0x118] sm:$0xff]   ;;  %v10572_v16 = vld [vmem:[%s13210_s1 + $0x120] sm:$0xff]   ;;  %s10501_s22 = smul.u32 24, %s395_s26  ;;  %s9150_s26 = sshll.u32 %s11371_s21, 4 }
  0x3b   : > { %9186 = vmatprep.subr.bf16.mxu0 %v10561_v5  ;;  %v10569_v13 = vld [vmem:[%s13210_s1 + $0x58] sm:$0xff]   ;;  %v10573_v17 = vld [vmem:[%s13210_s1 + $0x60] sm:$0xff]   ;;  %v10576_v20 = vld [vmem:[%s13210_s1 + $0x128] sm:$0xff]   ;;  %s7658_s16 = sshll.u32 %s393_s15, 4  ;;  %s13167_s13 = scalar_lea.hbm %s13220_s11, %s9150_s26  ;;  %s13169_s16 = int_to_ptr.vmem [resolvable:$true] %s7658_s16 }
  0x3c   : > { %v10570_v14 = vld [vmem:[%s13210_s1 + $0xd8] sm:$0xff]   ;;  %v10574_v18 = vld [vmem:[%s13210_s1 + $0xe0] sm:$0xff]   ;;  %v10577_v21 = vld [vmem:[%s13210_s1 + $0x68] sm:$0xff]   ;;  %s11528_s24 = scalar_lea.vmem %s13209_s0, %s10501_s22  ;;  %s7646_s22 = scalar_lea.sflag [#allocation5], %s392_s29 }
  0x3d   : > { %9156 = vmatpush3.bf16.msra.mxu1 %v10562_v6  ;;  %v10571_v15 = vld [vmem:[%s13210_s1 + $0x18] sm:$0xff]   ;;  %v10575_v19 = vld [vmem:[%s13210_s1 + $0x20] sm:$0xff]   ;;  %v10578_v22 = vld [vmem:[%s13210_s1 + $0xe8] sm:$0xff]   ;;  %s11216_s21 = scalar_lea.vmem %s13169_s16, 16  ;;  %s11220_s14 = sshll.u32 %s11289_s12, 4  ;;  %s11221_s14 = int_to_ptr.vmem [resolvable:$false] %s11220_s14 }
  0x3e   : > { %9187 = vmatpush3.bf16.msra.mxu0 %v10563_v7  ;;  %9157 = vmatprep.subr.bf16.mxu1 %v10564_v8  ;;  %v10579_v23 = vld [vmem:[%s13210_s1 + $0x28] sm:$0xff]   ;;  %v10580_v24 = vld [vmem:[%s13210_s1 + $0x130] sm:$0xff]   ;;  %v10584_v28 = vld [vmem:[%s13210_s1 + $0x138] sm:$0xff]   ;;  %p11217_p6 = scmp.ne.s32.totalorder %s13169_s16, %s11216_s21  ;;  %p11223_p2 = scmp.lt.s32.totalorder %s13169_s16, %s11221_s14 }
  0x3f   : > { %9188 = vmatprep.subr.bf16.mxu0 %v10565_v9  ;;  %v10581_v25 = vld [vmem:[%s13210_s1 + $0x70] sm:$0xff]   ;;  %v10585_v29 = vld [vmem:[%s13210_s1 + $0x78] sm:$0xff]   ;;  %v401_v32 = vld [vmem:[%s11528_s24 + $0x8] sm:$0xff] }
  0x40   : > { %v10582_v26 = vld [vmem:[%s13210_s1 + $0xf0] sm:$0xff]   ;;  %v10586_v30 = vld [vmem:[%s13210_s1 + $0xf8] sm:$0xff]   ;;  %v400_v33 = vld [vmem:[%s11528_s24] sm:$0xff]  ;;  %v11538_v34 = vpack.c.bf16 %v401_v32, %v401_v32  ;;  %p11218_p10 = pnand %p11217_p6, %p13232_p9 }
  0x41   : > { %9158 = vmatpush3.bf16.msra.mxu1 %v10566_v10  ;;  %v10583_v27 = vld [vmem:[%s13210_s1 + $0x30] sm:$0xff]   ;;  %v10587_v31 = vld [vmem:[%s13210_s1 + $0x38] sm:$0xff]   ;;  %v11540_v35 = vpack.c.bf16 %v400_v33, %v400_v33  ;;  %v10588_v45 = vld [vmem:[%s13210_s1 + $0x140] sm:$0xff]  }
  0x42   : > { %9189 = vmatpush3.bf16.msra.mxu0 %v10567_v11  ;;  %9159 = vmatprep.subr.bf16.mxu1 %v10568_v12  ;;  %v511_v37 = vshrl.u32 %v11538_v34, 16  ;;  %v513_v38 = vshll.u32 %v11538_v34, 16  ;;  %v10595_v46 = vld [vmem:[%s13210_s1 + $0x280] sm:$0xff]   ;;  %v10589_v48 = vld [vmem:[%s13210_s1 + $0x148] sm:$0xff]   ;;  %v10590_v51 = vld [vmem:[%s13210_s1 + $0x150] sm:$0xff]   ;;  %p11219_p12 = pneg %p11218_p10 }
  0x43   : > { %9190 = vmatprep.subr.bf16.mxu0 %v10569_v13  ;;  %927 = vmatprep.mubr.bf16.mxu0 %v11538_v34  ;;  %v504_v39 = vshrl.u32 %v11540_v35, 16  ;;  %v506_v40 = vshll.u32 %v11540_v35, 16  ;;  %v10596_v47 = vld [vmem:[%s13210_s1 + $0x240] sm:$0xff]   ;;  %v10598_v49 = vld [vmem:[%s13210_s1 + $0x288] sm:$0xff]   ;;  %v10601_v52 = vld [vmem:[%s13210_s1 + $0x290] sm:$0xff]  }
  0x44   : > { %v515_v41 = vrot.slane %v513_v38, 1  ;;  %v10599_v50 = vld [vmem:[%s13210_s1 + $0x248] sm:$0xff]   ;;  %v10602_v53 = vld [vmem:[%s13210_s1 + $0x250] sm:$0xff]   ;;  %v10604_v54 = vld [vmem:[%s13210_s1 + $0x298] sm:$0xff]  }
  0x45   : > { %9160 = vmatpush3.bf16.msra.mxu1 %v10570_v14  ;;  %v508_v42 = vrot.slane %v506_v40, 1  ;;  %v10591_v55 = vld [vmem:[%s13210_s1 + $0x158] sm:$0xff]   ;;  %v10607_v57 = vld [vmem:[%s13210_s1 + $0x2a0] sm:$0xff]   ;;  %v402_v59 = vld [vmem:[%s11528_s24 + $0x10] sm:$0xff]  ;;  %s11222_s24 = scalar_lea.vmem %s11221_s14, 32 }
  0x46   : > { %9191 = vmatpush3.bf16.msra.mxu0 %v10571_v15  ;;  %9161 = vmatprep.subr.bf16.mxu1 %v10572_v16  ;;  %v11549_v43 = vor.u32 %v515_v41, %v511_v37  ;;  %v10605_v56 = vld [vmem:[%s13210_s1 + $0x258] sm:$0xff]   ;;  %v10592_v58 = vld [vmem:[%s13210_s1 + $0x160] sm:$0xff]   ;;  %v10610_v61 = vld [vmem:[%s13210_s1 + $0x2a8] sm:$0xff]   ;;  %v11611_v62 = vpack.c.bf16 %v402_v59, %v402_v59  ;;  %p11224_p3 = scmp.lt.s32.totalorder %s11222_s24, %s11216_s21 }
  0x47   : > { %9192 = vmatprep.subr.bf16.mxu0 %v10573_v17  ;;  %v11551_v44 = vor.u32 %v508_v42, %v504_v39  ;;  %v10608_v60 = vld [vmem:[%s13210_s1 + $0x260] sm:$0xff]   ;;  %v10593_v63 = vld [vmem:[%s13210_s1 + $0x168] sm:$0xff]   ;;  %v10613_v1 = vld [vmem:[%s13210_s1 + $0x2b0] sm:$0xff]  }
  0x48   : > { %703 = vmatprep.mubr.bf16.mxu1 %v11549_v43  ;;  %v10611_v0 = vld [vmem:[%s13210_s1 + $0x268] sm:$0xff]   ;;  %v520_v2 = vshll.u32 %v11611_v62, 16  ;;  %v10594_v3 = vld [vmem:[%s13210_s1 + $0x170] sm:$0xff]   ;;  %v10616_v5 = vld [vmem:[%s13210_s1 + $0x2b8] sm:$0xff]   ;;  %v518_v6 = vshrl.u32 %v11611_v62, 16  ;;  %p11225_p4 = por %p11224_p3, %p11223_p2 }
  0x49   : > { %9162 = vmatpush3.bf16.msra.mxu1 %v10574_v18  ;;  %v10614_v4 = vld [vmem:[%s13210_s1 + $0x270] sm:$0xff]   ;;  %v10597_v8 = vld [vmem:[%s13210_s1 + $0x178] sm:$0xff]   ;;  %v10619_v10 = vld [vmem:[%s13210_s1 + $0x1c0] sm:$0xff]  }
  0x4a   : > { %9193 = vmatpush3.bf16.msra.mxu0 %v10575_v19  ;;  %9163 = vmatprep.subr.bf16.mxu1 %v10576_v20  ;;  %v522_v7 = vrot.slane %v520_v2, 1  ;;  %v10617_v9 = vld [vmem:[%s13210_s1 + $0x278] sm:$0xff]   ;;  %v10600_v12 = vld [vmem:[%s13210_s1 + $0x80] sm:$0xff]   ;;  %v10622_v14 = vld [vmem:[%s13210_s1 + $0x1c8] sm:$0xff]   ;;  %p11226_p7 = pnand %p11225_p4, %p11219_p12 }
  0x4b   : > { %9194 = vmatprep.subr.bf16.mxu0 %v10577_v21  ;;  %v10620_v13 = vld [vmem:[%s13210_s1 + $0x180] sm:$0xff]   ;;  %v10603_v15 = vld [vmem:[%s13210_s1 + $0x88] sm:$0xff]   ;;  %v10625_v17 = vld [vmem:[%s13210_s1 + $0x1d0] sm:$0xff]  }
  0x4c   : > { %v11645_v11 = vor.u32 %v522_v7, %v518_v6  ;;  %v10623_v16 = vld [vmem:[%s13210_s1 + $0x188] sm:$0xff]   ;;  %v10606_v18 = vld [vmem:[%s13210_s1 + $0x90] sm:$0xff]   ;;  %v10628_v20 = vld [vmem:[%s13210_s1 + $0x1d8] sm:$0xff]  }
  0x4d   : > { %9164 = vmatpush3.bf16.msra.mxu1 %v10578_v22  ;;  %v10626_v19 = vld [vmem:[%s13210_s1 + $0x190] sm:$0xff]   ;;  %v10609_v21 = vld [vmem:[%s13210_s1 + $0x98] sm:$0xff]   ;;  %v10643_v38 = vld [vmem:[%s13210_s1 + $0x400] sm:$0xff]  }
  0x4e   : > { %9195 = vmatpush3.bf16.msra.mxu0 %v10579_v23  ;;  %9165 = vmatprep.subr.bf16.mxu1 %v10580_v24  ;;  %v10629_v22 = vld [vmem:[%s13210_s1 + $0x198] sm:$0xff]   ;;  %v10631_v23 = vld [vmem:[%s13210_s1 + $0x1e0] sm:$0xff]   ;;  %v10646_v41 = vld [vmem:[%s13210_s1 + $0x408] sm:$0xff]  }
  0x4f   : > { %9196 = vmatprep.subr.bf16.mxu0 %v10581_v25  ;;  %v10612_v24 = vld [vmem:[%s13210_s1 + $0xa0] sm:$0xff]   ;;  %v10640_v32 = vld [vmem:[%s13210_s1 + $0x1f8] sm:$0xff]   ;;  %v10627_v42 = vld [vmem:[%s13210_s1 + $0x2c8] sm:$0xff]  }
  0x50   : > { %v10632_v25 = vld [vmem:[%s13210_s1 + $0x1a0] sm:$0xff]   ;;  %v10621_v33 = vld [vmem:[%s13210_s1 + $0xb8] sm:$0xff]   ;;  %v10642_v59 = vld [vmem:[%s13210_s1 + $0x2f0] sm:$0xff]  }
  0x51   : > { %9166 = vmatpush3.bf16.msra.mxu1 %v10582_v26  ;;  %v10634_v26 = vld [vmem:[%s13210_s1 + $0x1e8] sm:$0xff]   ;;  %v10641_v37 = vld [vmem:[%s13210_s1 + $0x1b8] sm:$0xff]   ;;  %v10624_v39 = vld [vmem:[%s13210_s1 + $0x2c0] sm:$0xff]  }
  0x52   : > { %9197 = vmatpush3.bf16.msra.mxu0 %v10583_v27  ;;  %9167 = vmatprep.subr.bf16.mxu1 %v10584_v28  ;;  %v10615_v27 = vld [vmem:[%s13210_s1 + $0xa8] sm:$0xff]   ;;  %v10644_v40 = vld [vmem:[%s13210_s1 + $0x3c0] sm:$0xff]   ;;  %v10673_v7 = vld [vmem:[%s13210_s1 + $0x350] sm:$0xff]  }
  0x53   : > { %9198 = vmatprep.subr.bf16.mxu0 %v10585_v29  ;;  %v10635_v28 = vld [vmem:[%s13210_s1 + $0x1a8] sm:$0xff]   ;;  %v10637_v29 = vld [vmem:[%s13210_s1 + $0x1f0] sm:$0xff]   ;;  %v10648_v2 = vld [vmem:[%s13210_s1 + $0x200] sm:$0xff]  }
  0x54   : > { %v10671_v6 = vld [vmem:[%s13210_s1 + $0x308] sm:$0xff]  }
  0x55   : > { %9168 = vmatpush3.bf16.msra.mxu1 %v10586_v30  ;;  %v10618_v30 = vld [vmem:[%s13210_s1 + $0xb0] sm:$0xff]  }
  0x56   : > { %9199 = vmatpush3.bf16.msra.mxu0 %v10587_v31  ;;  %9976 = vmatprep.subr.bf16.mxu1 %v11287_v36  ;;  %v10638_v31 = vld [vmem:[%s13210_s1 + $0x1b0] sm:$0xff]  }
  0x57   : > { %9215 = vmatprep.subr.bf16.mxu0 %v10595_v46  ;;  %v10649_v46 = vld [vmem:[%s13210_s1 + $0x410] sm:$0xff]  }
  0x58   : > { %704 = vmatmul.mubr.bf16.vlgmr.msra.gmra.mrb[0].mxu1 %v11551_v44 }
  0x59   : > { %928 = vmatmul.mubr.bf16.vlgmr.msra.gmra.mrb[0].mxu0 %v11540_v35  ;;  %9977 = vmatpush3.bf16.msra.mxu1 %v10588_v45  ;;  %v10647_v45 = vld [vmem:[%s13210_s1 + $0x3c8] sm:$0xff]  }
  0x5a   : > { %1249 = vmatprep.mubr.bf16.mxu0 %v11549_v43  ;;  %9978 = vmatprep.subr.bf16.mxu1 %v11287_v36 }
  0x5b   : > { %9216 = vmatpush3.bf16.msra.mxu0 %v10596_v47  ;;  %9992 = vmatprep.mubr.msk.bf16.mxu1 %vm11288_vm0, %v11287_v36  ;;  %v10630_v47 = vld [vmem:[%s13210_s1 + $0x2d0] sm:$0xff]  }
  0x5c   : > { %9217 = vmatprep.subr.bf16.mxu0 %v10598_v49  ;;  %v10652_v49 = vld [vmem:[%s13210_s1 + $0x418] sm:$0xff]  }
  0x5d   : > { %9979 = vmatpush3.bf16.msra.mxu1 %v10589_v48  ;;  %v10650_v48 = vld [vmem:[%s13210_s1 + $0x3d0] sm:$0xff]  }
  0x5e   : > { %9980 = vmatprep.subr.bf16.mxu1 %v11287_v36 }
  0x5f   : > { %9218 = vmatpush3.bf16.msra.mxu0 %v10599_v50  ;;  %v10633_v50 = vld [vmem:[%s13210_s1 + $0x2d8] sm:$0xff]  }
  0x60   : > { %9219 = vmatprep.subr.bf16.mxu0 %v10601_v52  ;;  %v10655_v52 = vld [vmem:[%s13210_s1 + $0x420] sm:$0xff]  }
  0x61   : > { %9981 = vmatpush3.bf16.msra.mxu1 %v10590_v51  ;;  %v10653_v51 = vld [vmem:[%s13210_s1 + $0x3d8] sm:$0xff]  }
  0x62   : > { %9982 = vmatprep.subr.bf16.mxu1 %v11287_v36 }
  0x63   : > { %9220 = vmatpush3.bf16.msra.mxu0 %v10602_v53  ;;  %v10636_v53 = vld [vmem:[%s13210_s1 + $0x2e0] sm:$0xff]  }
  0x64   : > { %9221 = vmatprep.subr.bf16.mxu0 %v10604_v54  ;;  %v10656_v54 = vld [vmem:[%s13210_s1 + $0x3e0] sm:$0xff]  }
  0x65   : > { %9983 = vmatpush3.bf16.msra.mxu1 %v10591_v55  ;;  %v10658_v55 = vld [vmem:[%s13210_s1 + $0x428] sm:$0xff]  }
  0x66   : > { %9984 = vmatprep.subr.bf16.mxu1 %v11287_v36 }
  0x67   : > { %9222 = vmatpush3.bf16.msra.mxu0 %v10605_v56  ;;  %v10639_v56 = vld [vmem:[%s13210_s1 + $0x2e8] sm:$0xff]  }
  0x68   : > { %9223 = vmatprep.subr.bf16.mxu0 %v10607_v57  ;;  %v10659_v57 = vld [vmem:[%s13210_s1 + $0x3e8] sm:$0xff]  }
  0x69   : > { %9985 = vmatpush3.bf16.msra.mxu1 %v10592_v58  ;;  %v10661_v58 = vld [vmem:[%s13210_s1 + $0x430] sm:$0xff]  }
  0x6a   : > { %9986 = vmatprep.subr.bf16.mxu1 %v11287_v36 }
  0x6b   : > { %9224 = vmatpush3.bf16.msra.mxu0 %v10608_v60  ;;  %v10662_v60 = vld [vmem:[%s13210_s1 + $0x3f0] sm:$0xff]  }
  0x6c   : > { %9225 = vmatprep.subr.bf16.mxu0 %v10610_v61  ;;  %v10664_v61 = vld [vmem:[%s13210_s1 + $0x438] sm:$0xff]  }
  0x6d   : > { %9987 = vmatpush3.bf16.msra.mxu1 %v10593_v63  ;;  %v10645_v63 = vld [vmem:[%s13210_s1 + $0x2f8] sm:$0xff]  }
  0x6e   : > { %9988 = vmatprep.subr.bf16.mxu1 %v11287_v36 }
  0x6f   : > { %9226 = vmatpush3.bf16.msra.mxu0 %v10611_v0  ;;  %v10665_v0 = vld [vmem:[%s13210_s1 + $0x3f8] sm:$0xff]  }
  0x70   : > { %9227 = vmatprep.subr.bf16.mxu0 %v10613_v1  ;;  %v10667_v1 = vld [vmem:[%s13210_s1 + $0x340] sm:$0xff]  }
  0x71   : > { %9989 = vmatpush3.bf16.msra.mxu1 %v10594_v3  ;;  %v10668_v3 = vld [vmem:[%s13210_s1 + $0x300] sm:$0xff]  }
  0x72   : > { %9990 = vmatprep.subr.bf16.mxu1 %v11287_v36 }
  0x73   : > { %9228 = vmatpush3.bf16.msra.mxu0 %v10614_v4  ;;  %v10670_v4 = vld [vmem:[%s13210_s1 + $0x348] sm:$0xff]  }
  0x74   : > { %9229 = vmatprep.subr.bf16.mxu0 %v10616_v5  ;;  %v10651_v5 = vld [vmem:[%s13210_s1 + $0x208] sm:$0xff]  }
  0x75   : > { %9991 = vmatpush3.bf16.msra.mxu1 %v10597_v8  ;;  %v10654_v8 = vld [vmem:[%s13210_s1 + $0x210] sm:$0xff]  }
  0x76   : > { %9996 = vmatprep.subr.bf16.mxu1 %v11287_v36 }
  0x77   : > { %9230 = vmatpush3.bf16.msra.mxu0 %v10617_v9  ;;  %v10674_v9 = vld [vmem:[%s13210_s1 + $0x310] sm:$0xff]  }
  0x78   : > { %9246 = vmatprep.subr.bf16.mxu0 %v10619_v10  ;;  %9993 = vmatmul.mubr.bf16.vlgmr.msra.gmra.mrb[4].mxu1 %v11645_v11  ;;  %v10676_v10 = vld [vmem:[%s13210_s1 + $0x358] sm:$0xff]  }
  0x79   : > { %9997 = vmatpush3.bf16.msra.mxu1 %v10600_v12  ;;  %10012 = vmatprep.mubr.msk.bf16.mxu1 %vm11288_vm0, %v11287_v36  ;;  %v10657_v12 = vld [vmem:[%s13210_s1 + $0x218] sm:$0xff]  }
  0x7a   : > { %1250 = vmatmul.mubr.bf16.vlgmr.msra.gmra.mrb[4].mxu0 %v11551_v44  ;;  %9998 = vmatprep.subr.bf16.mxu1 %v11287_v36 }
  0x7b   : > { %9247 = vmatpush3.bf16.msra.mxu0 %v10620_v13  ;;  %1473 = vmatprep.mubr.bf16.mxu0 %v11538_v34  ;;  %v10677_v13 = vld [vmem:[%s13210_s1 + $0x318] sm:$0xff]  }
  0x7c   : > { %9248 = vmatprep.subr.bf16.mxu0 %v10622_v14  ;;  %v10679_v14 = vld [vmem:[%s13210_s1 + $0x360] sm:$0xff]  }
  0x7d   : > { %9999 = vmatpush3.bf16.msra.mxu1 %v10603_v15  ;;  %v10660_v15 = vld [vmem:[%s13210_s1 + $0x220] sm:$0xff]  }
  0x7e   : > { %10000 = vmatprep.subr.bf16.mxu1 %v11287_v36 }
  0x7f   : > { %9249 = vmatpush3.bf16.msra.mxu0 %v10623_v16  ;;  %v10680_v16 = vld [vmem:[%s13210_s1 + $0x320] sm:$0xff]  }
  0x80   : > { %9250 = vmatprep.subr.bf16.mxu0 %v10625_v17  ;;  %v10682_v17 = vld [vmem:[%s13210_s1 + $0x368] sm:$0xff]  }
  0x81   : > { %10001 = vmatpush3.bf16.msra.mxu1 %v10606_v18  ;;  %v10663_v18 = vld [vmem:[%s13210_s1 + $0x228] sm:$0xff]  }
  0x82   : > { %10002 = vmatprep.subr.bf16.mxu1 %v11287_v36 }
  0x83   : > { %9251 = vmatpush3.bf16.msra.mxu0 %v10626_v19  ;;  %v10683_v19 = vld [vmem:[%s13210_s1 + $0x328] sm:$0xff]  }
  0x84   : > { %9252 = vmatprep.subr.bf16.mxu0 %v10628_v20  ;;  %v10685_v20 = vld [vmem:[%s13210_s1 + $0x370] sm:$0xff]  }
  0x85   : > { %10003 = vmatpush3.bf16.msra.mxu1 %v10609_v21  ;;  %v10666_v21 = vld [vmem:[%s13210_s1 + $0x230] sm:$0xff]  }
  0x86   : > { %10004 = vmatprep.subr.bf16.mxu1 %v11287_v36 }
  0x87   : > { %9253 = vmatpush3.bf16.msra.mxu0 %v10629_v22  ;;  %v10686_v22 = vld [vmem:[%s13210_s1 + $0x330] sm:$0xff]  }
  0x88   : > { %9254 = vmatprep.subr.bf16.mxu0 %v10631_v23  ;;  %v10688_v23 = vld [vmem:[%s13210_s1 + $0x378] sm:$0xff]  }
  0x89   : > { %10005 = vmatpush3.bf16.msra.mxu1 %v10612_v24  ;;  %v10669_v24 = vld [vmem:[%s13210_s1 + $0x238] sm:$0xff]  }
  0x8a   : > { %10006 = vmatprep.subr.bf16.mxu1 %v11287_v36 }
  0x8b   : > { %9255 = vmatpush3.bf16.msra.mxu0 %v10632_v25  ;;  %v10689_v25 = vld [vmem:[%s13210_s1 + $0x338] sm:$0xff]  }
  0x8c   : > { %9256 = vmatprep.subr.bf16.mxu0 %v10634_v26  ;;  %v10691_v26 = vld [vmem:[%s13210_s1 + $0x580] sm:$0xff]  }
  0x8d   : > { %10007 = vmatpush3.bf16.msra.mxu1 %v10615_v27  ;;  %v10672_v27 = vld [vmem:[%s13210_s1 + $0x440] sm:$0xff]  }
  0x8e   : > { %10008 = vmatprep.subr.bf16.mxu1 %v11287_v36 }
  0x8f   : > { %9257 = vmatpush3.bf16.msra.mxu0 %v10635_v28  ;;  %v10692_v28 = vld [vmem:[%s13210_s1 + $0x540] sm:$0xff]  }
  0x90   : > { %9258 = vmatprep.subr.bf16.mxu0 %v10637_v29  ;;  %v10694_v29 = vld [vmem:[%s13210_s1 + $0x588] sm:$0xff]  }
  0x91   : > { %10009 = vmatpush3.bf16.msra.mxu1 %v10618_v30  ;;  %v10675_v30 = vld [vmem:[%s13210_s1 + $0x448] sm:$0xff]  }
  0x92   : > { %10010 = vmatprep.subr.bf16.mxu1 %v11287_v36 }
  0x93   : > { %9259 = vmatpush3.bf16.msra.mxu0 %v10638_v31  ;;  %v10695_v31 = vld [vmem:[%s13210_s1 + $0x548] sm:$0xff]  }
  0x94   : > { %9260 = vmatprep.subr.bf16.mxu0 %v10640_v32  ;;  %v10697_v32 = vld [vmem:[%s13210_s1 + $0x590] sm:$0xff]  }
  0x95   : > { %10011 = vmatpush3.bf16.msra.mxu1 %v10621_v33  ;;  %v10678_v33 = vld [vmem:[%s13210_s1 + $0x450] sm:$0xff]  }
  0x96   : > { %10016 = vmatprep.subr.bf16.mxu1 %v11287_v36 }
  0x97   : > { %9261 = vmatpush3.bf16.msra.mxu0 %v10641_v37  ;;  %v10698_v37 = vld [vmem:[%s13210_s1 + $0x550] sm:$0xff]  }
  0x98   : > { %9277 = vmatprep.subr.bf16.mxu0 %v10643_v38  ;;  %10013 = vmatmul.mubr.bf16.vlgmr.msra.gmra.mrb[4].mxu1 %v11611_v62  ;;  %v10700_v38 = vld [vmem:[%s13210_s1 + $0x598] sm:$0xff]  }
  0x99   : > { %10017 = vmatpush3.bf16.msra.mxu1 %v10624_v39  ;;  %10032 = vmatprep.mubr.msk.bf16.mxu1 %vm11288_vm0, %v11287_v36  ;;  %v10681_v39 = vld [vmem:[%s13210_s1 + $0x458] sm:$0xff]  }
  0x9a   : > { %1474 = vmatmul.mubr.bf16.vlgmr.msra.gmra.mrb[8].mxu0 %v11540_v35  ;;  %10018 = vmatprep.subr.bf16.mxu1 %v11287_v36 }
  0x9b   : > { %9278 = vmatpush3.bf16.msra.mxu0 %v10644_v40  ;;  %1795 = vmatprep.mubr.bf16.mxu0 %v11549_v43  ;;  %v10701_v40 = vld [vmem:[%s13210_s1 + $0x558] sm:$0xff]  }
  0x9c   : > { %9279 = vmatprep.subr.bf16.mxu0 %v10646_v41  ;;  %v10703_v41 = vld [vmem:[%s13210_s1 + $0x5a0] sm:$0xff]  }
  0x9d   : > { %10019 = vmatpush3.bf16.msra.mxu1 %v10627_v42  ;;  %v10684_v42 = vld [vmem:[%s13210_s1 + $0x460] sm:$0xff]  }
  0x9e   : > { %10020 = vmatprep.subr.bf16.mxu1 %v11287_v36 }
  0x9f   : > { %9280 = vmatpush3.bf16.msra.mxu0 %v10647_v45  ;;  %v10704_v45 = vld [vmem:[%s13210_s1 + $0x560] sm:$0xff]  }
  0xa0   : > { %9281 = vmatprep.subr.bf16.mxu0 %v10649_v46  ;;  %v10706_v46 = vld [vmem:[%s13210_s1 + $0x5a8] sm:$0xff]  }
  0xa1   : > { %10021 = vmatpush3.bf16.msra.mxu1 %v10630_v47  ;;  %v10687_v47 = vld [vmem:[%s13210_s1 + $0x468] sm:$0xff]  }
  0xa2   : > { %10022 = vmatprep.subr.bf16.mxu1 %v11287_v36 }
  0xa3   : > { %9282 = vmatpush3.bf16.msra.mxu0 %v10650_v48  ;;  %v10707_v48 = vld [vmem:[%s13210_s1 + $0x568] sm:$0xff]  }
  0xa4   : > { %9283 = vmatprep.subr.bf16.mxu0 %v10652_v49  ;;  %v10709_v49 = vld [vmem:[%s13210_s1 + $0x5b0] sm:$0xff]  }
  0xa5   : > { %10023 = vmatpush3.bf16.msra.mxu1 %v10633_v50  ;;  %v10690_v50 = vld [vmem:[%s13210_s1 + $0x470] sm:$0xff]  }
  0xa6   : > { %10024 = vmatprep.subr.bf16.mxu1 %v11287_v36 }
  0xa7   : > { %9284 = vmatpush3.bf16.msra.mxu0 %v10653_v51  ;;  %v10710_v51 = vld [vmem:[%s13210_s1 + $0x570] sm:$0xff]  }
  0xa8   : > { %9285 = vmatprep.subr.bf16.mxu0 %v10655_v52  ;;  %v10712_v52 = vld [vmem:[%s13210_s1 + $0x5b8] sm:$0xff]  }
  0xa9   : > { %10025 = vmatpush3.bf16.msra.mxu1 %v10636_v53  ;;  %v10693_v53 = vld [vmem:[%s13210_s1 + $0x478] sm:$0xff]  }
  0xaa   : > { %10026 = vmatprep.subr.bf16.mxu1 %v11287_v36 }
  0xab   : > { %9286 = vmatpush3.bf16.msra.mxu0 %v10656_v54  ;;  %v10713_v54 = vld [vmem:[%s13210_s1 + $0x578] sm:$0xff]  }
  0xac   : > { %9287 = vmatprep.subr.bf16.mxu0 %v10658_v55  ;;  %v10715_v55 = vld [vmem:[%s13210_s1 + $0x4c0] sm:$0xff]  }
  0xad   : > { %10027 = vmatpush3.bf16.msra.mxu1 %v10639_v56  ;;  %v10696_v56 = vld [vmem:[%s13210_s1 + $0x380] sm:$0xff]  }
  0xae   : > { %10028 = vmatprep.subr.bf16.mxu1 %v11287_v36 }
  0xaf   : > { %9288 = vmatpush3.bf16.msra.mxu0 %v10659_v57  ;;  %v10716_v57 = vld [vmem:[%s13210_s1 + $0x480] sm:$0xff]  }
  0xb0   : > { %9289 = vmatprep.subr.bf16.mxu0 %v10661_v58  ;;  %v10718_v58 = vld [vmem:[%s13210_s1 + $0x4c8] sm:$0xff]  }
  0xb1   : > { %10029 = vmatpush3.bf16.msra.mxu1 %v10642_v59  ;;  %v10699_v59 = vld [vmem:[%s13210_s1 + $0x388] sm:$0xff]  }
  0xb2   : > { %10030 = vmatprep.subr.bf16.mxu1 %v11287_v36 }
  0xb3   : > { %9290 = vmatpush3.bf16.msra.mxu0 %v10662_v60  ;;  %v10719_v60 = vld [vmem:[%s13210_s1 + $0x488] sm:$0xff]  }
  0xb4   : > { %9291 = vmatprep.subr.bf16.mxu0 %v10664_v61  ;;  %v10721_v61 = vld [vmem:[%s13210_s1 + $0x4d0] sm:$0xff]  }
  0xb5   : > { %10031 = vmatpush3.bf16.msra.mxu1 %v10645_v63  ;;  %v10702_v63 = vld [vmem:[%s13210_s1 + $0x390] sm:$0xff]  }
  0xb6   : > { %10036 = vmatprep.subr.bf16.mxu1 %v11287_v36 }
  0xb7   : > { %9292 = vmatpush3.bf16.msra.mxu0 %v10665_v0  ;;  %v10722_v0 = vld [vmem:[%s13210_s1 + $0x490] sm:$0xff]  }
  0xb8   : > { %9308 = vmatprep.subr.bf16.mxu0 %v10667_v1  ;;  %10033 = vmatmul.mubr.bf16.vlgmr.msra.gmra.mrb[8].mxu1 %v11645_v11  ;;  %v10724_v1 = vld [vmem:[%s13210_s1 + $0x4d8] sm:$0xff]  }
  0xb9   : > { %10037 = vmatpush3.bf16.msra.mxu1 %v10648_v2  ;;  %10052 = vmatprep.mubr.msk.bf16.mxu1 %vm11288_vm0, %v11287_v36  ;;  %v10705_v2 = vld [vmem:[%s13210_s1 + $0x398] sm:$0xff]  }
  0xba   : > { %1796 = vmatmul.mubr.bf16.vlgmr.msra.gmra.mrb[12].mxu0 %v11551_v44  ;;  %10038 = vmatprep.subr.bf16.mxu1 %v11287_v36 }
  0xbb   : > { %9309 = vmatpush3.bf16.msra.mxu0 %v10668_v3  ;;  %2019 = vmatprep.mubr.bf16.mxu0 %v11538_v34  ;;  %v10725_v3 = vld [vmem:[%s13210_s1 + $0x498] sm:$0xff]  }
  0xbc   : > { %9310 = vmatprep.subr.bf16.mxu0 %v10670_v4  ;;  %v10727_v4 = vld [vmem:[%s13210_s1 + $0x4e0] sm:$0xff]  }
  0xbd   : > { %10039 = vmatpush3.bf16.msra.mxu1 %v10651_v5  ;;  %v10708_v5 = vld [vmem:[%s13210_s1 + $0x3a0] sm:$0xff]  }
  0xbe   : > { %10040 = vmatprep.subr.bf16.mxu1 %v11287_v36 }
  0xbf   : > { %9311 = vmatpush3.bf16.msra.mxu0 %v10671_v6  ;;  %v10728_v6 = vld [vmem:[%s13210_s1 + $0x4a0] sm:$0xff]  }
  0xc0   : > { %9312 = vmatprep.subr.bf16.mxu0 %v10673_v7  ;;  %v10730_v7 = vld [vmem:[%s13210_s1 + $0x4e8] sm:$0xff]  }
  0xc1   : > { %10041 = vmatpush3.bf16.msra.mxu1 %v10654_v8  ;;  %v10711_v8 = vld [vmem:[%s13210_s1 + $0x3a8] sm:$0xff]  }
  0xc2   : > { %10042 = vmatprep.subr.bf16.mxu1 %v11287_v36 }
  0xc3   : > { %9313 = vmatpush3.bf16.msra.mxu0 %v10674_v9  ;;  %v10731_v9 = vld [vmem:[%s13210_s1 + $0x4a8] sm:$0xff]  }
  0xc4   : > { %9314 = vmatprep.subr.bf16.mxu0 %v10676_v10  ;;  %v10733_v10 = vld [vmem:[%s13210_s1 + $0x4f0] sm:$0xff]  }
  0xc5   : > { %10043 = vmatpush3.bf16.msra.mxu1 %v10657_v12  ;;  %v10714_v12 = vld [vmem:[%s13210_s1 + $0x3b0] sm:$0xff]  }
  0xc6   : > { %10044 = vmatprep.subr.bf16.mxu1 %v11287_v36 }
  0xc7   : > { %9315 = vmatpush3.bf16.msra.mxu0 %v10677_v13  ;;  %v10734_v13 = vld [vmem:[%s13210_s1 + $0x4b0] sm:$0xff]  }
  0xc8   : > { %9316 = vmatprep.subr.bf16.mxu0 %v10679_v14  ;;  %v10736_v14 = vld [vmem:[%s13210_s1 + $0x4f8] sm:$0xff]  }
  0xc9   : > { %10045 = vmatpush3.bf16.msra.mxu1 %v10660_v15  ;;  %v10717_v15 = vld [vmem:[%s13210_s1 + $0x3b8] sm:$0xff]  }
  0xca   : > { %10046 = vmatprep.subr.bf16.mxu1 %v11287_v36 }
  0xcb   : > { %9317 = vmatpush3.bf16.msra.mxu0 %v10680_v16  ;;  %v10737_v16 = vld [vmem:[%s13210_s1 + $0x4b8] sm:$0xff]  }
  0xcc   : > { %9318 = vmatprep.subr.bf16.mxu0 %v10682_v17  ;;  %v10739_v17 = vld [vmem:[%s13210_s1 + $0x700] sm:$0xff]  }
  0xcd   : > { %10047 = vmatpush3.bf16.msra.mxu1 %v10663_v18  ;;  %v10720_v18 = vld [vmem:[%s13210_s1 + $0x5c0] sm:$0xff]  }
  0xce   : > { %10048 = vmatprep.subr.bf16.mxu1 %v11287_v36 }
  0xcf   : > { %9319 = vmatpush3.bf16.msra.mxu0 %v10683_v19  ;;  %v10740_v19 = vld [vmem:[%s13210_s1 + $0x6c0] sm:$0xff]  }
  0xd0   : > { %9320 = vmatprep.subr.bf16.mxu0 %v10685_v20  ;;  %v10742_v20 = vld [vmem:[%s13210_s1 + $0x708] sm:$0xff]  }
  0xd1   : > { %10049 = vmatpush3.bf16.msra.mxu1 %v10666_v21  ;;  %v10723_v21 = vld [vmem:[%s13210_s1 + $0x5c8] sm:$0xff]  }
  0xd2   : > { %10050 = vmatprep.subr.bf16.mxu1 %v11287_v36 }
  0xd3   : > { %9321 = vmatpush3.bf16.msra.mxu0 %v10686_v22  ;;  %v10743_v22 = vld [vmem:[%s13210_s1 + $0x6c8] sm:$0xff]  }
  0xd4   : > { %9322 = vmatprep.subr.bf16.mxu0 %v10688_v23  ;;  %v10745_v23 = vld [vmem:[%s13210_s1 + $0x710] sm:$0xff]  }
  0xd5   : > { %10051 = vmatpush3.bf16.msra.mxu1 %v10669_v24  ;;  %v10726_v24 = vld [vmem:[%s13210_s1 + $0x5d0] sm:$0xff]  }
  0xd6   : > { %10056 = vmatprep.subr.bf16.mxu1 %v11287_v36 }
  0xd7   : > { %9323 = vmatpush3.bf16.msra.mxu0 %v10689_v25  ;;  %v10746_v25 = vld [vmem:[%s13210_s1 + $0x6d0] sm:$0xff]  }
  0xd8   : > { %9339 = vmatprep.subr.bf16.mxu0 %v10691_v26  ;;  %10053 = vmatmul.mubr.bf16.vlgmr.msra.gmra.mrb[8].mxu1 %v11611_v62  ;;  %v10748_v26 = vld [vmem:[%s13210_s1 + $0x718] sm:$0xff]  }
  0xd9   : > { %10057 = vmatpush3.bf16.msra.mxu1 %v10672_v27  ;;  %10072 = vmatprep.mubr.msk.bf16.mxu1 %vm11288_vm0, %v11287_v36  ;;  %v10729_v27 = vld [vmem:[%s13210_s1 + $0x5d8] sm:$0xff]  }
  0xda   : > { %2020 = vmatmul.mubr.bf16.vlgmr.msra.gmra.mrb[16].mxu0 %v11540_v35  ;;  %10058 = vmatprep.subr.bf16.mxu1 %v11287_v36 }
  0xdb   : > { %9340 = vmatpush3.bf16.msra.mxu0 %v10692_v28  ;;  %2341 = vmatprep.mubr.bf16.mxu0 %v11549_v43  ;;  %v10749_v28 = vld [vmem:[%s13210_s1 + $0x6d8] sm:$0xff]  }
  0xdc   : > { %9341 = vmatprep.subr.bf16.mxu0 %v10694_v29  ;;  %v10751_v29 = vld [vmem:[%s13210_s1 + $0x720] sm:$0xff]  }
  0xdd   : > { %10059 = vmatpush3.bf16.msra.mxu1 %v10675_v30  ;;  %v10732_v30 = vld [vmem:[%s13210_s1 + $0x5e0] sm:$0xff]  }
  0xde   : > { %10060 = vmatprep.subr.bf16.mxu1 %v11287_v36 }
  0xdf   : > { %9342 = vmatpush3.bf16.msra.mxu0 %v10695_v31 }
  0xe0   : > { %9343 = vmatprep.subr.bf16.mxu0 %v10697_v32 }
  0xe1   : > { %10061 = vmatpush3.bf16.msra.mxu1 %v10678_v33  ;;  %v10752_v33 = vld [vmem:[%s13210_s1 + $0x6e0] sm:$0xff]  }
  0xe2   : > { %10062 = vmatprep.subr.bf16.mxu1 %v11287_v36 }
  0xe3   : > { %9344 = vmatpush3.bf16.msra.mxu0 %v10698_v37 }
  0xe4   : > { %9345 = vmatprep.subr.bf16.mxu0 %v10700_v38  ;;  %v10754_v38 = vld [vmem:[%s13210_s1 + $0x728] sm:$0xff]  }
  0xe5   : > { %10063 = vmatpush3.bf16.msra.mxu1 %v10681_v39 }
  0xe6   : > { %10064 = vmatprep.subr.bf16.mxu1 %v11287_v36 }
  0xe7   : > { %9346 = vmatpush3.bf16.msra.mxu0 %v10701_v40 }
  0xe8   : > { %9347 = vmatprep.subr.bf16.mxu0 %v10703_v41  ;;  %v10735_v41 = vld [vmem:[%s13210_s1 + $0x5e8] sm:$0xff]  }
  0xe9   : > { %10065 = vmatpush3.bf16.msra.mxu1 %v10684_v42  ;;  %v10755_v42 = vld [vmem:[%s13210_s1 + $0x6e8] sm:$0xff]  }
  0xea   : > { %10066 = vmatprep.subr.bf16.mxu1 %v11287_v36 }
  0xeb   : > { %9348 = vmatpush3.bf16.msra.mxu0 %v10704_v45 }
  0xec   : > { %9349 = vmatprep.subr.bf16.mxu0 %v10706_v46  ;;  %v10757_v46 = vld [vmem:[%s13210_s1 + $0x730] sm:$0xff]  }
  0xed   : > { %10067 = vmatpush3.bf16.msra.mxu1 %v10687_v47 }
  0xee   : > { %10068 = vmatprep.subr.bf16.mxu1 %v11287_v36 }
  0xef   : > { %9350 = vmatpush3.bf16.msra.mxu0 %v10707_v48 }
  0xf0   : > { %9351 = vmatprep.subr.bf16.mxu0 %v10709_v49 }
  0xf1   : > { %10069 = vmatpush3.bf16.msra.mxu1 %v10690_v50  ;;  %v10738_v50 = vld [vmem:[%s13210_s1 + $0x5f0] sm:$0xff]  }
  0xf2   : > { %10070 = vmatprep.subr.bf16.mxu1 %v11287_v36 }
  0xf3   : > { %9352 = vmatpush3.bf16.msra.mxu0 %v10710_v51 }
  0xf4   : > { %9353 = vmatprep.subr.bf16.mxu0 %v10712_v52  ;;  %v10758_v52 = vld [vmem:[%s13210_s1 + $0x6f0] sm:$0xff]  }
  0xf5   : > { %10071 = vmatpush3.bf16.msra.mxu1 %v10693_v53  ;;  %v10760_v53 = vld [vmem:[%s13210_s1 + $0x738] sm:$0xff]  }
  0xf6   : > { %10076 = vmatprep.subr.bf16.mxu1 %v11287_v36 }
  0xf7   : > { %9354 = vmatpush3.bf16.msra.mxu0 %v10713_v54 }
  0xf8   : > { %9370 = vmatprep.subr.bf16.mxu0 %v10715_v55  ;;  %10073 = vmatmul.mubr.bf16.vlgmr.msra.gmra.mrb[12].mxu1 %v11645_v11  ;;  %v10741_v55 = vld [vmem:[%s13210_s1 + $0x5f8] sm:$0xff]  }
  0xf9   : > { %10077 = vmatpush3.bf16.msra.mxu1 %v10696_v56  ;;  %10092 = vmatprep.mubr.msk.bf16.mxu1 %vm11288_vm0, %v11287_v36  ;;  %v10761_v56 = vld [vmem:[%s13210_s1 + $0x6f8] sm:$0xff]  }
  0xfa   : > { %2342 = vmatmul.mubr.bf16.vlgmr.msra.gmra.mrb[20].mxu0 %v11551_v44  ;;  %10078 = vmatprep.subr.bf16.mxu1 %v11287_v36 }
  0xfb   : > { %9371 = vmatpush3.bf16.msra.mxu0 %v10716_v57  ;;  %2565 = vmatprep.mubr.bf16.mxu0 %v11538_v34  ;;  %v10763_v57 = vld [vmem:[%s13210_s1 + $0x640] sm:$0xff]  }
  0xfc   : > { %9372 = vmatprep.subr.bf16.mxu0 %v10718_v58  ;;  %v10744_v58 = vld [vmem:[%s13210_s1 + $0x500] sm:$0xff]  }
  0xfd   : > { %10079 = vmatpush3.bf16.msra.mxu1 %v10699_v59  ;;  %v10764_v59 = vld [vmem:[%s13210_s1 + $0x600] sm:$0xff]  }
  0xfe   : > { %10080 = vmatprep.subr.bf16.mxu1 %v11287_v36 }
  0xff   : > { %9373 = vmatpush3.bf16.msra.mxu0 %v10719_v60  ;;  %v10766_v60 = vld [vmem:[%s13210_s1 + $0x648] sm:$0xff]  }
 0x100   : > { %9374 = vmatprep.subr.bf16.mxu0 %v10721_v61  ;;  %v10747_v61 = vld [vmem:[%s13210_s1 + $0x508] sm:$0xff]  }
 0x101   : > { %10081 = vmatpush3.bf16.msra.mxu1 %v10702_v63  ;;  %v10767_v63 = vld [vmem:[%s13210_s1 + $0x608] sm:$0xff]  }
 0x102   : > { %10082 = vmatprep.subr.bf16.mxu1 %v11287_v36 }
 0x103   : > { %9375 = vmatpush3.bf16.msra.mxu0 %v10722_v0  ;;  %v10769_v0 = vld [vmem:[%s13210_s1 + $0x650] sm:$0xff]  }
 0x104   : > { %9376 = vmatprep.subr.bf16.mxu0 %v10724_v1  ;;  %v10750_v1 = vld [vmem:[%s13210_s1 + $0x510] sm:$0xff]  }
 0x105   : > { %10083 = vmatpush3.bf16.msra.mxu1 %v10705_v2  ;;  %v10770_v2 = vld [vmem:[%s13210_s1 + $0x610] sm:$0xff]  }
 0x106   : > { %10084 = vmatprep.subr.bf16.mxu1 %v11287_v36 }
 0x107   : > { %9377 = vmatpush3.bf16.msra.mxu0 %v10725_v3  ;;  %v10772_v3 = vld [vmem:[%s13210_s1 + $0x658] sm:$0xff]  }
 0x108   : > { %9378 = vmatprep.subr.bf16.mxu0 %v10727_v4  ;;  %v10753_v4 = vld [vmem:[%s13210_s1 + $0x518] sm:$0xff]  }
 0x109   : > { %10085 = vmatpush3.bf16.msra.mxu1 %v10708_v5  ;;  %v10773_v5 = vld [vmem:[%s13210_s1 + $0x618] sm:$0xff]  }
 0x10a   : > { %10086 = vmatprep.subr.bf16.mxu1 %v11287_v36 }
 0x10b   : > { %9379 = vmatpush3.bf16.msra.mxu0 %v10728_v6  ;;  %v10775_v6 = vld [vmem:[%s13210_s1 + $0x660] sm:$0xff]  }
 0x10c   : > { %9380 = vmatprep.subr.bf16.mxu0 %v10730_v7  ;;  %v10756_v7 = vld [vmem:[%s13210_s1 + $0x520] sm:$0xff]  }
 0x10d   : > { %10087 = vmatpush3.bf16.msra.mxu1 %v10711_v8  ;;  %v10776_v8 = vld [vmem:[%s13210_s1 + $0x620] sm:$0xff]  }
 0x10e   : > { %10088 = vmatprep.subr.bf16.mxu1 %v11287_v36 }
 0x10f   : > { %9381 = vmatpush3.bf16.msra.mxu0 %v10731_v9  ;;  %v10778_v9 = vld [vmem:[%s13210_s1 + $0x668] sm:$0xff]  }
 0x110   : > { %9382 = vmatprep.subr.bf16.mxu0 %v10733_v10  ;;  %v10759_v10 = vld [vmem:[%s13210_s1 + $0x528] sm:$0xff]  }
 0x111   : > { %10089 = vmatpush3.bf16.msra.mxu1 %v10714_v12  ;;  %v10779_v12 = vld [vmem:[%s13210_s1 + $0x628] sm:$0xff]  }
 0x112   : > { %10090 = vmatprep.subr.bf16.mxu1 %v11287_v36 }
 0x113   : > { %9383 = vmatpush3.bf16.msra.mxu0 %v10734_v13  ;;  %v10781_v13 = vld [vmem:[%s13210_s1 + $0x670] sm:$0xff]  }
 0x114   : > { %9384 = vmatprep.subr.bf16.mxu0 %v10736_v14 }
 0x115   : > { %10091 = vmatpush3.bf16.msra.mxu1 %v10717_v15  ;;  %v10762_v15 = vld [vmem:[%s13210_s1 + $0x530] sm:$0xff]  }
 0x116   : > { %10096 = vmatprep.subr.bf16.mxu1 %v11287_v36 }
 0x117   : > { %9385 = vmatpush3.bf16.msra.mxu0 %v10737_v16 }
 0x118   : > { %9401 = vmatprep.subr.bf16.mxu0 %v10739_v17  ;;  %10093 = vmatmul.mubr.bf16.vlgmr.msra.gmra.mrb[12].mxu1 %v11611_v62  ;;  %v10782_v17 = vld [vmem:[%s13210_s1 + $0x630] sm:$0xff]  }
 0x119   : > { %10097 = vmatpush3.bf16.msra.mxu1 %v10720_v18  ;;  %10112 = vmatprep.mubr.msk.bf16.mxu1 %vm11288_vm0, %v11287_v36 }
 0x11a   : > { %2566 = vmatmul.mubr.bf16.vlgmr.msra.gmra.mrb[24].mxu0 %v11540_v35  ;;  %10098 = vmatprep.subr.bf16.mxu1 %v11287_v36 }
 0x11b   : > { %9402 = vmatpush3.bf16.msra.mxu0 %v10740_v19  ;;  %2887 = vmatprep.mubr.bf16.mxu0 %v11549_v43 }
 0x11c   : > { %9403 = vmatprep.subr.bf16.mxu0 %v10742_v20  ;;  %v10784_v20 = vld [vmem:[%s13210_s1 + $0x678] sm:$0xff]  }
 0x11d   : > { %10099 = vmatpush3.bf16.msra.mxu1 %v10723_v21 }
 0x11e   : > { %10100 = vmatprep.subr.bf16.mxu1 %v11287_v36 }
 0x11f   : > { %9404 = vmatpush3.bf16.msra.mxu0 %v10743_v22  ;;  %v10765_v22 = vld [vmem:[%s13210_s1 + $0x538] sm:$0xff]  }
 0x120   : > { %9405 = vmatprep.subr.bf16.mxu0 %v10745_v23  ;;  %v10785_v23 = vld [vmem:[%s13210_s1 + $0x638] sm:$0xff]  }
 0x121   : > { %10101 = vmatpush3.bf16.msra.mxu1 %v10726_v24  ;;  %v10787_v24 = vld [vmem:[%s13210_s1 + $0x880] sm:$0xff]  }
 0x122   : > { %10102 = vmatprep.subr.bf16.mxu1 %v11287_v36 }
 0x123   : > { %9406 = vmatpush3.bf16.msra.mxu0 %v10746_v25  ;;  %v10768_v25 = vld [vmem:[%s13210_s1 + $0x740] sm:$0xff]  }
 0x124   : > { %9407 = vmatprep.subr.bf16.mxu0 %v10748_v26  ;;  %v10788_v26 = vld [vmem:[%s13210_s1 + $0x840] sm:$0xff]  }
 0x125   : > { %10103 = vmatpush3.bf16.msra.mxu1 %v10729_v27  ;;  %v10790_v27 = vld [vmem:[%s13210_s1 + $0x888] sm:$0xff]  }
 0x126   : > { %10104 = vmatprep.subr.bf16.mxu1 %v11287_v36 }
 0x127   : > { %9408 = vmatpush3.bf16.msra.mxu0 %v10749_v28  ;;  %v10771_v28 = vld [vmem:[%s13210_s1 + $0x748] sm:$0xff]  }
 0x128   : > { %9409 = vmatprep.subr.bf16.mxu0 %v10751_v29  ;;  %v10791_v29 = vld [vmem:[%s13210_s1 + $0x848] sm:$0xff]  }
 0x129   : > { %10105 = vmatpush3.bf16.msra.mxu1 %v10732_v30  ;;  %v10793_v30 = vld [vmem:[%s13210_s1 + $0x890] sm:$0xff]  }
 0x12a   : > { %10106 = vmatprep.subr.bf16.mxu1 %v11287_v36 }
 0x12b   : > { %9410 = vmatpush3.bf16.msra.mxu0 %v10752_v33  ;;  %v9169_v45 = vpop.f32.mrb[0].mxu1  ;;  %v10796_v33 = vld [vmem:[%s13210_s1 + $0x898] sm:$0xff]  }
 0x12c   : > { %v9200_v31 = vpop.f32.mrb[0].mxu0  ;;  %9411 = vmatprep.subr.bf16.mxu0 %v10754_v38  ;;  %v9170_v47 = vpop.f32.mrb[1].mxu1  ;;  %v10797_v38 = vld [vmem:[%s13210_s1 + $0x858] sm:$0xff]  }
 0x12d   : > { %v9201_v32 = vpop.f32.mrb[1].mxu0  ;;  %v9171_v48 = vadd.f32 %v9170_v47, %v9169_v45  ;;  %v9172_v49 = vpop.f32.mrb[2].mxu1  ;;  %10107 = vmatpush3.bf16.msra.mxu1 %v10735_v41  ;;  %v10800_v41 = vld [vmem:[%s13210_s1 + $0x860] sm:$0xff]   ;;  %v10783_v45 = vld [vmem:[%s13210_s1 + $0x768] sm:$0xff]  }
 0x12e   : > { %v9202_v37 = vadd.f32 %v9201_v32, %v9200_v31  ;;  %v9203_v39 = vpop.f32.mrb[2].mxu0  ;;  %v9173_v51 = vpop.f32.mrb[3].mxu1  ;;  %10108 = vmatprep.subr.bf16.mxu1 %v11287_v36  ;;  %v10774_v31 = vld [vmem:[%s13210_s1 + $0x750] sm:$0xff]  }
 0x12f   : > { %v9204_v40 = vpop.f32.mrb[3].mxu0  ;;  %9412 = vmatpush3.bf16.msra.mxu0 %v10755_v42  ;;  %v10794_v32 = vld [vmem:[%s13210_s1 + $0x850] sm:$0xff]   ;;  %v10799_v39 = vld [vmem:[%s13210_s1 + $0x8a0] sm:$0xff]   ;;  %v10802_v42 = vld [vmem:[%s13210_s1 + $0x8a8] sm:$0xff]  }
 0x130   : > { %9413 = vmatprep.subr.bf16.mxu0 %v10757_v46  ;;  %v12147_v54 = vadd.f32 %v9202_v37, %v9171_v48  ;;  %v10777_v37 = vld [vmem:[%s13210_s1 + $0x758] sm:$0xff]   ;;  %v10780_v40 = vld [vmem:[%s13210_s1 + $0x760] sm:$0xff]   ;;  %v10803_v46 = vld [vmem:[%s13210_s1 + $0x868] sm:$0xff]  }
 0x131   : > { %10109 = vmatpush3.bf16.msra.mxu1 %v10738_v50  ;;  %v10805_v48 = vld [vmem:[%s13210_s1 + $0x8b0] sm:$0xff]  }
 0x132   : > { %10110 = vmatprep.subr.bf16.mxu1 %v11287_v36  ;;  %v10786_v51 = vld [vmem:[%s13210_s1 + $0x770] sm:$0xff]  }
 0x133   : > { %9414 = vmatpush3.bf16.msra.mxu0 %v10758_v52 }
 0x134   : > { %9415 = vmatprep.subr.bf16.mxu0 %v10760_v53  ;;  %v10806_v53 = vld [vmem:[%s13210_s1 + $0x870] sm:$0xff]  }
 0x135   : > { %10111 = vmatpush3.bf16.msra.mxu1 %v10741_v55 }
 0x136   : > { %10116 = vmatprep.subr.bf16.mxu1 %v11287_v36 }
 0x137   : > { %9416 = vmatpush3.bf16.msra.mxu0 %v10761_v56 }
 0x138   : > { %9432 = vmatprep.subr.bf16.mxu0 %v10763_v57  ;;  %10113 = vmatmul.mubr.bf16.vlgmr.msra.gmra.mrb[16].mxu1 %v11645_v11 }
 0x139   : > { %10117 = vmatpush3.bf16.msra.mxu1 %v10744_v58  ;;  %10132 = vmatprep.mubr.msk.bf16.mxu1 %vm11288_vm0, %v11287_v36 }
 0x13a   : > { %2888 = vmatmul.mubr.bf16.vlgmr.msra.gmra.mrb[28].mxu0 %v11551_v44  ;;  %10118 = vmatprep.subr.bf16.mxu1 %v11287_v36 }
 0x13b   : > { %9433 = vmatpush3.bf16.msra.mxu0 %v10764_v59  ;;  %3111 = vmatprep.mubr.bf16.mxu0 %v11538_v34  ;;  %v10808_v59 = vld [vmem:[%s13210_s1 + $0x8b8] sm:$0xff]  }
 0x13c   : > { %9434 = vmatprep.subr.bf16.mxu0 %v10766_v60 }
 0x13d   : > { %10119 = vmatpush3.bf16.msra.mxu1 %v10747_v61 }
 0x13e   : > { %10120 = vmatprep.subr.bf16.mxu1 %v11287_v36 }
 0x13f   : > { %9435 = vmatpush3.bf16.msra.mxu0 %v10767_v63  ;;  %v10789_v63 = vld [vmem:[%s13210_s1 + $0x778] sm:$0xff]  }
 0x140   : > { %9436 = vmatprep.subr.bf16.mxu0 %v10769_v0  ;;  %v10809_v0 = vld [vmem:[%s13210_s1 + $0x878] sm:$0xff]  }
 0x141   : > { %10121 = vmatpush3.bf16.msra.mxu1 %v10750_v1  ;;  %v10811_v1 = vld [vmem:[%s13210_s1 + $0x7c0] sm:$0xff]  }
 0x142   : > { %10122 = vmatprep.subr.bf16.mxu1 %v11287_v36 }
 0x143   : > { %9437 = vmatpush3.bf16.msra.mxu0 %v10770_v2  ;;  %v10792_v2 = vld [vmem:[%s13210_s1 + $0x680] sm:$0xff]  }
 0x144   : > { %9438 = vmatprep.subr.bf16.mxu0 %v10772_v3  ;;  %v10812_v3 = vld [vmem:[%s13210_s1 + $0x780] sm:$0xff]  }
 0x145   : > { %10123 = vmatpush3.bf16.msra.mxu1 %v10753_v4  ;;  %v10814_v4 = vld [vmem:[%s13210_s1 + $0x7c8] sm:$0xff]  }
 0x146   : > { %10124 = vmatprep.subr.bf16.mxu1 %v11287_v36 }
 0x147   : > { %9439 = vmatpush3.bf16.msra.mxu0 %v10773_v5  ;;  %v10795_v5 = vld [vmem:[%s13210_s1 + $0x688] sm:$0xff]  }
 0x148   : > { %9440 = vmatprep.subr.bf16.mxu0 %v10775_v6  ;;  %v10815_v6 = vld [vmem:[%s13210_s1 + $0x788] sm:$0xff]  }
 0x149   : > { %10125 = vmatpush3.bf16.msra.mxu1 %v10756_v7  ;;  %v10817_v7 = vld [vmem:[%s13210_s1 + $0x7d0] sm:$0xff]  }
 0x14a   : > { %10126 = vmatprep.subr.bf16.mxu1 %v11287_v36 }
 0x14b   : > { %9441 = vmatpush3.bf16.msra.mxu0 %v10776_v8  ;;  %v10798_v8 = vld [vmem:[%s13210_s1 + $0x690] sm:$0xff]  }
 0x14c   : > { %9442 = vmatprep.subr.bf16.mxu0 %v10778_v9  ;;  %v10818_v9 = vld [vmem:[%s13210_s1 + $0x790] sm:$0xff]  }
 0x14d   : > { %v9231_v14 = vpop.f32.mrb[4].mxu0  ;;  %10127 = vmatpush3.bf16.msra.mxu1 %v10759_v10  ;;  %v10820_v10 = vld [vmem:[%s13210_s1 + $0x7d8] sm:$0xff]  }
 0x14e   : > { %v9232_v16 = vpop.f32.mrb[5].mxu0  ;;  %10128 = vmatprep.subr.bf16.mxu1 %v11287_v36 }
 0x14f   : > { %9443 = vmatpush3.bf16.msra.mxu0 %v10779_v12  ;;  %v12231_v18 = vadd.f32 %v9232_v16, %v9231_v14  ;;  %v9234_v19 = vpop.f32.mrb[6].mxu0  ;;  %v10801_v12 = vld [vmem:[%s13210_s1 + $0x698] sm:$0xff]   ;;  %v10823_v14 = vld [vmem:[%s13210_s1 + $0x7e0] sm:$0xff]  }
 0x150   : > { %9444 = vmatprep.subr.bf16.mxu0 %v10781_v13  ;;  %v9235_v21 = vpop.f32.mrb[7].mxu0  ;;  %v10821_v13 = vld [vmem:[%s13210_s1 + $0x798] sm:$0xff]   ;;  %v10824_v16 = vld [vmem:[%s13210_s1 + $0x7a0] sm:$0xff]   ;;  %v10827_v19 = vld [vmem:[%s13210_s1 + $0x7a8] sm:$0xff]  }
 0x151   : > { %10129 = vmatpush3.bf16.msra.mxu1 %v10762_v15  ;;  %v10804_v15 = vld [vmem:[%s13210_s1 + $0x6a0] sm:$0xff]  }
 0x152   : > { %10130 = vmatprep.subr.bf16.mxu1 %v11287_v36 }
 0x153   : > { %9445 = vmatpush3.bf16.msra.mxu0 %v10782_v17  ;;  %v10826_v17 = vld [vmem:[%s13210_s1 + $0x7e8] sm:$0xff]  }
 0x154   : > { %9446 = vmatprep.subr.bf16.mxu0 %v10784_v20  ;;  %v10829_v20 = vld [vmem:[%s13210_s1 + $0x7f0] sm:$0xff]  }
 0x155   : > { %10131 = vmatpush3.bf16.msra.mxu1 %v10765_v22  ;;  %v10810_v22 = vld [vmem:[%s13210_s1 + $0x6b0] sm:$0xff]  }
 0x156   : > { %10136 = vmatprep.subr.bf16.mxu1 %v11287_v36 }
 0x157   : > { %9447 = vmatpush3.bf16.msra.mxu0 %v10785_v23 }
 0x158   : > { %9463 = vmatprep.subr.bf16.mxu0 %v10787_v24  ;;  %10133 = vmatmul.mubr.bf16.vlgmr.msra.gmra.mrb[16].mxu1 %v11611_v62  ;;  %v10830_v24 = vld [vmem:[%s13210_s1 + $0x7b0] sm:$0xff]  }
 0x159   : > { %10137 = vmatpush3.bf16.msra.mxu1 %v10768_v25  ;;  %10152 = vmatprep.mubr.msk.bf16.mxu1 %vm11288_vm0, %v11287_v36 }
 0x15a   : > { %3112 = vmatmul.mubr.bf16.vlgmr.msra.gmra.mrb[32].mxu0 %v11540_v35  ;;  %10138 = vmatprep.subr.bf16.mxu1 %v11287_v36 }
 0x15b   : > { %9464 = vmatpush3.bf16.msra.mxu0 %v10788_v26  ;;  %3433 = vmatprep.mubr.bf16.mxu0 %v11549_v43 }
 0x15c   : > { %9465 = vmatprep.subr.bf16.mxu0 %v10790_v27  ;;  %v10832_v27 = vld [vmem:[%s13210_s1 + $0x7f8] sm:$0xff]  }
 0x15d   : > { %10139 = vmatpush3.bf16.msra.mxu1 %v10771_v28 }
 0x15e   : > { %10140 = vmatprep.subr.bf16.mxu1 %v11287_v36 }
 0x15f   : > { %9466 = vmatpush3.bf16.msra.mxu0 %v10791_v29  ;;  %v10813_v29 = vld [vmem:[%s13210_s1 + $0x6b8] sm:$0xff]  }
 0x160   : > { %9467 = vmatprep.subr.bf16.mxu0 %v10793_v30  ;;  %v10833_v30 = vld [vmem:[%s13210_s1 + $0x7b8] sm:$0xff]  }
 0x161   : > { %10141 = vmatpush3.bf16.msra.mxu1 %v10774_v31  ;;  %v10835_v31 = vld [vmem:[%s13210_s1 + $0xa00] sm:$0xff]  }
 0x162   : > { %10142 = vmatprep.subr.bf16.mxu1 %v11287_v36 }
 0x163   : > { %9468 = vmatpush3.bf16.msra.mxu0 %v10794_v32  ;;  %v10816_v32 = vld [vmem:[%s13210_s1 + $0x8c0] sm:$0xff]  }
 0x164   : > { %9469 = vmatprep.subr.bf16.mxu0 %v10796_v33  ;;  %v10836_v33 = vld [vmem:[%s13210_s1 + $0x9c0] sm:$0xff]  }
 0x165   : > { %10143 = vmatpush3.bf16.msra.mxu1 %v10777_v37  ;;  %v10838_v37 = vld [vmem:[%s13210_s1 + $0xa08] sm:$0xff]  }
 0x166   : > { %10144 = vmatprep.subr.bf16.mxu1 %v11287_v36 }
 0x167   : > { %9470 = vmatpush3.bf16.msra.mxu0 %v10797_v38  ;;  %v10819_v38 = vld [vmem:[%s13210_s1 + $0x8c8] sm:$0xff]  }
 0x168   : > { %9471 = vmatprep.subr.bf16.mxu0 %v10799_v39  ;;  %v10839_v39 = vld [vmem:[%s13210_s1 + $0x9c8] sm:$0xff]  }
 0x169   : > { %10145 = vmatpush3.bf16.msra.mxu1 %v10780_v40  ;;  %v10841_v40 = vld [vmem:[%s13210_s1 + $0xa10] sm:$0xff]  }
 0x16a   : > { %10146 = vmatprep.subr.bf16.mxu1 %v11287_v36 }
 0x16b   : > { %9472 = vmatpush3.bf16.msra.mxu0 %v10800_v41  ;;  %v969_v47 = vpop.f32.mrb[4].mxu1  ;;  %v10822_v41 = vld [vmem:[%s13210_s1 + $0x8d0] sm:$0xff]  }
 0x16c   : > { %9473 = vmatprep.subr.bf16.mxu0 %v10802_v42  ;;  %v12312_v49 = vadd.f32 %v12147_v54, %v969_v47  ;;  %v10014_v50 = vpop.f32.mrb[5].mxu1  ;;  %v10842_v42 = vld [vmem:[%s13210_s1 + $0x9d0] sm:$0xff]   ;;  %v10845_v47 = vld [vmem:[%s13210_s1 + $0x9d8] sm:$0xff]  }
 0x16d   : > { %v9262_v52 = vpop.f32.mrb[8].mxu0  ;;  %v972_v55 = vpop.f32.mrb[6].mxu1  ;;  %10147 = vmatpush3.bf16.msra.mxu1 %v10783_v45  ;;  %v10844_v45 = vld [vmem:[%s13210_s1 + $0xa18] sm:$0xff]   ;;  %v10828_v50 = vld [vmem:[%s13210_s1 + $0x8e0] sm:$0xff]  }
 0x16e   : > { %v9263_v56 = vpop.f32.mrb[9].mxu0  ;;  %v10015_v57 = vpop.f32.mrb[7].mxu1  ;;  %10148 = vmatprep.subr.bf16.mxu1 %v11287_v36  ;;  %v10851_v55 = vld [vmem:[%s13210_s1 + $0x9e8] sm:$0xff]  }
 0x16f   : > { %v9264_v58 = vadd.f32 %v9263_v56, %v9262_v52  ;;  %9474 = vmatpush3.bf16.msra.mxu0 %v10803_v46  ;;  %v9265_v54 = vpop.f32.mrb[10].mxu0  ;;  %v10825_v46 = vld [vmem:[%s13210_s1 + $0x8d8] sm:$0xff]   ;;  %v10850_v52 = vld [vmem:[%s13210_s1 + $0xa28] sm:$0xff]   ;;  %v10853_v57 = vld [vmem:[%s13210_s1 + $0xa30] sm:$0xff]  }
 0x170   : > { %9475 = vmatprep.subr.bf16.mxu0 %v10805_v48  ;;  %v9266_v60 = vpop.f32.mrb[11].mxu0  ;;  %v10847_v48 = vld [vmem:[%s13210_s1 + $0xa20] sm:$0xff]  }
 0x171   : > { %v12325_v61 = vadd.f32 %v9264_v58, %v12231_v18  ;;  %10149 = vmatpush3.bf16.msra.mxu1 %v10786_v51  ;;  %v10807_v18 = vld [vmem:[%s13210_s1 + $0x6a8] sm:$0xff]   ;;  %v10848_v51 = vld [vmem:[%s13210_s1 + $0x9e0] sm:$0xff]  }
 0x172   : > { %10150 = vmatprep.subr.bf16.mxu1 %v11287_v36 }
 0x173   : > { %9476 = vmatpush3.bf16.msra.mxu0 %v10806_v53  ;;  %v10831_v53 = vld [vmem:[%s13210_s1 + $0x8e8] sm:$0xff]  }
 0x174   : > { %9477 = vmatprep.subr.bf16.mxu0 %v10808_v59 }
 0x175   : > { %10151 = vmatpush3.bf16.msra.mxu1 %v10789_v63  ;;  %v10834_v63 = vld [vmem:[%s13210_s1 + $0x8f0] sm:$0xff]  }
 0x176   : > { %10156 = vmatprep.subr.bf16.mxu1 %v11287_v36 }
 0x177   : > { %9478 = vmatpush3.bf16.msra.mxu0 %v10809_v0 }
 0x178   : > { %9494 = vmatprep.subr.bf16.mxu0 %v10811_v1  ;;  %10153 = vmatmul.mubr.bf16.vlgmr.msra.gmra.mrb[20].mxu1 %v11645_v11 }
 0x179   : > { %10157 = vmatpush3.bf16.msra.mxu1 %v10792_v2  ;;  %10172 = vmatprep.mubr.msk.bf16.mxu1 %vm11288_vm0, %v11287_v36 }
 0x17a   : > { %3434 = vmatmul.mubr.bf16.vlgmr.msra.gmra.mrb[36].mxu0 %v11551_v44  ;;  %10158 = vmatprep.subr.bf16.mxu1 %v11287_v36 }
 0x17b   : > { %9495 = vmatpush3.bf16.msra.mxu0 %v10812_v3  ;;  %3657 = vmatprep.mubr.bf16.mxu0 %v11538_v34 }
 0x17c   : > { %9496 = vmatprep.subr.bf16.mxu0 %v10814_v4 }
 0x17d   : > { %10159 = vmatpush3.bf16.msra.mxu1 %v10795_v5  ;;  %v10837_v5 = vld [vmem:[%s13210_s1 + $0x8f8] sm:$0xff]  }
 0x17e   : > { %10160 = vmatprep.subr.bf16.mxu1 %v11287_v36 }
 0x17f   : > { %9497 = vmatpush3.bf16.msra.mxu0 %v10815_v6  ;;  %v10856_v6 = vld [vmem:[%s13210_s1 + $0xa38] sm:$0xff]  }
 0x180   : > { %9498 = vmatprep.subr.bf16.mxu0 %v10817_v7 }
 0x181   : > { %10161 = vmatpush3.bf16.msra.mxu1 %v10798_v8  ;;  %v10857_v8 = vld [vmem:[%s13210_s1 + $0x9f8] sm:$0xff]  }
 0x182   : > { %10162 = vmatprep.subr.bf16.mxu1 %v11287_v36 }
 0x183   : > { %9499 = vmatpush3.bf16.msra.mxu0 %v10818_v9 }
 0x184   : > { %9500 = vmatprep.subr.bf16.mxu0 %v10820_v10  ;;  %v10840_v10 = vld [vmem:[%s13210_s1 + $0x800] sm:$0xff]  }
 0x185   : > { %10163 = vmatpush3.bf16.msra.mxu1 %v10801_v12  ;;  %v10859_v12 = vld [vmem:[%s13210_s1 + $0x940] sm:$0xff]  }
 0x186   : > { %10164 = vmatprep.subr.bf16.mxu1 %v11287_v36 }
 0x187   : > { %9501 = vmatpush3.bf16.msra.mxu0 %v10821_v13  ;;  %v10860_v13 = vld [vmem:[%s13210_s1 + $0x900] sm:$0xff]  }
 0x188   : > { %9502 = vmatprep.subr.bf16.mxu0 %v10823_v14  ;;  %v10843_v14 = vld [vmem:[%s13210_s1 + $0x808] sm:$0xff]  }
 0x189   : > { %10165 = vmatpush3.bf16.msra.mxu1 %v10804_v15  ;;  %v10862_v15 = vld [vmem:[%s13210_s1 + $0x948] sm:$0xff]  }
 0x18a   : > { %10166 = vmatprep.subr.bf16.mxu1 %v11287_v36 }
 0x18b   : > { %9503 = vmatpush3.bf16.msra.mxu0 %v10824_v16  ;;  %v10863_v16 = vld [vmem:[%s13210_s1 + $0x908] sm:$0xff]  }
 0x18c   : > { %9504 = vmatprep.subr.bf16.mxu0 %v10826_v17  ;;  %v10865_v17 = vld [vmem:[%s13210_s1 + $0x950] sm:$0xff]  }
 0x18d   : > { %v9293_v21 = vpop.f32.mrb[12].mxu0  ;;  %10167 = vmatpush3.bf16.msra.mxu1 %v10807_v18  ;;  %v10846_v18 = vld [vmem:[%s13210_s1 + $0x810] sm:$0xff]  }
 0x18e   : > { %v9294_v23 = vpop.f32.mrb[13].mxu0  ;;  %10168 = vmatprep.subr.bf16.mxu1 %v11287_v36 }
 0x18f   : > { %9505 = vmatpush3.bf16.msra.mxu0 %v10827_v19  ;;  %v12409_v25 = vadd.f32 %v9294_v23, %v9293_v21  ;;  %v9296_v26 = vpop.f32.mrb[14].mxu0  ;;  %v10866_v19 = vld [vmem:[%s13210_s1 + $0x910] sm:$0xff]   ;;  %v10849_v21 = vld [vmem:[%s13210_s1 + $0x818] sm:$0xff]   ;;  %v10871_v23 = vld [vmem:[%s13210_s1 + $0x960] sm:$0xff]  }
 0x190   : > { %9506 = vmatprep.subr.bf16.mxu0 %v10829_v20  ;;  %v9297_v28 = vpop.f32.mrb[15].mxu0  ;;  %v10868_v20 = vld [vmem:[%s13210_s1 + $0x958] sm:$0xff]   ;;  %v10874_v26 = vld [vmem:[%s13210_s1 + $0x968] sm:$0xff]  }
 0x191   : > { %10169 = vmatpush3.bf16.msra.mxu1 %v10810_v22  ;;  %v10869_v22 = vld [vmem:[%s13210_s1 + $0x918] sm:$0xff]   ;;  %v10875_v28 = vld [vmem:[%s13210_s1 + $0x928] sm:$0xff]  }
 0x192   : > { %10170 = vmatprep.subr.bf16.mxu1 %v11287_v36 }
 0x193   : > { %9507 = vmatpush3.bf16.msra.mxu0 %v10830_v24  ;;  %v10852_v24 = vld [vmem:[%s13210_s1 + $0x820] sm:$0xff]  }
 0x194   : > { %9508 = vmatprep.subr.bf16.mxu0 %v10832_v27  ;;  %v10855_v27 = vld [vmem:[%s13210_s1 + $0x828] sm:$0xff]  }
 0x195   : > { %10171 = vmatpush3.bf16.msra.mxu1 %v10813_v29  ;;  %v10877_v29 = vld [vmem:[%s13210_s1 + $0x970] sm:$0xff]  }
 0x196   : > { %10176 = vmatprep.subr.bf16.mxu1 %v11287_v36 }
 0x197   : > { %9509 = vmatpush3.bf16.msra.mxu0 %v10833_v30 }
 0x198   : > { %9525 = vmatprep.subr.bf16.mxu0 %v10835_v31  ;;  %10173 = vmatmul.mubr.bf16.vlgmr.msra.gmra.mrb[20].mxu1 %v11611_v62  ;;  %v10858_v31 = vld [vmem:[%s13210_s1 + $0x830] sm:$0xff]  }
 0x199   : > { %10177 = vmatpush3.bf16.msra.mxu1 %v10816_v32  ;;  %10192 = vmatprep.mubr.msk.bf16.mxu1 %vm11288_vm0, %v11287_v36 }
 0x19a   : > { %3658 = vmatmul.mubr.bf16.vlgmr.msra.gmra.mrb[40].mxu0 %v11540_v35  ;;  %10178 = vmatprep.subr.bf16.mxu1 %v11287_v36 }
 0x19b   : > { %9526 = vmatpush3.bf16.msra.mxu0 %v10836_v33  ;;  %3979 = vmatprep.mubr.bf16.mxu0 %v11549_v43  ;;  %v10878_v33 = vld [vmem:[%s13210_s1 + $0x930] sm:$0xff]  }
 0x19c   : > { %9527 = vmatprep.subr.bf16.mxu0 %v10838_v37 }
 0x19d   : > { %10179 = vmatpush3.bf16.msra.mxu1 %v10819_v38 }
 0x19e   : > { %10180 = vmatprep.subr.bf16.mxu1 %v11287_v36 }
 0x19f   : > { %9528 = vmatpush3.bf16.msra.mxu0 %v10839_v39  ;;  %v10861_v39 = vld [vmem:[%s13210_s1 + $0x838] sm:$0xff]  }
 0x1a0   : > { %9529 = vmatprep.subr.bf16.mxu0 %v10841_v40  ;;  %v10880_v40 = vld [vmem:[%s13210_s1 + $0x978] sm:$0xff]  }
 0x1a1   : > { %10181 = vmatpush3.bf16.msra.mxu1 %v10822_v41 }
 0x1a2   : > { %10182 = vmatprep.subr.bf16.mxu1 %v11287_v36 }
 0x1a3   : > { %9530 = vmatpush3.bf16.msra.mxu0 %v10842_v42  ;;  %v10881_v42 = vld [vmem:[%s13210_s1 + $0x938] sm:$0xff]  }
 0x1a4   : > { %9531 = vmatprep.subr.bf16.mxu0 %v10844_v45  ;;  %v10883_v45 = vld [vmem:[%s13210_s1 + $0xb80] sm:$0xff]  }
 0x1a5   : > { %10183 = vmatpush3.bf16.msra.mxu1 %v10825_v46  ;;  %v10864_v46 = vld [vmem:[%s13210_s1 + $0xa40] sm:$0xff]  }
 0x1a6   : > { %10184 = vmatprep.subr.bf16.mxu1 %v11287_v36 }
 0x1a7   : > { %9532 = vmatpush3.bf16.msra.mxu0 %v10845_v47  ;;  %v10884_v47 = vld [vmem:[%s13210_s1 + $0xb40] sm:$0xff]  }
 0x1a8   : > { %9533 = vmatprep.subr.bf16.mxu0 %v10847_v48  ;;  %v10886_v48 = vld [vmem:[%s13210_s1 + $0xb88] sm:$0xff]  }
 0x1a9   : > { %10185 = vmatpush3.bf16.msra.mxu1 %v10828_v50  ;;  %v10867_v50 = vld [vmem:[%s13210_s1 + $0xa48] sm:$0xff]  }
 0x1aa   : > { %10186 = vmatprep.subr.bf16.mxu1 %v11287_v36 }
 0x1ab   : > { %9534 = vmatpush3.bf16.msra.mxu0 %v10848_v51  ;;  %v1515_v56 = vpop.f32.mrb[8].mxu1  ;;  %v10887_v51 = vld [vmem:[%s13210_s1 + $0xb48] sm:$0xff]  }
 0x1ac   : > { %9535 = vmatprep.subr.bf16.mxu0 %v10850_v52  ;;  %v12490_v58 = vadd.f32 %v12325_v61, %v1515_v56  ;;  %v10054_v54 = vpop.f32.mrb[9].mxu1  ;;  %v10854_v61 = vld [vmem:[%s13210_s1 + $0x9f0] sm:$0xff]   ;;  %v10892_v56 = vld [vmem:[%s13210_s1 + $0xb98] sm:$0xff]  }
 0x1ad   : > { %v9324_v59 = vpop.f32.mrb[16].mxu0  ;;  %v1518_v60 = vpop.f32.mrb[10].mxu1  ;;  %10187 = vmatpush3.bf16.msra.mxu1 %v10831_v53  ;;  %v10889_v52 = vld [vmem:[%s13210_s1 + $0xb90] sm:$0xff]   ;;  %v10893_v54 = vld [vmem:[%s13210_s1 + $0xb58] sm:$0xff]  }
 0x1ae   : > { %v9325_v0 = vpop.f32.mrb[17].mxu0  ;;  %v4797_v1 = vmax.f32 %v12312_v49, %v12490_v58  ;;  %v10055_v2 = vpop.f32.mrb[11].mxu1  ;;  %10188 = vmatprep.subr.bf16.mxu1 %v11287_v36  ;;  %v10870_v53 = vld [vmem:[%s13210_s1 + $0xa50] sm:$0xff]   ;;  %v10896_v60 = vld [vmem:[%s13210_s1 + $0xb60] sm:$0xff]   ;;  %v10935_v58 = vld [vmem:[%s13210_s1 + $0xb18] sm:$0xff]  }
 0x1af   : > { %v9326_v3 = vadd.f32 %v9325_v0, %v9324_v59  ;;  %9536 = vmatpush3.bf16.msra.mxu0 %v10851_v55  ;;  %v9327_v4 = vpop.f32.mrb[18].mxu0  ;;  %v10890_v55 = vld [vmem:[%s13210_s1 + $0xb50] sm:$0xff]   ;;  %v10876_v59 = vld [vmem:[%s13210_s1 + $0xa60] sm:$0xff]   ;;  %v10879_v0 = vld [vmem:[%s13210_s1 + $0xa68] sm:$0xff]  }
 0x1b0   : > { %9537 = vmatprep.subr.bf16.mxu0 %v10853_v57  ;;  %v9328_v7 = vpop.f32.mrb[19].mxu0  ;;  %v10873_v57 = vld [vmem:[%s13210_s1 + $0xa58] sm:$0xff]   ;;  %v10899_v2 = vld [vmem:[%s13210_s1 + $0xb68] sm:$0xff]   ;;  %v10901_v4 = vld [vmem:[%s13210_s1 + $0xbb0] sm:$0xff]  }
 0x1b1   : > { %v12511_v9 = vadd.f32 %v9326_v3, %v12409_v25  ;;  %10189 = vmatpush3.bf16.msra.mxu1 %v10834_v63  ;;  %v10872_v25 = vld [vmem:[%s13210_s1 + $0x920] sm:$0xff]   ;;  %v10898_v63 = vld [vmem:[%s13210_s1 + $0xba8] sm:$0xff]   ;;  %v10934_v49 = vld [vmem:[%s13210_s1 + $0xb10] sm:$0xff]  }
 0x1b2   : > { %10190 = vmatprep.subr.bf16.mxu1 %v11287_v36 }
 0x1b3   : > { %9538 = vmatpush3.bf16.msra.mxu0 %v10854_v61  ;;  %v10882_v61 = vld [vmem:[%s13210_s1 + $0xa70] sm:$0xff]  }
 0x1b4   : > { %9539 = vmatprep.subr.bf16.mxu0 %v10856_v6 }
 0x1b5   : > { %10191 = vmatpush3.bf16.msra.mxu1 %v10837_v5 }
 0x1b6   : > { %10196 = vmatprep.subr.bf16.mxu1 %v11287_v36 }
 0x1b7   : > { %9540 = vmatpush3.bf16.msra.mxu0 %v10857_v8  ;;  %v10902_v8 = vld [vmem:[%s13210_s1 + $0xb70] sm:$0xff]  }
 0x1b8   : > { %9556 = vmatprep.subr.bf16.mxu0 %v10859_v12  ;;  %10193 = vmatmul.mubr.bf16.vlgmr.msra.gmra.mrb[24].mxu1 %v11645_v11 }
 0x1b9   : > { %10197 = vmatpush3.bf16.msra.mxu1 %v10840_v10  ;;  %10212 = vmatprep.mubr.msk.bf16.mxu1 %vm11288_vm0, %v11287_v36 }
 0x1ba   : > { %3980 = vmatmul.mubr.bf16.vlgmr.msra.gmra.mrb[44].mxu0 %v11551_v44  ;;  %10198 = vmatprep.subr.bf16.mxu1 %v11287_v36 }
 0x1bb   : > { %9557 = vmatpush3.bf16.msra.mxu0 %v10860_v13  ;;  %4203 = vmatprep.mubr.bf16.mxu0 %v11538_v34 }
 0x1bc   : > { %9558 = vmatprep.subr.bf16.mxu0 %v10862_v15 }
 0x1bd   : > { %10199 = vmatpush3.bf16.msra.mxu1 %v10843_v14 }
 0x1be   : > { %10200 = vmatprep.subr.bf16.mxu1 %v11287_v36 }
 0x1bf   : > { %9559 = vmatpush3.bf16.msra.mxu0 %v10863_v16  ;;  %v10904_v16 = vld [vmem:[%s13210_s1 + $0xbb8] sm:$0xff]  }
 0x1c0   : > { %9560 = vmatprep.subr.bf16.mxu0 %v10865_v17 }
 0x1c1   : > { %10201 = vmatpush3.bf16.msra.mxu1 %v10846_v18  ;;  %v10905_v18 = vld [vmem:[%s13210_s1 + $0xb78] sm:$0xff]  }
 0x1c2   : > { %10202 = vmatprep.subr.bf16.mxu1 %v11287_v36 }
 0x1c3   : > { %9561 = vmatpush3.bf16.msra.mxu0 %v10866_v19 }
 0x1c4   : > { %9562 = vmatprep.subr.bf16.mxu0 %v10868_v20  ;;  %v10907_v20 = vld [vmem:[%s13210_s1 + $0xac0] sm:$0xff]  }
 0x1c5   : > { %10203 = vmatpush3.bf16.msra.mxu1 %v10849_v21  ;;  %v10888_v21 = vld [vmem:[%s13210_s1 + $0x980] sm:$0xff]  }
 0x1c6   : > { %10204 = vmatprep.subr.bf16.mxu1 %v11287_v36 }
 0x1c7   : > { %9563 = vmatpush3.bf16.msra.mxu0 %v10869_v22  ;;  %v10908_v22 = vld [vmem:[%s13210_s1 + $0xa80] sm:$0xff]  }
 0x1c8   : > { %9564 = vmatprep.subr.bf16.mxu0 %v10871_v23  ;;  %v10910_v23 = vld [vmem:[%s13210_s1 + $0xac8] sm:$0xff]  }
 0x1c9   : > { %10205 = vmatpush3.bf16.msra.mxu1 %v10852_v24  ;;  %v10891_v24 = vld [vmem:[%s13210_s1 + $0x988] sm:$0xff]  }
 0x1ca   : > { %10206 = vmatprep.subr.bf16.mxu1 %v11287_v36 }
 0x1cb   : > { %9565 = vmatpush3.bf16.msra.mxu0 %v10872_v25  ;;  %v10911_v25 = vld [vmem:[%s13210_s1 + $0xa88] sm:$0xff]  }
 0x1cc   : > { %9566 = vmatprep.subr.bf16.mxu0 %v10874_v26  ;;  %v10913_v26 = vld [vmem:[%s13210_s1 + $0xad0] sm:$0xff]  }
 0x1cd   : > { %v9355_v30 = vpop.f32.mrb[20].mxu0  ;;  %10207 = vmatpush3.bf16.msra.mxu1 %v10855_v27  ;;  %v10894_v27 = vld [vmem:[%s13210_s1 + $0x990] sm:$0xff]  }
 0x1ce   : > { %v9356_v32 = vpop.f32.mrb[21].mxu0  ;;  %10208 = vmatprep.subr.bf16.mxu1 %v11287_v36 }
 0x1cf   : > { %9567 = vmatpush3.bf16.msra.mxu0 %v10875_v28  ;;  %v12589_v37 = vadd.f32 %v9356_v32, %v9355_v30  ;;  %v9358_v38 = vpop.f32.mrb[22].mxu0  ;;  %v10914_v28 = vld [vmem:[%s13210_s1 + $0xa90] sm:$0xff]   ;;  %v10917_v30 = vld [vmem:[%s13210_s1 + $0xa98] sm:$0xff]   ;;  %v10920_v32 = vld [vmem:[%s13210_s1 + $0xaa0] sm:$0xff]  }
 0x1d0   : > { %9568 = vmatprep.subr.bf16.mxu0 %v10877_v29  ;;  %v9359_v41 = vpop.f32.mrb[23].mxu0  ;;  %v10897_v29 = vld [vmem:[%s13210_s1 + $0x998] sm:$0xff]   ;;  %v10923_v38 = vld [vmem:[%s13210_s1 + $0xaa8] sm:$0xff]  }
 0x1d1   : > { %10209 = vmatpush3.bf16.msra.mxu1 %v10858_v31  ;;  %v10900_v31 = vld [vmem:[%s13210_s1 + $0x9a0] sm:$0xff]   ;;  %v10906_v41 = vld [vmem:[%s13210_s1 + $0x9b0] sm:$0xff]  }
 0x1d2   : > { %10210 = vmatprep.subr.bf16.mxu1 %v11287_v36 }
 0x1d3   : > { %9569 = vmatpush3.bf16.msra.mxu0 %v10878_v33  ;;  %v10922_v33 = vld [vmem:[%s13210_s1 + $0xae8] sm:$0xff]  }
 0x1d4   : > { %9570 = vmatprep.subr.bf16.mxu0 %v10880_v40 }
 0x1d5   : > { %10211 = vmatpush3.bf16.msra.mxu1 %v10861_v39  ;;  %v10925_v39 = vld [vmem:[%s13210_s1 + $0xaf0] sm:$0xff]  }
 0x1d6   : > { %10216 = vmatprep.subr.bf16.mxu1 %v11287_v36 }
 0x1d7   : > { %9571 = vmatpush3.bf16.msra.mxu0 %v10881_v42 }
 0x1d8   : > { %9587 = vmatprep.subr.bf16.mxu0 %v10883_v45  ;;  %10213 = vmatmul.mubr.bf16.vlgmr.msra.gmra.mrb[24].mxu1 %v11611_v62  ;;  %v10926_v45 = vld [vmem:[%s13210_s1 + $0xab0] sm:$0xff]  }
 0x1d9   : > { %10217 = vmatpush3.bf16.msra.mxu1 %v10864_v46  ;;  %10232 = vmatprep.mubr.msk.bf16.mxu1 %vm11288_vm0, %v11287_v36 }
 0x1da   : > { %4204 = vmatmul.mubr.bf16.vlgmr.msra.gmra.mrb[48].mxu0 %v11540_v35  ;;  %10218 = vmatprep.subr.bf16.mxu1 %v11287_v36 }
 0x1db   : > { %9588 = vmatpush3.bf16.msra.mxu0 %v10884_v47  ;;  %4525 = vmatprep.mubr.bf16.mxu0 %v11549_v43  ;;  %v10895_v43 = vld [vmem:[%s13210_s1 + $0xba0] sm:$0xff]  }
 0x1dc   : > { %9589 = vmatprep.subr.bf16.mxu0 %v10886_v48  ;;  %v10909_v48 = vld [vmem:[%s13210_s1 + $0x9b8] sm:$0xff]  }
 0x1dd   : > { %10219 = vmatpush3.bf16.msra.mxu1 %v10867_v50  ;;  %v10928_v50 = vld [vmem:[%s13210_s1 + $0xaf8] sm:$0xff]  }
 0x1de   : > { %10220 = vmatprep.subr.bf16.mxu1 %v11287_v36 }
 0x1df   : > { %9590 = vmatpush3.bf16.msra.mxu0 %v10887_v51 }
 0x1e0   : > { %9591 = vmatprep.subr.bf16.mxu0 %v10889_v52  ;;  %v10929_v52 = vld [vmem:[%s13210_s1 + $0xab8] sm:$0xff]  }
 0x1e1   : > { %10221 = vmatpush3.bf16.msra.mxu1 %v10870_v53  ;;  %v10912_v53 = vld [vmem:[%s13210_s1 + $0xbc0] sm:$0xff]  }
 0x1e2   : > { %10222 = vmatprep.subr.bf16.mxu1 %v11287_v36 }
 0x1e3   : > { %9592 = vmatpush3.bf16.msra.mxu0 %v10890_v55  ;;  %v10915_v55 = vld [vmem:[%s13210_s1 + $0xbc8] sm:$0xff]  }
 0x1e4   : > { %9593 = vmatprep.subr.bf16.mxu0 %v10892_v56  ;;  %v10918_v56 = vld [vmem:[%s13210_s1 + $0xbd0] sm:$0xff]  }
 0x1e5   : > { %10223 = vmatpush3.bf16.msra.mxu1 %v10873_v57  ;;  %v10921_v57 = vld [vmem:[%s13210_s1 + $0xbd8] sm:$0xff]  }
 0x1e6   : > { %10224 = vmatprep.subr.bf16.mxu1 %v11287_v36 }
 0x1e7   : > { %9594 = vmatpush3.bf16.msra.mxu0 %v10893_v54  ;;  %v10927_v54 = vld [vmem:[%s13210_s1 + $0xbe8] sm:$0xff]  }
 0x1e8   : > { %9595 = vmatprep.subr.bf16.mxu0 %v10895_v43 }
 0x1e9   : > { %10225 = vmatpush3.bf16.msra.mxu1 %v10876_v59  ;;  %v10930_v59 = vld [vmem:[%s13210_s1 + $0xbf0] sm:$0xff]  }
 0x1ea   : > { %10226 = vmatprep.subr.bf16.mxu1 %v11287_v36 }
 0x1eb   : > { %9596 = vmatpush3.bf16.msra.mxu0 %v10896_v60  ;;  %v2061_v3 = vpop.f32.mrb[12].mxu1 }
 0x1ec   : > { %9597 = vmatprep.subr.bf16.mxu0 %v10898_v63  ;;  %v12673_v5 = vadd.f32 %v12511_v9, %v2061_v3  ;;  %v10094_v6 = vpop.f32.mrb[13].mxu1  ;;  %v10885_v9 = vld [vmem:[%s13210_s1 + $0xa78] sm:$0xff]  }
 0x1ed   : > { %v9386_v7 = vpop.f32.mrb[24].mxu0  ;;  %v2064_v10 = vpop.f32.mrb[14].mxu1  ;;  %10227 = vmatpush3.bf16.msra.mxu1 %v10879_v0 }
 0x1ee   : > { %v9387_v12 = vpop.f32.mrb[25].mxu0  ;;  %v10095_v13 = vpop.f32.mrb[15].mxu1  ;;  %10228 = vmatprep.subr.bf16.mxu1 %v11287_v36  ;;  %v10931_v10 = vld [vmem:[%s13210_s1 + $0xbf8] sm:$0xff]  }
 0x1ef   : > { %v9388_v14 = vadd.f32 %v9387_v12, %v9386_v7  ;;  %9598 = vmatpush3.bf16.msra.mxu0 %v10899_v2  ;;  %v9389_v15 = vpop.f32.mrb[26].mxu0  ;;  %v12812_v2 = vld [vmem:[%s13211_s2] ss:$0 sm:$0xff] }
 0x1f0   : > { %9599 = vmatprep.subr.bf16.mxu0 %v10901_v4  ;;  %v9390_v17 = vpop.f32.mrb[27].mxu0 }
 0x1f1   : > { %v12689_v19 = vadd.f32 %v9388_v14, %v12589_v37  ;;  %10229 = vmatpush3.bf16.msra.mxu1 %v10882_v61  ;;  %v10903_v37 = vld [vmem:[%s13210_s1 + $0x9a8] sm:$0xff]   ;;  %v10938_v17 = vld [vmem:[%s13210_s1 + $0xb30] sm:$0xff]  }
 0x1f2   : > { %10230 = vmatprep.subr.bf16.mxu1 %v11287_v36 }
 0x1f3   : > { %9600 = vmatpush3.bf16.msra.mxu0 %v10902_v8 }
 0x1f4   : > { %9601 = vmatprep.subr.bf16.mxu0 %v10904_v16 }
 0x1f5   : > { %10231 = vmatpush3.bf16.msra.mxu1 %v10885_v9  ;;  %v10933_v9 = vld [vmem:[%s13210_s1 + $0xb08] sm:$0xff]  }
 0x1f6   : > { %10236 = vmatprep.subr.bf16.mxu1 %v11287_v36 }
 0x1f7   : > { %9602 = vmatpush3.bf16.msra.mxu0 %v10905_v18 }
 0x1f8   : > { %9618 = vmatprep.subr.bf16.mxu0 %v10907_v20  ;;  %10233 = vmatmul.mubr.bf16.vlgmr.msra.gmra.mrb[28].mxu1 %v11645_v11 }
 0x1f9   : > { %10237 = vmatpush3.bf16.msra.mxu1 %v10888_v21  ;;  %10252 = vmatprep.mubr.msk.bf16.mxu1 %vm11288_vm0, %v11287_v36  ;;  %v10939_v21 = vld [vmem:[%s13210_s1 + $0xb38] sm:$0xff]  }
 0x1fa   : > { %4526 = vmatmul.mubr.bf16.vlgmr.msra.gmra.mrb[52].mxu0 %v11551_v44  ;;  %10238 = vmatprep.subr.bf16.mxu1 %v11287_v36  ;;  %v10916_v44 = vld [vmem:[%s13210_s1 + $0xad8] sm:$0xff]  }
 0x1fb   : > { %9619 = vmatpush3.bf16.msra.mxu0 %v10908_v22  ;;  %4749 = vmatprep.mubr.bf16.mxu0 %v11538_v34  ;;  %v10919_v34 = vld [vmem:[%s13210_s1 + $0xae0] sm:$0xff]  }
 0x1fc   : > { %9620 = vmatprep.subr.bf16.mxu0 %v10910_v23 }
 0x1fd   : > { %10239 = vmatpush3.bf16.msra.mxu1 %v10891_v24 }
 0x1fe   : > { %10240 = vmatprep.subr.bf16.mxu1 %v11287_v36 }
 0x1ff   : > { %9621 = vmatpush3.bf16.msra.mxu0 %v10911_v25 }
 0x200   : > { %9622 = vmatprep.subr.bf16.mxu0 %v10913_v26 }
 0x201   : > { %10241 = vmatpush3.bf16.msra.mxu1 %v10894_v27 }
 0x202   : > { %10242 = vmatprep.subr.bf16.mxu1 %v11287_v36 }
 0x203   : > { %9623 = vmatpush3.bf16.msra.mxu0 %v10914_v28 }
 0x204   : > { %9624 = vmatprep.subr.bf16.mxu0 %v10916_v44 }
 0x205   : > { %10243 = vmatpush3.bf16.msra.mxu1 %v10897_v29 }
 0x206   : > { %10244 = vmatprep.subr.bf16.mxu1 %v11287_v36 }
 0x207   : > { %9625 = vmatpush3.bf16.msra.mxu0 %v10917_v30 }
 0x208   : > { %9626 = vmatprep.subr.bf16.mxu0 %v10919_v34  ;;  %v10940_v34 = vld [vmem:[#allocation3 + $0x40] sm:$0xff]  }
 0x209   : > { %10245 = vmatpush3.bf16.msra.mxu1 %v10900_v31  ;;  %v10941_v31 = vld [vmem:[#allocation3] sm:$0xff]  }
 0x20a   : > { %10246 = vmatprep.subr.bf16.mxu1 %v11287_v36 }
 0x20b   : > { %9627 = vmatpush3.bf16.msra.mxu0 %v10920_v32  ;;  %v10942_v32 = vld [vmem:[#allocation3 + $0x48] sm:$0xff]  }
 0x20c   : > { %9628 = vmatprep.subr.bf16.mxu0 %v10922_v33 }
 0x20d   : > { %v9417_v40 = vpop.f32.mrb[28].mxu0  ;;  %10247 = vmatpush3.bf16.msra.mxu1 %v10903_v37  ;;  %v10944_v37 = vld [vmem:[#allocation3 + $0xc0] sm:$0xff]  }
 0x20e   : > { %v9418_v42 = vpop.f32.mrb[29].mxu0  ;;  %10248 = vmatprep.subr.bf16.mxu1 %v11287_v36 }
 0x20f   : > { %9629 = vmatpush3.bf16.msra.mxu0 %v10923_v38  ;;  %v9419_v46 = vadd.f32 %v9418_v42, %v9417_v40  ;;  %v9420_v47 = vpop.f32.mrb[30].mxu0  ;;  %v10945_v38 = vld [vmem:[#allocation3 + $0x80] sm:$0xff]   ;;  %v10948_v40 = vld [vmem:[#allocation3 + $0xc8] sm:$0xff]  }
 0x210   : > { %9630 = vmatprep.subr.bf16.mxu0 %v10925_v39  ;;  %v9421_v51 = vpop.f32.mrb[31].mxu0  ;;  %v10949_v42 = vld [vmem:[#allocation3 + $0x88] sm:$0xff]  }
 0x211   : > { %10249 = vmatpush3.bf16.msra.mxu1 %v10906_v41  ;;  %v10946_v41 = vld [vmem:[#allocation3 + $0x50] sm:$0xff]  }
 0x212   : > { %10250 = vmatprep.subr.bf16.mxu1 %v11287_v36 }
 0x213   : > { %9631 = vmatpush3.bf16.msra.mxu0 %v10926_v45  ;;  %v10947_v45 = vld [vmem:[#allocation3 + $0x10] sm:$0xff]  }
 0x214   : > { %9632 = vmatprep.subr.bf16.mxu0 %v10928_v50 }
 0x215   : > { %10251 = vmatpush3.bf16.msra.mxu1 %v10909_v48 }
 0x216   : > { %10256 = vmatprep.subr.bf16.mxu1 %v11287_v36 }
 0x217   : > { %9633 = vmatpush3.bf16.msra.mxu0 %v10929_v52 }
 0x218   : > { %10253 = vmatmul.mubr.bf16.vlgmr.msra.gmra.mrb[28].mxu1 %v11611_v62  ;;  %9649 = vmatprep.subr.bf16.mxu0 %v10944_v37 }
 0x219   : > { %10257 = vmatpush3.bf16.msra.mxu1 %v10912_v53  ;;  %10272 = vmatprep.mubr.msk.bf16.mxu1 %vm11288_vm0, %v11287_v36  ;;  %v10951_v53 = vld [vmem:[#allocation3 + $0x18] sm:$0xff]  }
 0x21a   : > { %4750 = vmatmul.mubr.bf16.vlgmr.msra.gmra.mrb[56].mxu0 %v11540_v35  ;;  %10258 = vmatprep.subr.bf16.mxu1 %v11287_v36  ;;  %v10924_v35 = vld [vmem:[%s13210_s1 + $0xbe0] sm:$0xff]  }
 0x21b   : > { %9650 = vmatpush3.bf16.msra.mxu0 %v10945_v38 }
 0x21c   : > { %9651 = vmatprep.subr.bf16.mxu0 %v10948_v40 }
 0x21d   : > { %10259 = vmatpush3.bf16.msra.mxu1 %v10915_v55  ;;  %v10952_v55 = vld [vmem:[#allocation3 + $0xd0] sm:$0xff]  }
 0x21e   : > { %10260 = vmatprep.subr.bf16.mxu1 %v11287_v36 }
 0x21f   : > { %9652 = vmatpush3.bf16.msra.mxu0 %v10949_v42 }
 0x220   : > { %9653 = vmatprep.subr.bf16.mxu0 %v10952_v55 }
 0x221   : > { %10261 = vmatpush3.bf16.msra.mxu1 %v10918_v56 }
 0x222   : > { %10262 = vmatprep.subr.bf16.mxu1 %v11287_v36 }
 0x225   : > { %10263 = vmatpush3.bf16.msra.mxu1 %v10921_v57  ;;  %v10953_v57 = vld [vmem:[#allocation3 + $0x90] sm:$0xff]  }
 0x226   : > { %10264 = vmatprep.subr.bf16.mxu1 %v11287_v36  ;;  %9654 = vmatpush3.bf16.msra.mxu0 %v10953_v57 }
 0x229   : > { %10265 = vmatpush3.bf16.msra.mxu1 %v10924_v35 }
 0x22a   : > { %10266 = vmatprep.subr.bf16.mxu1 %v11287_v36 }
 0x22b   : > { %v2607_v43 = vpop.f32.mrb[16].mxu1 }
 0x22c   : > { %v10443_v60 = vadd.f32 %v12689_v19, %v2607_v43  ;;  %v10134_v63 = vpop.f32.mrb[17].mxu1 }
 0x22d   : > { %v9448_v0 = vpop.f32.mrb[32].mxu0  ;;  %v2610_v3 = vpop.f32.mrb[18].mxu1  ;;  %10267 = vmatpush3.bf16.msra.mxu1 %v10927_v54 }
 0x22e   : > { %v9449_v61 = vpop.f32.mrb[33].mxu0  ;;  %v4798_v4 = vmax.f32 %v12673_v5, %v10443_v60  ;;  %v10135_v6 = vpop.f32.mrb[19].mxu1  ;;  %10268 = vmatprep.subr.bf16.mxu1 %v11287_v36  ;;  %v10932_v5 = vld [vmem:[%s13210_s1 + $0xb00] sm:$0xff]  }
 0x22f   : > { %v9450_v7 = vadd.f32 %v9449_v61, %v9448_v0  ;;  %v9451_v8 = vpop.f32.mrb[34].mxu0  ;;  %v10955_v0 = vld [vmem:[#allocation3 + $0x20] sm:$0xff]  }
 0x230   : > { %v9452_v12 = vpop.f32.mrb[35].mxu0  ;;  %v4799_v13 = vmax.f32 %v4797_v1, %v4798_v4  ;;  %v10937_v1 = vld [vmem:[%s13210_s1 + $0xb28] sm:$0xff]  }
 0x231   : > { %v10444_v14 = vadd.f32 %v9450_v7, %v9419_v46  ;;  %10269 = vmatpush3.bf16.msra.mxu1 %v10930_v59  ;;  %v10950_v46 = vld [vmem:[#allocation3 + $0x58] sm:$0xff]   ;;  %v10954_v59 = vld [vmem:[#allocation3 + $0x60] sm:$0xff]  }
 0x232   : > { %v4807_v15 = vadd.f32 %v12812_v2, %v4799_v13  ;;  %10270 = vmatprep.subr.bf16.mxu1 %v11287_v36  ;;  %v10956_v7 = vld [vmem:[#allocation3 + $0xd8] sm:$0xff]   ;;  %v10958_v13 = vld [vmem:[#allocation3 + $0x68] sm:$0xff]  }
 0x233   : > { %9655 = vmatprep.subr.bf16.mxu0 %v10956_v7 }
 0x234   : > { %4812 = vst [vmem:[#allocation2] sm:$0x7f] %v4807_v15  ;;  %v10960_v15 = vld [vmem:[#allocation3 + $0xe0] sm:$0xff]  }
 0x235   : > { %10271 = vmatpush3.bf16.msra.mxu1 %v10931_v10  ;;  %v10957_v10 = vld [vmem:[#allocation3 + $0x98] sm:$0xff]  }
 0x236   : > { %10276 = vmatprep.subr.bf16.mxu1 %v11287_v36  ;;  %9656 = vmatpush3.bf16.msra.mxu0 %v10957_v10 }
 0x237   : > { %9657 = vmatprep.subr.bf16.mxu0 %v10960_v15  ;;  %v10979_v15 = vld [vmem:[#allocation3 + $0x210] sm:$0xff]  }
 0x238   : > { %10273 = vmatmul.mubr.bf16.vlgmr.msra.gmra.mrb[32].mxu1 %v11645_v11  ;;  %v10936_v11 = vld [vmem:[%s13210_s1 + $0xb20] sm:$0xff]  }
 0x239   : > { %10277 = vmatpush3.bf16.msra.mxu1 %v10932_v5  ;;  %10292 = vmatprep.mubr.msk.bf16.mxu1 %vm11288_vm0, %v11287_v36  ;;  %v10961_v5 = vld [vmem:[#allocation3 + $0xa0] sm:$0xff]  }
 0x23a   : > { %10278 = vmatprep.subr.bf16.mxu1 %v11287_v36  ;;  %9658 = vmatpush3.bf16.msra.mxu0 %v10961_v5  ;;  %v10982_v5 = vld [vmem:[#allocation3 + $0x258] sm:$0xff]  }
 0x23d   : > { %10279 = vmatpush3.bf16.msra.mxu1 %v10933_v9  ;;  %v10962_v9 = vld [vmem:[#allocation3 + $0x70] sm:$0xff]  }
 0x23e   : > { %10280 = vmatprep.subr.bf16.mxu1 %v11287_v36 }
 0x241   : > { %10281 = vmatpush3.bf16.msra.mxu1 %v10934_v49  ;;  %v10963_v49 = vld [vmem:[#allocation3 + $0x30] sm:$0xff]  }
 0x242   : > { %10282 = vmatprep.subr.bf16.mxu1 %v11287_v36 }
 0x245   : > { %10283 = vmatpush3.bf16.msra.mxu1 %v10935_v58  ;;  %v10964_v58 = vld [vmem:[#allocation3 + $0xe8] sm:$0xff]  }
 0x246   : > { %10284 = vmatprep.subr.bf16.mxu1 %v11287_v36  ;;  %9659 = vmatprep.subr.bf16.mxu0 %v10964_v58  ;;  %v10983_v58 = vld [vmem:[#allocation3 + $0x218] sm:$0xff]  }
 0x249   : > { %10285 = vmatpush3.bf16.msra.mxu1 %v10936_v11  ;;  %v10965_v11 = vld [vmem:[#allocation3 + $0xa8] sm:$0xff]  }
 0x24a   : > { %10286 = vmatprep.subr.bf16.mxu1 %v11287_v36  ;;  %9660 = vmatpush3.bf16.msra.mxu0 %v10965_v11  ;;  %v10986_v11 = vld [vmem:[#allocation3 + $0x260] sm:$0xff]  }
 0x24d   : > { %v9479_v16 = vpop.f32.mrb[36].mxu0  ;;  %10287 = vmatpush3.bf16.msra.mxu1 %v10937_v1  ;;  %v10966_v1 = vld [vmem:[#allocation3 + $0x78] sm:$0xff]  }
 0x24e   : > { %v9480_v18 = vpop.f32.mrb[37].mxu0  ;;  %10288 = vmatprep.subr.bf16.mxu1 %v11287_v36 }
 0x24f   : > { %v9481_v19 = vadd.f32 %v9480_v18, %v9479_v16  ;;  %v9482_v20 = vpop.f32.mrb[38].mxu0  ;;  %v10968_v16 = vld [vmem:[#allocation3 + $0xf0] sm:$0xff]  }
 0x250   : > { %v9483_v22 = vpop.f32.mrb[39].mxu0  ;;  %v10969_v18 = vld [vmem:[#allocation3 + $0xb0] sm:$0xff]   ;;  %9661 = vmatprep.subr.bf16.mxu0 %v10968_v16  ;;  %v10972_v20 = vld [vmem:[#allocation3 + $0xf8] sm:$0xff]  }
 0x251   : > { %10289 = vmatpush3.bf16.msra.mxu1 %v10938_v17  ;;  %v10967_v17 = vld [vmem:[#allocation3 + $0x38] sm:$0xff]   ;;  %9662 = vmatpush3.bf16.msra.mxu0 %v10969_v18  ;;  %v10976_v22 = vld [vmem:[#allocation3 + $0x140] sm:$0xff]   ;;  %v10990_v18 = vld [vmem:[#allocation3 + $0x268] sm:$0xff]  }
 0x252   : > { %10290 = vmatprep.subr.bf16.mxu1 %v11287_v36  ;;  %9663 = vmatprep.subr.bf16.mxu0 %v10972_v20  ;;  %v10988_v16 = vld [vmem:[#allocation3 + $0x158] sm:$0xff]   ;;  %v10992_v20 = vld [vmem:[#allocation3 + $0x160] sm:$0xff]  }
 0x255   : > { %10291 = vmatpush3.bf16.msra.mxu1 %v10939_v21  ;;  %v10973_v21 = vld [vmem:[#allocation3 + $0xb8] sm:$0xff]  }
 0x256   : > { %9671 = vmatprep.subr.bf16.mxu1 %v10940_v34  ;;  %9664 = vmatpush3.bf16.msra.mxu0 %v10973_v21  ;;  %v10991_v21 = vld [vmem:[#allocation3 + $0x228] sm:$0xff]  }
 0x257   : > { %9693 = vmatprep.subr.bf16.mxu0 %v10976_v22  ;;  %v10994_v22 = vld [vmem:[#allocation3 + $0x270] sm:$0xff]  }
 0x258   : > { %10293 = vmatmul.mubr.bf16.vlgmr.msra.gmra.mrb[32].mxu1 %v11611_v62  ;;  %v10943_v62 = vld [vmem:[#allocation3 + $0x8] sm:$0xff]  }
 0x259   : > { %9672 = vmatpush3.bf16.msra.mxu1 %v10941_v31 }
 0x25a   : > { %9673 = vmatprep.subr.bf16.mxu1 %v10942_v32 }
 0x25d   : > { %9674 = vmatpush3.bf16.msra.mxu1 %v10943_v62 }
 0x25e   : > { %9675 = vmatprep.subr.bf16.mxu1 %v10946_v41 }
 0x261   : > { %9676 = vmatpush3.bf16.msra.mxu1 %v10947_v45 }
 0x262   : > { %9677 = vmatprep.subr.bf16.mxu1 %v10950_v46 }
 0x265   : > { %9678 = vmatpush3.bf16.msra.mxu1 %v10951_v53  ;;  %v4814_v53 = vld [vmem:[#allocation2] sm:$0x1f] }
 0x266   : > { %9679 = vmatprep.subr.bf16.mxu1 %v10954_v59 }
 0x269   : > { %9680 = vmatpush3.bf16.msra.mxu1 %v10955_v0 }
 0x26a   : > { %9681 = vmatprep.subr.bf16.mxu1 %v10958_v13  ;;  %v10980_v13 = vld [vmem:[#allocation3 + $0x148] sm:$0xff]  }
 0x26b   : > { %v3153_v23 = vpop.f32.mrb[20].mxu1 }
 0x26c   : > { %v12860_v24 = vadd.f32 %v10444_v14, %v3153_v23  ;;  %v10174_v25 = vpop.f32.mrb[21].mxu1  ;;  %v10959_v14 = vld [vmem:[#allocation3 + $0x28] sm:$0xff]  }
 0x26d   : > { %v9510_v26 = vpop.f32.mrb[40].mxu0  ;;  %v3156_v27 = vpop.f32.mrb[22].mxu1  ;;  %9682 = vmatpush3.bf16.msra.mxu1 %v10959_v14 }
 0x26e   : > { %v9511_v28 = vpop.f32.mrb[41].mxu0  ;;  %v10175_v44 = vpop.f32.mrb[23].mxu1  ;;  %9683 = vmatprep.subr.bf16.mxu1 %v10962_v9  ;;  %v10981_v9 = vld [vmem:[#allocation3 + $0x108] sm:$0xff]  }
 0x26f   : > { %v9512_v29 = vadd.f32 %v9511_v28, %v9510_v26  ;;  %v9513_v30 = vpop.f32.mrb[42].mxu0 }
 0x270   : > { %v9514_v33 = vpop.f32.mrb[43].mxu0 }
 0x271   : > { %v10446_v39 = vadd.f32 %v9512_v29, %v9481_v19  ;;  %9684 = vmatpush3.bf16.msra.mxu1 %v10963_v49  ;;  %v10970_v19 = vld [vmem:[#allocation3 + $0x240] sm:$0xff]   ;;  %v10984_v49 = vld [vmem:[#allocation3 + $0x150] sm:$0xff]  }
 0x272   : > { %9685 = vmatprep.subr.bf16.mxu1 %v10966_v1  ;;  %v10985_v1 = vld [vmem:[#allocation3 + $0x110] sm:$0xff]  }
 0x275   : > { %9686 = vmatpush3.bf16.msra.mxu1 %v10967_v17  ;;  %v10987_v17 = vld [vmem:[#allocation3 + $0x220] sm:$0xff]  }
 0x276   : > { %9715 = vmatprep.subr.bf16.mxu1 %v10970_v19  ;;  %v10989_v19 = vld [vmem:[#allocation3 + $0x118] sm:$0xff]  }
 0x28d   : > { %v9541_v47 = vpop.f32.mrb[44].mxu0 }
 0x28e   : > { %v9542_v48 = vpop.f32.mrb[45].mxu0 }
 0x28f   : > { %v9543_v50 = vadd.f32 %v9542_v48, %v9541_v47  ;;  %v9544_v51 = vpop.f32.mrb[46].mxu0 }
 0x290   : > { %v9545_v52 = vpop.f32.mrb[47].mxu0  ;;  %v4850_v51 = vld [vmem:[#allocation2] sm:$0x3e] }
 0x291   : > { %v4852_v52 = vpack.c.bf16 %v4850_v51, %v4850_v51  ;;  %v11016_v51 = vld [vmem:[#allocation3 + $0x1d0] sm:$0xff]  }
 0x293   : > { %v4890_v57 = vshll.u32 %v4852_v52, 16 }
 0x2ab   : > { %v3699_v56 = vpop.f32.mrb[24].mxu1 }
 0x2ac   : > { %v12862_v35 = vadd.f32 %v10446_v39, %v3699_v56  ;;  %v10214_v54 = vpop.f32.mrb[25].mxu1 }
 0x2ad   : > { %v9572_v43 = vpop.f32.mrb[48].mxu0  ;;  %v3702_v60 = vpop.f32.mrb[26].mxu1 }
 0x2ae   : > { %v9573_v63 = vpop.f32.mrb[49].mxu0  ;;  %v4808_v3 = vmax.f32 %v12860_v24, %v12862_v35  ;;  %v10215_v61 = vpop.f32.mrb[27].mxu1  ;;  %v12872_v60 = vpack.c.bf16 %v4814_v53, %v4814_v53  ;;  %v10975_v35 = vld [vmem:[#allocation3 + $0x208] sm:$0xff]   ;;  %v11018_v53 = vld [vmem:[#allocation3 + $0x2e0] sm:$0xff]  }
 0x2af   : > { %v9574_v4 = vadd.f32 %v9573_v63, %v9572_v43  ;;  %v9575_v6 = vpop.f32.mrb[50].mxu0  ;;  %v10971_v43 = vld [vmem:[#allocation3 + $0x200] sm:$0xff]   ;;  %v10974_v63 = vld [vmem:[#allocation3 + $0x248] sm:$0xff]  }
 0x2b0   : > { %v9576_v8 = vpop.f32.mrb[51].mxu0  ;;  %v4888_v6 = vshrl.u32 %v4852_v52, 16  ;;  %v11015_v52 = vld [vmem:[#allocation3 + $0x298] sm:$0xff]  }
 0x2b1   : > { %v10448_v12 = vadd.f32 %v9574_v4, %v9543_v50  ;;  %v10977_v8 = vld [vmem:[#allocation3 + $0x100] sm:$0xff]  }
 0x2cd   : > { %v9603_v23 = vpop.f32.mrb[52].mxu0 }
 0x2ce   : > { %v9604_v25 = vpop.f32.mrb[53].mxu0 }
 0x2cf   : > { %v9605_v26 = vadd.f32 %v9604_v25, %v9603_v23  ;;  %v9606_v27 = vpop.f32.mrb[54].mxu0  ;;  %v10993_v23 = vld [vmem:[#allocation3 + $0x120] sm:$0xff]   ;;  %v10996_v25 = vld [vmem:[#allocation3 + $0x168] sm:$0xff]  }
 0x2d0   : > { %v9607_v28 = vpop.f32.mrb[55].mxu0  ;;  %v10998_v27 = vld [vmem:[#allocation3 + $0x278] sm:$0xff]  }
 0x2d1   : > { %v10997_v28 = vld [vmem:[#allocation3 + $0x128] sm:$0xff]  }
 0x2eb   : > { %v4245_v44 = vpop.f32.mrb[28].mxu1 }
 0x2ec   : > { %v10449_v29 = vadd.f32 %v10448_v12, %v4245_v44  ;;  %v10254_v30 = vpop.f32.mrb[29].mxu1  ;;  %v10978_v12 = vld [vmem:[#allocation3 + $0x250] sm:$0xff]  }
 0x2ed   : > { %v9634_v34 = vpop.f32.mrb[56].mxu0  ;;  %v4248_v31 = vpop.f32.mrb[30].mxu1  ;;  %v11000_v44 = vld [vmem:[#allocation3 + $0x170] sm:$0xff]   ;;  %v11002_v30 = vld [vmem:[#allocation3 + $0x2c0] sm:$0xff]  }
 0x2ee   : > { %v9635_v32 = vpop.f32.mrb[57].mxu0  ;;  %v10255_v33 = vpop.f32.mrb[31].mxu1  ;;  %v11004_v31 = vld [vmem:[#allocation3 + $0x178] sm:$0xff]  }
 0x2ef   : > { %v9636_v37 = vadd.f32 %v9635_v32, %v9634_v34  ;;  %v9637_v38 = vpop.f32.mrb[58].mxu0  ;;  %v11001_v34 = vld [vmem:[#allocation3 + $0x130] sm:$0xff]   ;;  %v11003_v32 = vld [vmem:[#allocation3 + $0x280] sm:$0xff]  }
 0x2f0   : > { %v9638_v39 = vpop.f32.mrb[59].mxu0  ;;  %v5175_v33 = vld [vmem:[#allocation2] sm:$0x7c]  ;;  %v11005_v38 = vld [vmem:[#allocation3 + $0x138] sm:$0xff]  }
 0x2f1   : > { %v10450_v40 = vadd.f32 %v9636_v37, %v9605_v26  ;;  %v10995_v26 = vld [vmem:[#allocation3 + $0x230] sm:$0xff]   ;;  %v11006_v37 = vld [vmem:[#allocation3 + $0x2c8] sm:$0xff]   ;;  %v5177_v39 = vpack.c.bf16 %v5175_v33, %v5175_v33 }
 0x2f2   : > { %v11059_v33 = vld [vmem:[#allocation3 + $0x330] sm:$0xff]  }
 0x32b   : > { %v4791_v62 = vpop.f32.mrb[32].mxu1 }
 0x32c   : > { %v10451_v41 = vadd.f32 %v10450_v40, %v4791_v62  ;;  %v10294_v42 = vpop.f32.mrb[33].mxu1  ;;  %v11008_v40 = vld [vmem:[#allocation3 + $0x1c0] sm:$0xff]   ;;  %v11007_v62 = vld [vmem:[#allocation3 + $0x288] sm:$0xff]  }
 0x32d   : > { %v4794_v45 = vpop.f32.mrb[34].mxu1  ;;  %v11009_v42 = vld [vmem:[#allocation3 + $0x180] sm:$0xff]  }
 0x32e   : > { %v4809_v46 = vmax.f32 %v10449_v29, %v10451_v41  ;;  %v10295_v47 = vpop.f32.mrb[35].mxu1  ;;  %v10999_v29 = vld [vmem:[#allocation3 + $0x238] sm:$0xff]   ;;  %v11010_v41 = vld [vmem:[#allocation3 + $0x2d0] sm:$0xff]   ;;  %v12888_v45 = vrot.slane %v5177_v39, 1 }
 0x32f   : > { %v11011_v47 = vld [vmem:[#allocation3 + $0x290] sm:$0xff]  }
 0x330   : > { %v4810_v48 = vmax.f32 %v4808_v3, %v4809_v46  ;;  %v11012_v46 = vld [vmem:[#allocation3 + $0x1c8] sm:$0xff]   ;;  %v11064_v39 = vld [vmem:[#allocation3 + $0x3f0] sm:$0xff]  }
 0x332   : > { %v4811_v50 = vadd.f32 %v12812_v2, %v4810_v48  ;;  %v4892_v2 = vrot.slane %v4890_v57, 1  ;;  %v11014_v48 = vld [vmem:[#allocation3 + $0x2d8] sm:$0xff]   ;;  %v11019_v57 = vld [vmem:[#allocation3 + $0x2a0] sm:$0xff]  }
 0x334   : > { %4813 = vst [vmem:[#allocation2 + $0x8] sm:$0x7f] %v4811_v50  ;;  %v12878_v10 = vor.u32 %v4892_v2, %v4888_v6  ;;  %v11013_v50 = vld [vmem:[#allocation3 + $0x188] sm:$0xff]   ;;  %v11025_v2 = vld [vmem:[#allocation3 + $0x1a0] sm:$0xff]   ;;  %v11032_v6 = vld [vmem:[#allocation3 + $0x1f0] sm:$0xff]  }
 0x33b   : > { %v4815_v55 = vld [vmem:[#allocation2 + $0x8] sm:$0x1f] }
 0x33c   : > { %v4851_v56 = vld [vmem:[#allocation2 + $0x8] sm:$0x3e]  ;;  %v12870_v54 = vpack.c.bf16 %v4815_v55, %v4815_v55  ;;  %v11017_v55 = vld [vmem:[#allocation3 + $0x190] sm:$0xff]  }
 0x33d   : > { %v4853_v59 = vpack.c.bf16 %v4851_v56, %v4851_v56  ;;  %v5176_v0 = vld [vmem:[#allocation2 + $0x8] sm:$0x7c] }
 0x33e   : > { %5167 = vmatprep.mubr.bf16.mxu1 %v12870_v54  ;;  %v5178_v4 = vpack.c.bf16 %v5176_v0, %v5176_v0  ;;  %v11020_v56 = vld [vmem:[#allocation3 + $0x1d8] sm:$0xff]   ;;  %v11023_v0 = vld [vmem:[#allocation3 + $0x2a8] sm:$0xff]  }
 0x33f   : > { %v4897_v24 = vshll.u32 %v4853_v59, 16  ;;  %5168 = vmatmul.mubr.bf16.vlgmr.msra.gmra.mrb[36].mxu1 %v12872_v60  ;;  %v4895_v3 = vshrl.u32 %v4853_v59, 16  ;;  %v11021_v59 = vld [vmem:[#allocation3 + $0x198] sm:$0xff]  }
 0x340   : > { %9716 = vmatpush3.bf16.msra.mxu1 %v10971_v43  ;;  %v12881_v14 = vrot.slane %v5178_v4, 1  ;;  %v11022_v43 = vld [vmem:[#allocation3 + $0x2e8] sm:$0xff]  }
 0x341   : > { %v4899_v61 = vrot.slane %v4897_v24, 1  ;;  %9717 = vmatprep.subr.bf16.mxu1 %v10974_v63  ;;  %v11024_v63 = vld [vmem:[#allocation3 + $0x1e0] sm:$0xff]   ;;  %v11026_v24 = vld [vmem:[#allocation3 + $0x2f0] sm:$0xff]   ;;  %v11029_v4 = vld [vmem:[#allocation3 + $0x1a8] sm:$0xff]  }
 0x343   : > { %v12876_v7 = vor.u32 %v4899_v61, %v4895_v3  ;;  %v11027_v3 = vld [vmem:[#allocation3 + $0x2b0] sm:$0xff]   ;;  %v11030_v61 = vld [vmem:[#allocation3 + $0x2f8] sm:$0xff]  }
 0x344   : > { %9718 = vmatpush3.bf16.msra.mxu1 %v10975_v35  ;;  %v11028_v35 = vld [vmem:[#allocation3 + $0x1e8] sm:$0xff]  }
 0x345   : > { %5031 = vmatprep.mubr.bf16.mxu0 %v12876_v7  ;;  %5549 = vmatprep.mubr.bf16.mxu1 %v12876_v7 }
 0x346   : > { %5032 = vmatmul.mubr.bf16.vlgmr.msra.gmra.mrb[60].mxu0 %v12878_v10  ;;  %9719 = vmatprep.subr.bf16.mxu1 %v10978_v12  ;;  %v11034_v12 = vld [vmem:[#allocation3 + $0x340] sm:$0xff]  }
 0x347   : > { %9694 = vmatpush3.bf16.msra.mxu0 %v10977_v8  ;;  %5346 = vmatprep.mubr.bf16.mxu0 %v12881_v14  ;;  %v11031_v8 = vld [vmem:[#allocation3 + $0x2b8] sm:$0xff]  }
 0x348   : > { %9695 = vmatprep.subr.bf16.mxu0 %v10980_v13  ;;  %9720 = vmatpush3.bf16.msra.mxu1 %v10979_v15  ;;  %v11033_v13 = vld [vmem:[#allocation3 + $0x1b0] sm:$0xff]   ;;  %v11036_v15 = vld [vmem:[#allocation3 + $0x1f8] sm:$0xff]  }
 0x349   : > { %9721 = vmatprep.subr.bf16.mxu1 %v10982_v5  ;;  %v11035_v5 = vld [vmem:[#allocation3 + $0x300] sm:$0xff]  }
 0x34b   : > { %9696 = vmatpush3.bf16.msra.mxu0 %v10981_v9  ;;  %v11038_v9 = vld [vmem:[#allocation3 + $0x348] sm:$0xff]  }
 0x34c   : > { %9697 = vmatprep.subr.bf16.mxu0 %v10984_v49  ;;  %9722 = vmatpush3.bf16.msra.mxu1 %v10983_v58  ;;  %v11037_v49 = vld [vmem:[#allocation3 + $0x1b8] sm:$0xff]   ;;  %v11040_v58 = vld [vmem:[#allocation3 + $0x3c0] sm:$0xff]  }
 0x34d   : > { %9723 = vmatprep.subr.bf16.mxu1 %v10986_v11  ;;  %v11039_v11 = vld [vmem:[#allocation3 + $0x308] sm:$0xff]  }
 0x34f   : > { %9698 = vmatpush3.bf16.msra.mxu0 %v10985_v1  ;;  %v11042_v1 = vld [vmem:[#allocation3 + $0x350] sm:$0xff]  }
 0x350   : > { %9699 = vmatprep.subr.bf16.mxu0 %v10988_v16  ;;  %9724 = vmatpush3.bf16.msra.mxu1 %v10987_v17  ;;  %v11041_v16 = vld [vmem:[#allocation3 + $0x380] sm:$0xff]   ;;  %v11044_v17 = vld [vmem:[#allocation3 + $0x3c8] sm:$0xff]  }
 0x351   : > { %9725 = vmatprep.subr.bf16.mxu1 %v10990_v18  ;;  %v11043_v18 = vld [vmem:[#allocation3 + $0x310] sm:$0xff]  }
 0x353   : > { %9700 = vmatpush3.bf16.msra.mxu0 %v10989_v19  ;;  %v11046_v19 = vld [vmem:[#allocation3 + $0x358] sm:$0xff]  }
 0x354   : > { %9701 = vmatprep.subr.bf16.mxu0 %v10992_v20  ;;  %9726 = vmatpush3.bf16.msra.mxu1 %v10991_v21  ;;  %v11045_v20 = vld [vmem:[#allocation3 + $0x388] sm:$0xff]   ;;  %v11048_v21 = vld [vmem:[#allocation3 + $0x3d0] sm:$0xff]  }
 0x355   : > { %9727 = vmatprep.subr.bf16.mxu1 %v10994_v22  ;;  %v11047_v22 = vld [vmem:[#allocation3 + $0x318] sm:$0xff]  }
 0x357   : > { %9702 = vmatpush3.bf16.msra.mxu0 %v10993_v23  ;;  %v11050_v23 = vld [vmem:[#allocation3 + $0x360] sm:$0xff]  }
 0x358   : > { %9703 = vmatprep.subr.bf16.mxu0 %v10996_v25  ;;  %9728 = vmatpush3.bf16.msra.mxu1 %v10995_v26  ;;  %v11049_v25 = vld [vmem:[#allocation3 + $0x390] sm:$0xff]   ;;  %v11052_v26 = vld [vmem:[#allocation3 + $0x3d8] sm:$0xff]  }
 0x359   : > { %9729 = vmatprep.subr.bf16.mxu1 %v10998_v27  ;;  %v11051_v27 = vld [vmem:[#allocation3 + $0x320] sm:$0xff]  }
 0x35b   : > { %9704 = vmatpush3.bf16.msra.mxu0 %v10997_v28  ;;  %v11054_v28 = vld [vmem:[#allocation3 + $0x368] sm:$0xff]  }
 0x35c   : > { %9705 = vmatprep.subr.bf16.mxu0 %v11000_v44  ;;  %9730 = vmatpush3.bf16.msra.mxu1 %v10999_v29  ;;  %v11053_v44 = vld [vmem:[#allocation3 + $0x398] sm:$0xff]   ;;  %v11056_v29 = vld [vmem:[#allocation3 + $0x3e0] sm:$0xff]  }
 0x35d   : > { %9759 = vmatprep.subr.bf16.mxu1 %v11002_v30  ;;  %v11055_v30 = vld [vmem:[#allocation3 + $0x328] sm:$0xff]  }
 0x35f   : > { %9706 = vmatpush3.bf16.msra.mxu0 %v11001_v34  ;;  %5550 = vmatmul.mubr.bf16.vlgmr.msra.gmra.mrb[40].mxu1 %v12878_v10  ;;  %v11058_v34 = vld [vmem:[#allocation3 + $0x370] sm:$0xff]  }
 0x360   : > { %9707 = vmatprep.subr.bf16.mxu0 %v11004_v31  ;;  %9760 = vmatpush3.bf16.msra.mxu1 %v11003_v32  ;;  %v11057_v31 = vld [vmem:[#allocation3 + $0x3a0] sm:$0xff]   ;;  %v11060_v32 = vld [vmem:[#allocation3 + $0x3e8] sm:$0xff]  }
 0x361   : > { %5854 = vmatprep.mubr.bf16.mxu1 %v12881_v14  ;;  %9761 = vmatprep.subr.bf16.mxu1 %v11006_v37  ;;  %v11062_v37 = vld [vmem:[#allocation3 + $0x378] sm:$0xff]  }
 0x363   : > { %9708 = vmatpush3.bf16.msra.mxu0 %v11005_v38  ;;  %v11061_v38 = vld [vmem:[#allocation3 + $0x3a8] sm:$0xff]  }
 0x364   : > { %9737 = vmatprep.subr.bf16.mxu0 %v11008_v40  ;;  %9762 = vmatpush3.bf16.msra.mxu1 %v11007_v62  ;;  %v11063_v40 = vld [vmem:[#allocation3 + $0x338] sm:$0xff]   ;;  %v11066_v62 = vld [vmem:[#allocation3 + $0x540] sm:$0xff]  }
 0x365   : > { %9763 = vmatprep.subr.bf16.mxu1 %v11010_v41  ;;  %v11065_v41 = vld [vmem:[#allocation3 + $0x3b0] sm:$0xff]  }
 0x366   : > { %5347 = vmatmul.mubr.bf16.vlgmr.msra.gmra.mrb[64].mxu0 %v12888_v45 }
 0x367   : > { %9738 = vmatpush3.bf16.msra.mxu0 %v11009_v42  ;;  %5685 = vmatprep.mubr.bf16.mxu0 %v12870_v54  ;;  %v11068_v42 = vld [vmem:[#allocation3 + $0x3f8] sm:$0xff]  }
 0x368   : > { %9739 = vmatprep.subr.bf16.mxu0 %v11012_v46  ;;  %9764 = vmatpush3.bf16.msra.mxu1 %v11011_v47  ;;  %v11067_v46 = vld [vmem:[#allocation3 + $0x500] sm:$0xff]   ;;  %v11070_v47 = vld [vmem:[#allocation3 + $0x548] sm:$0xff]  }
 0x369   : > { %9765 = vmatprep.subr.bf16.mxu1 %v11014_v48  ;;  %v11069_v48 = vld [vmem:[#allocation3 + $0x3b8] sm:$0xff]  }
 0x36b   : > { %9740 = vmatpush3.bf16.msra.mxu0 %v11013_v50  ;;  %v11072_v50 = vld [vmem:[#allocation3 + $0x440] sm:$0xff]  }
 0x36c   : > { %9741 = vmatprep.subr.bf16.mxu0 %v11016_v51  ;;  %9766 = vmatpush3.bf16.msra.mxu1 %v11015_v52  ;;  %v11071_v51 = vld [vmem:[#allocation3 + $0x508] sm:$0xff]   ;;  %v11074_v52 = vld [vmem:[#allocation3 + $0x550] sm:$0xff]  }
 0x36d   : > { %9767 = vmatprep.subr.bf16.mxu1 %v11018_v53  ;;  %v11073_v53 = vld [vmem:[#allocation3 + $0x400] sm:$0xff]  }
 0x36f   : > { %9742 = vmatpush3.bf16.msra.mxu0 %v11017_v55  ;;  %v11076_v55 = vld [vmem:[#allocation3 + $0x448] sm:$0xff]  }
 0x370   : > { %9743 = vmatprep.subr.bf16.mxu0 %v11020_v56  ;;  %9768 = vmatpush3.bf16.msra.mxu1 %v11019_v57  ;;  %v11075_v56 = vld [vmem:[#allocation3 + $0x510] sm:$0xff]   ;;  %v11078_v57 = vld [vmem:[#allocation3 + $0x558] sm:$0xff]  }
 0x371   : > { %9769 = vmatprep.subr.bf16.mxu1 %v11022_v43  ;;  %v11077_v43 = vld [vmem:[#allocation3 + $0x408] sm:$0xff]  }
 0x373   : > { %9744 = vmatpush3.bf16.msra.mxu0 %v11021_v59  ;;  %v11080_v59 = vld [vmem:[#allocation3 + $0x450] sm:$0xff]  }
 0x374   : > { %9745 = vmatprep.subr.bf16.mxu0 %v11024_v63  ;;  %9770 = vmatpush3.bf16.msra.mxu1 %v11023_v0  ;;  %v11082_v63 = vld [vmem:[#allocation3 + $0x560] sm:$0xff]   ;;  %v11081_v0 = vld [vmem:[#allocation3 + $0x410] sm:$0xff]  }
 0x375   : > { %9771 = vmatprep.subr.bf16.mxu1 %v11026_v24  ;;  %v11084_v24 = vld [vmem:[#allocation3 + $0x458] sm:$0xff]  }
 0x377   : > { %9746 = vmatpush3.bf16.msra.mxu0 %v11025_v2  ;;  %v11083_v2 = vld [vmem:[#allocation3 + $0x520] sm:$0xff]  }
 0x378   : > { %9747 = vmatprep.subr.bf16.mxu0 %v11028_v35  ;;  %9772 = vmatpush3.bf16.msra.mxu1 %v11027_v3  ;;  %v11086_v35 = vld [vmem:[#allocation3 + $0x568] sm:$0xff]   ;;  %v11085_v3 = vld [vmem:[#allocation3 + $0x418] sm:$0xff]  }
 0x379   : > { %9773 = vmatprep.subr.bf16.mxu1 %v11030_v61  ;;  %v11088_v61 = vld [vmem:[#allocation3 + $0x460] sm:$0xff]  }
 0x37b   : > { %9748 = vmatpush3.bf16.msra.mxu0 %v11029_v4  ;;  %v11087_v4 = vld [vmem:[#allocation3 + $0x528] sm:$0xff]  }
 0x37c   : > { %9749 = vmatprep.subr.bf16.mxu0 %v11032_v6  ;;  %9774 = vmatpush3.bf16.msra.mxu1 %v11031_v8  ;;  %v11090_v6 = vld [vmem:[#allocation3 + $0x570] sm:$0xff]   ;;  %v11089_v8 = vld [vmem:[#allocation3 + $0x420] sm:$0xff]  }
 0x37d   : > { %9803 = vmatprep.subr.bf16.mxu1 %v11034_v12  ;;  %v11092_v12 = vld [vmem:[#allocation3 + $0x468] sm:$0xff]  }
 0x37f   : > { %9750 = vmatpush3.bf16.msra.mxu0 %v11033_v13  ;;  %5855 = vmatmul.mubr.bf16.vlgmr.msra.gmra.mrb[44].mxu1 %v12888_v45  ;;  %v11091_v13 = vld [vmem:[#allocation3 + $0x530] sm:$0xff]  }
 0x380   : > { %9751 = vmatprep.subr.bf16.mxu0 %v11036_v15  ;;  %9804 = vmatpush3.bf16.msra.mxu1 %v11035_v5  ;;  %v11094_v15 = vld [vmem:[#allocation3 + $0x578] sm:$0xff]   ;;  %v11093_v5 = vld [vmem:[#allocation3 + $0x428] sm:$0xff]  }
 0x381   : > { %6193 = vmatprep.mubr.bf16.mxu1 %v12870_v54  ;;  %9805 = vmatprep.subr.bf16.mxu1 %v11038_v9  ;;  %v11096_v9 = vld [vmem:[#allocation3 + $0x470] sm:$0xff]  }
 0x383   : > { %9752 = vmatpush3.bf16.msra.mxu0 %v11037_v49  ;;  %v11095_v49 = vld [vmem:[#allocation3 + $0x538] sm:$0xff]  }
 0x384   : > { %9781 = vmatprep.subr.bf16.mxu0 %v11040_v58  ;;  %9806 = vmatpush3.bf16.msra.mxu1 %v11039_v11  ;;  %v11098_v58 = vld [vmem:[#allocation3 + $0x5c0] sm:$0xff]   ;;  %v11097_v11 = vld [vmem:[#allocation3 + $0x430] sm:$0xff]  }
 0x385   : > { %9807 = vmatprep.subr.bf16.mxu1 %v11042_v1  ;;  %v11100_v1 = vld [vmem:[#allocation3 + $0x478] sm:$0xff]  }
 0x386   : > { %5686 = vmatmul.mubr.bf16.vlgmr.msra.gmra.mrb[68].mxu0 %v12872_v60 }
 0x387   : > { %9782 = vmatpush3.bf16.msra.mxu0 %v11041_v16  ;;  %6057 = vmatprep.mubr.bf16.mxu0 %v12876_v7  ;;  %v11099_v16 = vld [vmem:[#allocation3 + $0x580] sm:$0xff]  }
 0x388   : > { %9783 = vmatprep.subr.bf16.mxu0 %v11044_v17  ;;  %9808 = vmatpush3.bf16.msra.mxu1 %v11043_v18  ;;  %v11102_v17 = vld [vmem:[#allocation3 + $0x5c8] sm:$0xff]   ;;  %v11101_v18 = vld [vmem:[#allocation3 + $0x438] sm:$0xff]  }
 0x389   : > { %9809 = vmatprep.subr.bf16.mxu1 %v11046_v19  ;;  %v11104_v19 = vld [vmem:[#allocation3 + $0x4c0] sm:$0xff]  }
 0x38b   : > { %9784 = vmatpush3.bf16.msra.mxu0 %v11045_v20  ;;  %v11103_v20 = vld [vmem:[#allocation3 + $0x588] sm:$0xff]  }
 0x38c   : > { %9785 = vmatprep.subr.bf16.mxu0 %v11048_v21  ;;  %9810 = vmatpush3.bf16.msra.mxu1 %v11047_v22  ;;  %v11106_v21 = vld [vmem:[#allocation3 + $0x5d0] sm:$0xff]   ;;  %v11105_v22 = vld [vmem:[#allocation3 + $0x480] sm:$0xff]  }
 0x38d   : > { %9811 = vmatprep.subr.bf16.mxu1 %v11050_v23  ;;  %v11108_v23 = vld [vmem:[#allocation3 + $0x4c8] sm:$0xff]  }
 0x38f   : > { %9786 = vmatpush3.bf16.msra.mxu0 %v11049_v25  ;;  %v11107_v25 = vld [vmem:[#allocation3 + $0x590] sm:$0xff]  }
 0x390   : > { %9787 = vmatprep.subr.bf16.mxu0 %v11052_v26  ;;  %9812 = vmatpush3.bf16.msra.mxu1 %v11051_v27  ;;  %v11110_v26 = vld [vmem:[#allocation3 + $0x5d8] sm:$0xff]   ;;  %v11112_v27 = vld [vmem:[#allocation3 + $0x4d0] sm:$0xff]  }
 0x391   : > { %9813 = vmatprep.subr.bf16.mxu1 %v11054_v28  ;;  %v11114_v28 = vld [vmem:[#allocation3 + $0x5e0] sm:$0xff]  }
 0x393   : > { %9788 = vmatpush3.bf16.msra.mxu0 %v11053_v44  ;;  %v11113_v44 = vld [vmem:[#allocation3 + $0x490] sm:$0xff]  }
 0x394   : > { %9789 = vmatprep.subr.bf16.mxu0 %v11056_v29  ;;  %9814 = vmatpush3.bf16.msra.mxu1 %v11055_v30  ;;  %v11116_v29 = vld [vmem:[#allocation3 + $0x4d8] sm:$0xff]   ;;  %v11115_v30 = vld [vmem:[#allocation3 + $0x5a0] sm:$0xff]  }
 0x395   : > { %9815 = vmatprep.subr.bf16.mxu1 %v11058_v34  ;;  %v11118_v34 = vld [vmem:[#allocation3 + $0x5e8] sm:$0xff]  }
 0x397   : > { %9790 = vmatpush3.bf16.msra.mxu0 %v11057_v31  ;;  %v11117_v31 = vld [vmem:[#allocation3 + $0x498] sm:$0xff]  }
 0x398   : > { %9791 = vmatprep.subr.bf16.mxu0 %v11060_v32  ;;  %9816 = vmatpush3.bf16.msra.mxu1 %v11059_v33  ;;  %v11120_v32 = vld [vmem:[#allocation3 + $0x4e0] sm:$0xff]   ;;  %v11122_v33 = vld [vmem:[#allocation3 + $0x5f0] sm:$0xff]  }
 0x399   : > { %9817 = vmatprep.subr.bf16.mxu1 %v11062_v37  ;;  %v11121_v37 = vld [vmem:[#allocation3 + $0x4a0] sm:$0xff]  }
 0x39b   : > { %9792 = vmatpush3.bf16.msra.mxu0 %v11061_v38  ;;  %v11124_v38 = vld [vmem:[#allocation3 + $0x4e8] sm:$0xff]  }
 0x39c   : > { %9793 = vmatprep.subr.bf16.mxu0 %v11064_v39  ;;  %9818 = vmatpush3.bf16.msra.mxu1 %v11063_v40  ;;  %v11123_v39 = vld [vmem:[#allocation3 + $0x5b0] sm:$0xff]   ;;  %v11126_v40 = vld [vmem:[#allocation3 + $0x5f8] sm:$0xff]  }
 0x39d   : > { %9847 = vmatprep.subr.bf16.mxu1 %v11066_v62  ;;  %v11125_v62 = vld [vmem:[#allocation3 + $0x4a8] sm:$0xff]  }
 0x39f   : > { %9794 = vmatpush3.bf16.msra.mxu0 %v11065_v41  ;;  %6194 = vmatmul.mubr.bf16.vlgmr.msra.gmra.mrb[48].mxu1 %v12872_v60  ;;  %v11128_v41 = vld [vmem:[#allocation3 + $0x4f0] sm:$0xff]  }
 0x3a0   : > { %9795 = vmatprep.subr.bf16.mxu0 %v11068_v42  ;;  %9848 = vmatpush3.bf16.msra.mxu1 %v11067_v46  ;;  %v11127_v42 = vld [vmem:[#allocation3 + $0x5b8] sm:$0xff]   ;;  %v11129_v46 = vld [vmem:[#allocation3 + $0x4b0] sm:$0xff]  }
 0x3a1   : > { %6565 = vmatprep.mubr.bf16.mxu1 %v12876_v7  ;;  %9849 = vmatprep.subr.bf16.mxu1 %v11070_v47  ;;  %v11079_v7 = vld [vmem:[#allocation3 + $0x518] sm:$0xff]  }
 0x3a2   : > { %v11130_v47 = vld [vmem:[#allocation3 + $0x4f8] sm:$0xff]  }
 0x3a3   : > { %9796 = vmatpush3.bf16.msra.mxu0 %v11069_v48  ;;  %v11131_v48 = vld [vmem:[#allocation3 + $0x4b8] sm:$0xff]  }
 0x3a4   : > { %9825 = vmatprep.subr.bf16.mxu0 %v11072_v50  ;;  %9850 = vmatpush3.bf16.msra.mxu1 %v11071_v51 }
 0x3a5   : > { %9851 = vmatprep.subr.bf16.mxu1 %v11074_v52 }
 0x3a6   : > { %6058 = vmatmul.mubr.bf16.vlgmr.msra.gmra.mrb[72].mxu0 %v12878_v10 }
 0x3a7   : > { %9826 = vmatpush3.bf16.msra.mxu0 %v11073_v53  ;;  %6362 = vmatprep.mubr.bf16.mxu0 %v12881_v14 }
 0x3a8   : > { %9827 = vmatprep.subr.bf16.mxu0 %v11076_v55  ;;  %9852 = vmatpush3.bf16.msra.mxu1 %v11075_v56 }
 0x3a9   : > { %9853 = vmatprep.subr.bf16.mxu1 %v11078_v57 }
 0x3ab   : > { %9828 = vmatpush3.bf16.msra.mxu0 %v11077_v43 }
 0x3ac   : > { %9829 = vmatprep.subr.bf16.mxu0 %v11080_v59  ;;  %9854 = vmatpush3.bf16.msra.mxu1 %v11079_v7 }
 0x3ad   : > { %9855 = vmatprep.subr.bf16.mxu1 %v11082_v63  ;;  %v11132_v63 = vld [vmem:[%s13214_s5] sm:$0xff]  }
 0x3af   : > { %9830 = vmatpush3.bf16.msra.mxu0 %v11081_v0  ;;  %v11134_v0 = vld [vmem:[%s13214_s5 + $0x10] sm:$0xff]  }
 0x3b0   : > { %9831 = vmatprep.subr.bf16.mxu0 %v11084_v24  ;;  %9856 = vmatpush3.bf16.msra.mxu1 %v11083_v2  ;;  %v11135_v2 = vld [vmem:[%s13214_s5 + $0x18] sm:$0xff]  }
 0x3b1   : > { %9857 = vmatprep.subr.bf16.mxu1 %v11086_v35 }
 0x3b3   : > { %9832 = vmatpush3.bf16.msra.mxu0 %v11085_v3 }
 0x3b4   : > { %9833 = vmatprep.subr.bf16.mxu0 %v11088_v61  ;;  %9858 = vmatpush3.bf16.msra.mxu1 %v11087_v4 }
 0x3b5   : > { %9859 = vmatprep.subr.bf16.mxu1 %v11090_v6  ;;  %v11136_v6 = vld [vmem:[%s13214_s5 + $0x20] sm:$0xff]  }
 0x3b7   : > { %9834 = vmatpush3.bf16.msra.mxu0 %v11089_v8 }
 0x3b8   : > { %9835 = vmatprep.subr.bf16.mxu0 %v11092_v12  ;;  %9860 = vmatpush3.bf16.msra.mxu1 %v11091_v13 }
 0x3b9   : > { %9861 = vmatprep.subr.bf16.mxu1 %v11094_v15 }
 0x3bb   : > { %9836 = vmatpush3.bf16.msra.mxu0 %v11093_v5  ;;  %v11137_v5 = vld [vmem:[%s13214_s5 + $0x28] sm:$0xff]  }
 0x3bc   : > { %9837 = vmatprep.subr.bf16.mxu0 %v11096_v9  ;;  %9862 = vmatpush3.bf16.msra.mxu1 %v11095_v49 }
 0x3bd   : > { %9891 = vmatprep.subr.bf16.mxu1 %v11098_v58  ;;  %v11138_v58 = vld [vmem:[%s13214_s5 + $0x30] sm:$0xff]  }
 0x3bf   : > { %9838 = vmatpush3.bf16.msra.mxu0 %v11097_v11  ;;  %6566 = vmatmul.mubr.bf16.vlgmr.msra.gmra.mrb[52].mxu1 %v12878_v10  ;;  %v11109_v10 = vld [vmem:[#allocation3 + $0x488] sm:$0xff]  }
 0x3c0   : > { %9839 = vmatprep.subr.bf16.mxu0 %v11100_v1  ;;  %9892 = vmatpush3.bf16.msra.mxu1 %v11099_v16  ;;  %v11139_v11 = vld [vmem:[%s13214_s5 + $0x38] sm:$0xff]  }
 0x3c1   : > { %6870 = vmatprep.mubr.bf16.mxu1 %v12881_v14  ;;  %9893 = vmatprep.subr.bf16.mxu1 %v11102_v17  ;;  %v11111_v14 = vld [vmem:[#allocation3 + $0x598] sm:$0xff]  }
 0x3c3   : > { %9840 = vmatpush3.bf16.msra.mxu0 %v11101_v18 }
 0x3c4   : > { %9869 = vmatprep.subr.bf16.mxu0 %v11104_v19  ;;  %9894 = vmatpush3.bf16.msra.mxu1 %v11103_v20 }
 0x3c5   : > { %9895 = vmatprep.subr.bf16.mxu1 %v11106_v21 }
 0x3c6   : > { %6363 = vmatmul.mubr.bf16.vlgmr.msra.gmra.mrb[76].mxu0 %v12888_v45 }
 0x3c7   : > { %9870 = vmatpush3.bf16.msra.mxu0 %v11105_v22  ;;  %6701 = vmatprep.mubr.bf16.mxu0 %v12870_v54  ;;  %v11119_v54 = vld [vmem:[#allocation3 + $0x5a8] sm:$0xff]  }
 0x3c8   : > { %9871 = vmatprep.subr.bf16.mxu0 %v11108_v23  ;;  %9896 = vmatpush3.bf16.msra.mxu1 %v11107_v25 }
 0x3c9   : > { %9897 = vmatprep.subr.bf16.mxu1 %v11110_v26 }
 0x3cb   : > { %9872 = vmatpush3.bf16.msra.mxu0 %v11109_v10 }
 0x3cc   : > { %9873 = vmatprep.subr.bf16.mxu0 %v11112_v27  ;;  %9898 = vmatpush3.bf16.msra.mxu1 %v11111_v14 }
 0x3cd   : > { %9899 = vmatprep.subr.bf16.mxu1 %v11114_v28 }
 0x3cf   : > { %9874 = vmatpush3.bf16.msra.mxu0 %v11113_v44 }
 0x3d0   : > { %9875 = vmatprep.subr.bf16.mxu0 %v11116_v29  ;;  %9900 = vmatpush3.bf16.msra.mxu1 %v11115_v30 }
 0x3d1   : > { %9901 = vmatprep.subr.bf16.mxu1 %v11118_v34 }
 0x3d3   : > { %9876 = vmatpush3.bf16.msra.mxu0 %v11117_v31 }
 0x3d4   : > { %9877 = vmatprep.subr.bf16.mxu0 %v11120_v32  ;;  %9902 = vmatpush3.bf16.msra.mxu1 %v11119_v54 }
 0x3d5   : > { %9903 = vmatprep.subr.bf16.mxu1 %v11122_v33 }
 0x3d7   : > { %9878 = vmatpush3.bf16.msra.mxu0 %v11121_v37 }
 0x3d8   : > { %9879 = vmatprep.subr.bf16.mxu0 %v11124_v38  ;;  %9904 = vmatpush3.bf16.msra.mxu1 %v11123_v39 }
 0x3d9   : > { %9905 = vmatprep.subr.bf16.mxu1 %v11126_v40 }
 0x3db   : > { %9880 = vmatpush3.bf16.msra.mxu0 %v11125_v62 }
 0x3dc   : > { %9881 = vmatprep.subr.bf16.mxu0 %v11128_v41  ;;  %9906 = vmatpush3.bf16.msra.mxu1 %v11127_v42 }
 0x3dd   : > { %10396 = vmatprep.subr.bf16.mxu1 %v11287_v36 }
 0x3df   : > { %9882 = vmatpush3.bf16.msra.mxu0 %v11129_v46  ;;  %6871 = vmatmul.mubr.bf16.vlgmr.msra.gmra.mrb[56].mxu1 %v12888_v45 }
 0x3e0   : > { %9883 = vmatprep.subr.bf16.mxu0 %v11130_v47  ;;  %10412 = vmatprep.mubr.msk.bf16.mxu1 %vm11288_vm0, %v11287_v36 }
 0x3e3   : > { %9884 = vmatpush3.bf16.msra.mxu0 %v11131_v48 }
 0x3e4   : > { %10296 = vmatprep.subr.bf16.mxu0 %v11287_v36 }
 0x3e6   : > { %6702 = vmatmul.mubr.bf16.vlgmr.msra.gmra.mrb[80].mxu0 %v12872_v60  ;;  %v11133_v60 = vld [vmem:[%s13214_s5 + $0x8] sm:$0xff]  }
 0x3e7   : > { %10312 = vmatprep.mubr.msk.bf16.mxu0 %vm11288_vm0, %v11287_v36  ;;  %10297 = vmatpush3.bf16.msra.mxu0 %v11132_v63 }
 0x3e8   : > { %10298 = vmatprep.subr.bf16.mxu0 %v11287_v36 }
 0x3eb   : > { %10299 = vmatpush3.bf16.msra.mxu0 %v11133_v60 }
 0x3ec   : > { %10300 = vmatprep.subr.bf16.mxu0 %v11287_v36 }
 0x3ef   : > { %10301 = vmatpush3.bf16.msra.mxu0 %v11134_v0 }
 0x3f0   : > { %10302 = vmatprep.subr.bf16.mxu0 %v11287_v36 }
 0x3f3   : > { %10303 = vmatpush3.bf16.msra.mxu0 %v11135_v2  ;;  %v9029_v2 = vld [vmem:[%s13213_s4] ss:$0 sm:$0xff] }
 0x3f4   : > { %10304 = vmatprep.subr.bf16.mxu0 %v11287_v36 }
 0x3f7   : > { %10305 = vmatpush3.bf16.msra.mxu0 %v11136_v6  ;;  %v11172_v6 = vld [vmem:[%s13216_s7] sm:$0xff]  }
 0x3f8   : > { %10306 = vmatprep.subr.bf16.mxu0 %v11287_v36  ;;  %10397 = vmatpush3.bf16.msra.mxu1 %v11172_v6 }
 0x3f9   : > { %10398 = vmatprep.subr.bf16.mxu1 %v11287_v36 }
 0x3fb   : > { %10307 = vmatpush3.bf16.msra.mxu0 %v11137_v5  ;;  %v11143_v5 = vld [vmem:[%s13214_s5 + $0x58] sm:$0xff]  }
 0x3fc   : > { %10308 = vmatprep.subr.bf16.mxu0 %v11287_v36 }
 0x3ff   : > { %10309 = vmatpush3.bf16.msra.mxu0 %v11138_v58  ;;  %v11176_v58 = vld [vmem:[%s13216_s7 + $0x20] sm:$0xff]  }
 0x400   : > { %10310 = vmatprep.subr.bf16.mxu0 %v11287_v36 }
 0x403   : > { %10311 = vmatpush3.bf16.msra.mxu0 %v11139_v11  ;;  %v11145_v11 = vld [vmem:[%s13214_s5 + $0x68] sm:$0xff]  }
 0x404   : > { %10316 = vmatprep.subr.bf16.mxu0 %v11287_v36 }
 0x412   : > { %v9687_v50 = vpop.f32.mrb[36].mxu1 }
 0x413   : > { %v9688_v51 = vpop.f32.mrb[37].mxu1 }
 0x414   : > { %v9689_v52 = vadd.f32 %v9688_v51, %v9687_v50  ;;  %v9690_v53 = vpop.f32.mrb[38].mxu1 }
 0x415   : > { %v9691_v55 = vpop.f32.mrb[39].mxu1 }
 0x419   : > { %v9665_v56 = vpop.f32.mrb[60].mxu0 }
 0x41a   : > { %v9666_v57 = vpop.f32.mrb[61].mxu0 }
 0x41b   : > { %v9667_v45 = vadd.f32 %v9666_v57, %v9665_v56  ;;  %v9668_v43 = vpop.f32.mrb[62].mxu0 }
 0x41c   : > { %v9669_v59 = vpop.f32.mrb[63].mxu0 }
 0x41d   : > { %v5170_v7 = vadd.f32 %v9689_v52, %v9667_v45 }
 0x432   : > { %v9731_v24 = vpop.f32.mrb[40].mxu1 }
 0x433   : > { %v9732_v35 = vpop.f32.mrb[41].mxu1 }
 0x434   : > { %v9733_v3 = vadd.f32 %v9732_v35, %v9731_v24  ;;  %v9734_v61 = vpop.f32.mrb[42].mxu1 }
 0x435   : > { %v9735_v4 = vpop.f32.mrb[43].mxu1  ;;  %v11140_v61 = vld [vmem:[%s13214_s5 + $0x40] sm:$0xff]  }
 0x439   : > { %v9709_v8 = vpop.f32.mrb[64].mxu0 }
 0x43a   : > { %v9710_v12 = vpop.f32.mrb[65].mxu0 }
 0x43b   : > { %v9711_v13 = vadd.f32 %v9710_v12, %v9709_v8  ;;  %v9712_v15 = vpop.f32.mrb[66].mxu0  ;;  %v11141_v8 = vld [vmem:[%s13214_s5 + $0x48] sm:$0xff]  }
 0x43c   : > { %v9713_v9 = vpop.f32.mrb[67].mxu0  ;;  %v11173_v12 = vld [vmem:[%s13216_s7 + $0x8] sm:$0xff]   ;;  %v11174_v15 = vld [vmem:[%s13216_s7 + $0x10] sm:$0xff]  }
 0x43d   : > { %v5354_v49 = vadd.f32 %v9711_v13, %v5170_v7  ;;  %v11142_v13 = vld [vmem:[%s13214_s5 + $0x50] sm:$0xff]   ;;  %10399 = vmatpush3.bf16.msra.mxu1 %v11173_v12  ;;  %v11175_v9 = vld [vmem:[%s13216_s7 + $0x18] sm:$0xff]  }
 0x43e   : > { %10400 = vmatprep.subr.bf16.mxu1 %v11287_v36 }
 0x441   : > { %10401 = vmatpush3.bf16.msra.mxu1 %v11174_v15 }
 0x442   : > { %10402 = vmatprep.subr.bf16.mxu1 %v11287_v36 }
 0x445   : > { %10403 = vmatpush3.bf16.msra.mxu1 %v11175_v9 }
 0x446   : > { %10404 = vmatprep.subr.bf16.mxu1 %v11287_v36 }
 0x449   : > { %10405 = vmatpush3.bf16.msra.mxu1 %v11176_v58 }
 0x44a   : > { %10406 = vmatprep.subr.bf16.mxu1 %v11287_v36 }
 0x452   : > { %v9775_v1 = vpop.f32.mrb[44].mxu1 }
 0x453   : > { %v9776_v16 = vpop.f32.mrb[45].mxu1 }
 0x454   : > { %v9777_v17 = vadd.f32 %v9776_v16, %v9775_v1  ;;  %v9778_v18 = vpop.f32.mrb[46].mxu1  ;;  %v11177_v1 = vld [vmem:[%s13216_s7 + $0x28] sm:$0xff]   ;;  %v11146_v16 = vld [vmem:[%s13214_s5 + $0x70] sm:$0xff]  }
 0x455   : > { %v9779_v19 = vpop.f32.mrb[47].mxu1  ;;  %10407 = vmatpush3.bf16.msra.mxu1 %v11177_v1  ;;  %v11147_v18 = vld [vmem:[%s13214_s5 + $0x78] sm:$0xff]  }
 0x456   : > { %10408 = vmatprep.subr.bf16.mxu1 %v11287_v36  ;;  %v11148_v19 = vld [vmem:[%s13214_s5 + $0x80] sm:$0xff]  }
 0x459   : > { %v9753_v20 = vpop.f32.mrb[68].mxu0 }
 0x45a   : > { %v9754_v21 = vpop.f32.mrb[69].mxu0 }
 0x45b   : > { %v9755_v22 = vadd.f32 %v9754_v21, %v9753_v20  ;;  %v9756_v23 = vpop.f32.mrb[70].mxu0  ;;  %v11149_v21 = vld [vmem:[%s13214_s5 + $0x88] sm:$0xff]  }
 0x45c   : > { %v9757_v25 = vpop.f32.mrb[71].mxu0  ;;  %v11151_v23 = vld [vmem:[%s13214_s5 + $0x98] sm:$0xff]  }
 0x45d   : > { %v5688_v26 = vadd.f32 %v9755_v22, %v9733_v3  ;;  %v11150_v22 = vld [vmem:[%s13214_s5 + $0x90] sm:$0xff]   ;;  %v11152_v25 = vld [vmem:[%s13214_s5 + $0xa0] sm:$0xff]  }
 0x45f   : > { %v5862_v10 = vadd.f32 %v9777_v17, %v5688_v26  ;;  %v11178_v17 = vld [vmem:[%s13216_s7 + $0x30] sm:$0xff]   ;;  %v11153_v26 = vld [vmem:[%s13214_s5 + $0xa8] sm:$0xff]  }
 0x460   : > { %10409 = vmatpush3.bf16.msra.mxu1 %v11178_v17 }
 0x461   : > { %v6879_v27 = vmax.f32 %v5354_v49, %v5862_v10  ;;  %v11144_v49 = vld [vmem:[%s13214_s5 + $0x60] sm:$0xff]   ;;  %10410 = vmatprep.subr.bf16.mxu1 %v11287_v36  ;;  %v11154_v10 = vld [vmem:[%s13214_s5 + $0xb0] sm:$0xff]  }
 0x472   : > { %v9819_v14 = vpop.f32.mrb[48].mxu1 }
 0x473   : > { %v9820_v28 = vpop.f32.mrb[49].mxu1 }
 0x474   : > { %v9821_v44 = vadd.f32 %v9820_v28, %v9819_v14  ;;  %v9822_v29 = vpop.f32.mrb[50].mxu1  ;;  %v11156_v14 = vld [vmem:[%s13214_s5 + $0xc0] sm:$0xff]  }
 0x475   : > { %v9823_v30 = vpop.f32.mrb[51].mxu1  ;;  %v11158_v29 = vld [vmem:[%s13214_s5 + $0xd0] sm:$0xff]  }
 0x476   : > { %v11159_v30 = vld [vmem:[%s13214_s5 + $0xd8] sm:$0xff]  }
 0x479   : > { %v9797_v34 = vpop.f32.mrb[72].mxu0 }
 0x47a   : > { %v9798_v31 = vpop.f32.mrb[73].mxu0 }
 0x47b   : > { %v9799_v32 = vadd.f32 %v9798_v31, %v9797_v34  ;;  %v9800_v54 = vpop.f32.mrb[74].mxu0  ;;  %v11160_v34 = vld [vmem:[%s13214_s5 + $0xe0] sm:$0xff]   ;;  %v11161_v31 = vld [vmem:[%s13214_s5 + $0xe8] sm:$0xff]  }
 0x47c   : > { %v9801_v33 = vpop.f32.mrb[75].mxu0  ;;  %v11163_v54 = vld [vmem:[%s13214_s5 + $0xf8] sm:$0xff]  }
 0x47d   : > { %v6196_v37 = vadd.f32 %v9821_v44, %v9799_v32  ;;  %v11157_v44 = vld [vmem:[%s13214_s5 + $0xc8] sm:$0xff]   ;;  %v11162_v32 = vld [vmem:[%s13214_s5 + $0xf0] sm:$0xff]   ;;  %v11164_v33 = vld [vmem:[%s13214_s5 + $0x100] sm:$0xff]  }
 0x492   : > { %v9863_v38 = vpop.f32.mrb[52].mxu1 }
 0x493   : > { %v9864_v39 = vpop.f32.mrb[53].mxu1 }
 0x494   : > { %v9865_v40 = vadd.f32 %v9864_v39, %v9863_v38  ;;  %v9866_v62 = vpop.f32.mrb[54].mxu1  ;;  %v11165_v38 = vld [vmem:[%s13214_s5 + $0x108] sm:$0xff]   ;;  %v11166_v39 = vld [vmem:[%s13214_s5 + $0x110] sm:$0xff]  }
 0x495   : > { %v9867_v41 = vpop.f32.mrb[55].mxu1  ;;  %v11168_v62 = vld [vmem:[%s13214_s5 + $0x120] sm:$0xff]  }
 0x496   : > { %v11169_v41 = vld [vmem:[%s13214_s5 + $0x128] sm:$0xff]  }
 0x499   : > { %v9841_v42 = vpop.f32.mrb[76].mxu0 }
 0x49a   : > { %v9842_v46 = vpop.f32.mrb[77].mxu0 }
 0x49b   : > { %v9843_v47 = vadd.f32 %v9842_v46, %v9841_v42  ;;  %v9844_v48 = vpop.f32.mrb[78].mxu0  ;;  %v11170_v42 = vld [vmem:[%s13214_s5 + $0x130] sm:$0xff]   ;;  %v11171_v46 = vld [vmem:[%s13214_s5 + $0x138] sm:$0xff]  }
 0x49c   : > { %v9845_v50 = vpop.f32.mrb[79].mxu0  ;;  %v11179_v48 = vld [vmem:[%s13216_s7 + $0x38] sm:$0xff]  }
 0x49d   : > { %v6370_v51 = vadd.f32 %v9843_v47, %v6196_v37  ;;  %10411 = vmatpush3.bf16.msra.mxu1 %v11179_v48  ;;  %v6890_v50 = vld [vmem:[%s13215_s6] sm:$0x1] }
 0x49e   : > { %10416 = vmatprep.subr.bf16.mxu1 %v11287_v36 }
 0x4b2   : > { %v9907_v52 = vpop.f32.mrb[56].mxu1 }
 0x4b3   : > { %v9908_v53 = vpop.f32.mrb[57].mxu1 }
 0x4b4   : > { %v9909_v55 = vadd.f32 %v9908_v53, %v9907_v52  ;;  %v9910_v56 = vpop.f32.mrb[58].mxu1 }
 0x4b5   : > { %v9911_v57 = vpop.f32.mrb[59].mxu1  ;;  %v11180_v56 = vld [vmem:[%s13218_s9] sm:$0xff]  }
 0x4b9   : > { %v9885_v45 = vpop.f32.mrb[80].mxu0 }
 0x4ba   : > { %v9886_v43 = vpop.f32.mrb[81].mxu0 }
 0x4bb   : > { %v9887_v59 = vadd.f32 %v9886_v43, %v9885_v45  ;;  %v9888_v7 = vpop.f32.mrb[82].mxu0  ;;  %v11181_v43 = vld [vmem:[%s13218_s9 + $0x8] sm:$0xff]  }
 0x4bc   : > { %v9889_v63 = vpop.f32.mrb[83].mxu0  ;;  %v11183_v7 = vld [vmem:[%s13218_s9 + $0x18] sm:$0xff]  }
 0x4bd   : > { %v6704_v60 = vadd.f32 %v9887_v59, %v9865_v40  ;;  %v11167_v40 = vld [vmem:[%s13214_s5 + $0x118] sm:$0xff]   ;;  %v11182_v59 = vld [vmem:[%s13218_s9 + $0x10] sm:$0xff]   ;;  %v11184_v63 = vld [vmem:[%s13218_s9 + $0x20] sm:$0xff]  }
 0x4bf   : > { %v6878_v0 = vadd.f32 %v9909_v55, %v6704_v60  ;;  %v11185_v60 = vld [vmem:[%s13218_s9 + $0x28] sm:$0xff]  }
 0x4c1   : > { %v6880_v24 = vmax.f32 %v6370_v51, %v6878_v0  ;;  %v11186_v0 = vld [vmem:[%s13218_s9 + $0x30] sm:$0xff]  }
 0x4c3   : > { %v6881_v35 = vmax.f32 %v6879_v27, %v6880_v24  ;;  %v11155_v27 = vld [vmem:[%s13214_s5 + $0xb8] sm:$0xff]  }
 0x4c4   : > { %v11187_v24 = vld [vmem:[%s13218_s9 + $0x38] sm:$0xff]  }
 0x4c5   : > { %v6889_v3 = vadd.f32 %v9029_v2, %v6881_v35  ;;  %v7449_v2 = vld [vmem:[%s13217_s8] sm:$0x1] }
 0x4c7   : > { %v12950_v4 = vpack.c.bf16 %v6889_v3, %v6889_v3 }
 0x4c9   : > { %10313 = vmatmul.mubr.bf16.vlgmr.msra.gmra.mrb[84].mxu0 %v12950_v4  ;;  %v7015_v20 = vshrl.u32 %v12950_v4, 16  ;;  %v7125_v28 = vrot.slane %v12950_v4, 1  ;;  %v7341_v47 = vrot.slane %v12950_v4, 2 }
 0x4ca   : > { %10317 = vmatpush3.bf16.msra.mxu0 %v11140_v61  ;;  %10332 = vmatprep.mubr.msk.bf16.mxu0 %vm11288_vm0, %v11287_v36 }
 0x4cb   : > { %10318 = vmatprep.subr.bf16.mxu0 %v11287_v36  ;;  %v7233_v37 = vrot.slane %v7015_v20, 1 }
 0x4ce   : > { %10319 = vmatpush3.bf16.msra.mxu0 %v11141_v8 }
 0x4cf   : > { %10320 = vmatprep.subr.bf16.mxu0 %v11287_v36 }
 0x4d2   : > { %10321 = vmatpush3.bf16.msra.mxu0 %v11142_v13 }
 0x4d3   : > { %10322 = vmatprep.subr.bf16.mxu0 %v11287_v36 }
 0x4d6   : > { %10323 = vmatpush3.bf16.msra.mxu0 %v11143_v5 }
 0x4d7   : > { %10324 = vmatprep.subr.bf16.mxu0 %v11287_v36 }
 0x4da   : > { %10325 = vmatpush3.bf16.msra.mxu0 %v11144_v49 }
 0x4db   : > { %10326 = vmatprep.subr.bf16.mxu0 %v11287_v36 }
 0x4de   : > { %10327 = vmatpush3.bf16.msra.mxu0 %v11145_v11 }
 0x4df   : > { %10328 = vmatprep.subr.bf16.mxu0 %v11287_v36 }
 0x4e2   : > { %10329 = vmatpush3.bf16.msra.mxu0 %v11146_v16 }
 0x4e3   : > { %10330 = vmatprep.subr.bf16.mxu0 %v11287_v36 }
 0x4e6   : > { %10331 = vmatpush3.bf16.msra.mxu0 %v11147_v18 }
 0x4e7   : > { %10336 = vmatprep.subr.bf16.mxu0 %v11287_v36 }
 0x4e9   : > { %10333 = vmatmul.mubr.bf16.vlgmr.msra.gmra.mrb[84].mxu0 %v7015_v20 }
 0x4ea   : > { %10337 = vmatpush3.bf16.msra.mxu0 %v11148_v19  ;;  %10352 = vmatprep.mubr.msk.bf16.mxu0 %vm11288_vm0, %v11287_v36 }
 0x4eb   : > { %10338 = vmatprep.subr.bf16.mxu0 %v11287_v36 }
 0x4ee   : > { %10339 = vmatpush3.bf16.msra.mxu0 %v11149_v21 }
 0x4ef   : > { %10340 = vmatprep.subr.bf16.mxu0 %v11287_v36 }
 0x4f2   : > { %10341 = vmatpush3.bf16.msra.mxu0 %v11150_v22 }
 0x4f3   : > { %10342 = vmatprep.subr.bf16.mxu0 %v11287_v36 }
 0x4f6   : > { %10343 = vmatpush3.bf16.msra.mxu0 %v11151_v23 }
 0x4f7   : > { %10344 = vmatprep.subr.bf16.mxu0 %v11287_v36 }
 0x4fa   : > { %10345 = vmatpush3.bf16.msra.mxu0 %v11152_v25 }
 0x4fb   : > { %10346 = vmatprep.subr.bf16.mxu0 %v11287_v36 }
 0x4fe   : > { %10347 = vmatpush3.bf16.msra.mxu0 %v11153_v26 }
 0x4ff   : > { %10348 = vmatprep.subr.bf16.mxu0 %v11287_v36 }
 0x502   : > { %10349 = vmatpush3.bf16.msra.mxu0 %v11154_v10 }
 0x503   : > { %10350 = vmatprep.subr.bf16.mxu0 %v11287_v36 }
 0x506   : > { %10351 = vmatpush3.bf16.msra.mxu0 %v11155_v27 }
 0x507   : > { %10356 = vmatprep.subr.bf16.mxu0 %v11287_v36 }
 0x509   : > { %10353 = vmatmul.mubr.bf16.vlgmr.msra.gmra.mrb[84].mxu0 %v7125_v28 }
 0x50a   : > { %10357 = vmatpush3.bf16.msra.mxu0 %v11156_v14  ;;  %10372 = vmatprep.mubr.msk.bf16.mxu0 %vm11288_vm0, %v11287_v36 }
 0x50b   : > { %10358 = vmatprep.subr.bf16.mxu0 %v11287_v36 }
 0x50e   : > { %10359 = vmatpush3.bf16.msra.mxu0 %v11157_v44 }
 0x50f   : > { %10360 = vmatprep.subr.bf16.mxu0 %v11287_v36 }
 0x512   : > { %10361 = vmatpush3.bf16.msra.mxu0 %v11158_v29 }
 0x513   : > { %10362 = vmatprep.subr.bf16.mxu0 %v11287_v36 }
 0x516   : > { %10363 = vmatpush3.bf16.msra.mxu0 %v11159_v30 }
 0x517   : > { %10364 = vmatprep.subr.bf16.mxu0 %v11287_v36 }
 0x51a   : > { %10365 = vmatpush3.bf16.msra.mxu0 %v11160_v34 }
 0x51b   : > { %10366 = vmatprep.subr.bf16.mxu0 %v11287_v36 }
 0x51e   : > { %10367 = vmatpush3.bf16.msra.mxu0 %v11161_v31 }
 0x51f   : > { %10368 = vmatprep.subr.bf16.mxu0 %v11287_v36 }
 0x522   : > { %10369 = vmatpush3.bf16.msra.mxu0 %v11162_v32 }
 0x523   : > { %10370 = vmatprep.subr.bf16.mxu0 %v11287_v36 }
 0x526   : > { %10371 = vmatpush3.bf16.msra.mxu0 %v11163_v54 }
 0x527   : > { %10376 = vmatprep.subr.bf16.mxu0 %v11287_v36 }
 0x529   : > { %10373 = vmatmul.mubr.bf16.vlgmr.msra.gmra.mrb[84].mxu0 %v7233_v37 }
 0x52a   : > { %10377 = vmatpush3.bf16.msra.mxu0 %v11164_v33  ;;  %10392 = vmatprep.mubr.msk.bf16.mxu0 %vm11288_vm0, %v11287_v36 }
 0x52b   : > { %10378 = vmatprep.subr.bf16.mxu0 %v11287_v36 }
 0x52e   : > { %10379 = vmatpush3.bf16.msra.mxu0 %v11165_v38 }
 0x52f   : > { %10380 = vmatprep.subr.bf16.mxu0 %v11287_v36 }
 0x532   : > { %10381 = vmatpush3.bf16.msra.mxu0 %v11166_v39 }
 0x533   : > { %10382 = vmatprep.subr.bf16.mxu0 %v11287_v36 }
 0x536   : > { %10383 = vmatpush3.bf16.msra.mxu0 %v11167_v40 }
 0x537   : > { %10384 = vmatprep.subr.bf16.mxu0 %v11287_v36 }
 0x53a   : > { %10385 = vmatpush3.bf16.msra.mxu0 %v11168_v62 }
 0x53b   : > { %10386 = vmatprep.subr.bf16.mxu0 %v11287_v36 }
 0x53e   : > { %10387 = vmatpush3.bf16.msra.mxu0 %v11169_v41 }
 0x53f   : > { %10388 = vmatprep.subr.bf16.mxu0 %v11287_v36 }
 0x542   : > { %10389 = vmatpush3.bf16.msra.mxu0 %v11170_v42 }
 0x543   : > { %10390 = vmatprep.subr.bf16.mxu0 %v11287_v36 }
 0x546   : > { %10391 = vmatpush3.bf16.msra.mxu0 %v11171_v46 }
 0x549   : > { %10393 = vmatmul.mubr.bf16.vlgmr.msra.gmra.mrb[84].mxu0 %v7341_v47 }
 0x61c   : > { %v7425_v51 = vpop.f32.mrb[84].mxu0 }
 0x61d   : > { %v10452_v52 = vadd.f32 %v7425_v51, %v6890_v50  ;;  %v10394_v53 = vpop.f32.mrb[85].mxu0 }
 0x61e   : > { %v7428_v55 = vpop.f32.mrb[86].mxu0 }
 0x61f   : > { %v7432_v57 = vpack.c.bf16 %v10452_v52, %v10452_v52  ;;  %v10395_v45 = vpop.f32.mrb[87].mxu0 }
 0x621   : > { %10413 = vmatmul.mubr.bf16.vlgmr.msra.gmra.mrb[60].mxu1 %v7432_v57 }
 0x622   : > { %10417 = vmatpush3.bf16.msra.mxu1 %v11180_v56  ;;  %10432 = vmatprep.mubr.msk.bf16.mxu1 %vm11288_vm0, %v11287_v36 }
 0x623   : > { %10418 = vmatprep.subr.bf16.mxu1 %v11287_v36 }
 0x626   : > { %10419 = vmatpush3.bf16.msra.mxu1 %v11181_v43 }
 0x627   : > { %10420 = vmatprep.subr.bf16.mxu1 %v11287_v36 }
 0x62a   : > { %10421 = vmatpush3.bf16.msra.mxu1 %v11182_v59 }
 0x62b   : > { %10422 = vmatprep.subr.bf16.mxu1 %v11287_v36 }
 0x62e   : > { %10423 = vmatpush3.bf16.msra.mxu1 %v11183_v7 }
 0x62f   : > { %10424 = vmatprep.subr.bf16.mxu1 %v11287_v36 }
 0x632   : > { %10425 = vmatpush3.bf16.msra.mxu1 %v11184_v63 }
 0x633   : > { %10426 = vmatprep.subr.bf16.mxu1 %v11287_v36 }
 0x636   : > { %10427 = vmatpush3.bf16.msra.mxu1 %v11185_v60 }
 0x637   : > { %10428 = vmatprep.subr.bf16.mxu1 %v11287_v36 }
 0x63a   : > { %10429 = vmatpush3.bf16.msra.mxu1 %v11186_v0 }
 0x63b   : > { %10430 = vmatprep.subr.bf16.mxu1 %v11287_v36  ;;  %v7555_v36 = vld [vmem:[%s13219_s10] sm:$0x1] }
 0x63e   : > { %10431 = vmatpush3.bf16.msra.mxu1 %v11187_v24 }
 0x6f4   : > { %v7532_v35 = vpop.f32.mrb[60].mxu1 }
 0x6f5   : > { %v7533_v3 = vadd.f32 %v7532_v35, %v7449_v2  ;;  %v10414_v61 = vpop.f32.mrb[61].mxu1 }
 0x6f6   : > { %v7535_v4 = vpop.f32.mrb[62].mxu1 }
 0x6f7   : > { %v7538_v6 = vpack.c.bf16 %v7533_v3, %v7533_v3  ;;  %v10415_v8 = vpop.f32.mrb[63].mxu1 }
 0x6f9   : > { %10433 = vmatmul.mubr.bf16.vlgmr.msra.gmra.mrb[64].mxu1 %v7538_v6 }
 0x7cc   : > { %v7638_v12 = vpop.f32.mrb[64].mxu1 }
 0x7cd   : > { %v7639_v13 = vadd.f32 %v7638_v12, %v7555_v36  ;;  %v10434_v15 = vpop.f32.mrb[65].mxu1 }
 0x7ce   : > { %v7641_v5 = vpop.f32.mrb[66].mxu1 }
 0x7cf   : > { %7644 = vst [vmem:[%s393_s15] sm:$0x1] %v7639_v13  ;;  %v10435_v9 = vpop.f32.mrb[67].mxu1 }
 0x7d0   : > { %11229 = shalt.err (!%p11226_p7)
}
 0x7d1   : > { %s11230_s29 = scalar_lea.hbm %s13167_s13, 16  ;;  %s11234_s25 = scalar_lea.hbm %s13220_s11, 32 }
 0x7d2   : > { %p11231_p8 = scmp.ne.s32.totalorder %s13167_s13, %s11230_s29  ;;  %p11235_p1 = scmp.lt.u32.totalorder %s13167_s13, %s13220_s11 }
 0x7d3   : > { %p11236_p0 = scmp.lt.u32.totalorder %s11234_s25, %s11230_s29  ;;  %p11238_p6 = scmp.lt.u32.totalorder %s11230_s29, %s13167_s13 }
 0x7d4   : > { %p11232_p11 = pnand %p11231_p8, %p13232_p9 }
 0x7d5   : > { %p11237_p5 = por %p11236_p0, %p11235_p1 }
 0x7d6   : > { %p11233_p13 = pneg %p11232_p11 }
 0x7d7   : > { %p11239_p10 = por %p11238_p6, %p11237_p5 }
 0x7d9   : > { %p11240_p12 = pnand %p11239_p10, %p11233_p13 }
 0x7db   : > { %11243 = shalt.err (!%p11240_p12)
}
 0x7dc   : > { %10506 = dma.vmem_to_hbm [thread:$0]  (%p13232_p9), %s13169_s16, 16, %s13167_s13, %s7646_s22  }
 0x7dd PF: > { %p10518_p2 = scmp.ge.s32.totalorder %s11282_s20, 2  ;;  %s7670_s21 = sand.u32 1, %s11270_s17  }
 0x7de   : > { %p13233_p3 = scmp.ne.s32.totalorder %s13226_s28, 0  ;;  %s7671_s14 = scalar_lea.sflag [#allocation5], %s7670_s21 }
 0x7e0   : > { %p10513_p4 = pnand %p10518_p2, %p13233_p3 }
 0x7e2   : > { %11265 = dma.done.wait (!%p10513_p4), %s7671_s14, 16  }
 0x7e3   : > { %11267 = vsyncadd (!%p10513_p4), %s7671_s14, 4294967280  ;;  %s13234_s24 = sld [smem:[#allocation9_spill]]  ;;  %p22_p7 = scmp.ge.s32.totalorder %s11375_s23, 4  }
 0x7e4   : > { %s13235_s17 = smov %s11274_s18  ;;  %s13236_s18 = smov %s11278_s19 }
 0x7e5   : > { %s13238_s20 = smov %s11375_s23  ;;  %24 = sbr.rel (!%p22_p7) target bundleno = 4 (0x4), region = 134 }
 0x7e9   : > { %s13237_s19 = smov %s13234_s24 }
 0x7ec   :  { %7675 = vsyncpa [#allocation4], 1 }
 0x7ed   :  { %7677 = vsyncpa [#allocation4 + $0x1], 1 }
 0x7ee   :  { %7678 = vsyncpa [#allocation5], 1 }
 0x7ef   :  { %7680 = vsyncpa [#allocation5 + $0x1], 1 }

</bundles_post_ra>
